<compile_context>
chip_gen: v6e
topology: v6e:2x2x1
jax: 0.10.0
libtpu: 0.0.40
codegen_flags: <defaults>
</compile_context>

<pallas_src>
import math
import numpy as np
import jax
import jax.numpy as jnp
from jax import lax
from jax.experimental import pallas as pl
from jax.experimental.pallas import tpu as pltpu

_C2 = 0.03 ** 2


# ----------------------------- parameter init ------------------------------
def _gaussian_1d(window_size: int, sigma: float) -> np.ndarray:
    g = np.array(
        [math.exp(-((x - window_size // 2) ** 2) / float(2 * sigma ** 2))
         for x in range(window_size)],
        dtype=np.float64,
    )
    return (g / g.sum()).astype(np.float32)


# ------------------------------ JAX glue op ---------------------------------
def _rgb_to_lab(srgb):
    # Faithful reproduction of the PyTorch rgb_to_lab, including the
    # reshape(-1, 3) over the *flattened NCHW* tensor (triples of consecutive
    # flattened elements — NOT RGB channel triples).
    orig_shape = srgb.shape
    p = srgb.reshape(-1, 3)
    lin = (p <= 0.04045).astype(jnp.float32)
    exp = (p > 0.04045).astype(jnp.float32)
    rgb = p / 12.92 * lin + ((p + 0.055) / 1.055) ** 2.4 * exp
    rgb_to_xyz = jnp.array(
        [[0.412453, 0.212671, 0.019334],
         [0.35758, 0.71516, 0.119193],
         [0.180423, 0.072169, 0.950227]], jnp.float32)
    xyz = rgb @ rgb_to_xyz
    xyz_n = xyz * jnp.array([1.0 / 0.950456, 1.0, 1.0 / 1.088754], jnp.float32)
    eps = 6.0 / 29.0
    lin2 = (xyz_n <= eps ** 3).astype(jnp.float32)
    exp2 = (xyz_n > eps ** 3).astype(jnp.float32)
    fxfyfz = (xyz_n / (3 * eps ** 2) + 4.0 / 29.0) * lin2 \
        + (xyz_n + 1e-6) ** (1.0 / 3.0) * exp2
    fxfyfz_to_lab = jnp.array(
        [[0.0, 500.0, 0.0],
         [116.0, -500.0, 200.0],
         [0.0, 0.0, -200.0]], jnp.float32)
    lab = fxfyfz @ fxfyfz_to_lab + jnp.array([-16.0, 0.0, 0.0], jnp.float32)
    return lab.reshape(orig_shape)


# ------------------------------ Pallas kernel -------------------------------
def _make_scdiff_kernel(g1d: np.ndarray, C: int, H: int, W: int, alpha: float):
    ws = int(g1d.shape[0])
    assert ws == 5, "SCDiffer uses a 5x5 SSIM window"
    g0, g1, g2 = float(g1d[0]), float(g1d[1]), float(g1d[2])   # symmetric taps
    pad = ws // 2                                              # 2
    inv_c = 1.0 / C
    n = H * W
    inv_n = 1.0 / n
    inv_nm1 = 1.0 / (n - 1)                                    # torch.std (unbiased)
    alpha = float(alpha)

    def kernel(x1_ref, x2_ref, ld_ref, out_ref, vpad, hpad, mpad):
        # Zero the halo rows/cols of the separable-conv scratch pads every step
        # (cheap; correct even when grid steps are sharded across TensorCores,
        # each owning its own scratch).
        zr = jnp.zeros((C, pad, W), jnp.float32)
        vpad[:, 0:pad, :] = zr
        vpad[:, H + pad:H + 2 * pad, :] = zr
        zc = jnp.zeros((C, H, pad), jnp.float32)
        hpad[:, :, 0:pad] = zc
        hpad[:, :, W + pad:W + 2 * pad] = zc

        def conv5(F):  # separable symmetric 5-tap gaussian, zero padding
            vpad[:, pad:pad + H, :] = F
            v = (g2 * F
                 + g1 * (vpad[:, 1:1 + H, :] + vpad[:, 3:3 + H, :])
                 + g0 * (vpad[:, 0:H, :] + vpad[:, 4:4 + H, :]))
            hpad[:, :, pad:pad + W] = v
            return (g2 * v
                    + g1 * (hpad[:, :, 1:1 + W] + hpad[:, :, 3:3 + W])
                    + g0 * (hpad[:, :, 0:W] + hpad[:, :, 4:4 + W]))

        def box3(F):   # separable 3x3 box blur, zero padding (reuses halo pads)
            vpad[:, pad:pad + H, :] = F
            v = F + vpad[:, 1:1 + H, :] + vpad[:, 3:3 + H, :]
            hpad[:, :, pad:pad + W] = v
            return (v + hpad[:, :, 1:1 + W] + hpad[:, :, 3:3 + W]) * (1.0 / 9.0)

        def normalize(x):  # (H,W): two-pass mean / unbiased std, no epsilon
            m = jnp.sum(x, keepdims=True) * inv_n
            xc = x - m
            var = jnp.sum(xc * xc, keepdims=True) * inv_nm1
            return xc * lax.rsqrt(var)

        A = x1_ref[0]                    # (C, H, W)
        B = x2_ref[0]

        # --- SSIM contrast term ---
        mu1 = conv5(A)
        mu2 = conv5(B)
        s11 = conv5(A * A)
        s22 = conv5(B * B)
        s12 = conv5(A * B)
        sigma1_sq = s11 - mu1 * mu1
        sigma2_sq = s22 - mu2 * mu2
        sigma12 = s12 - mu1 * mu2
        con = (2.0 * sigma12 + _C2) * pl.reciprocal(
            sigma1_sq + sigma2_sq + _C2, approx=True)
        cs = 1.0 - jnp.sum(con, axis=0) * inv_c               # (H, W)

        # --- LAB color difference: box-blur(lab1 - lab2), then L2 over C ---
        d = box3(ld_ref[0])
        labd = jnp.sqrt(jnp.sum(d * d, axis=0))               # (H, W)

        # --- normalize / combine / re-normalize / clamp ---
        csn = normalize(cs)
        ldn = normalize(labd)
        occ = normalize(ldn * csn + ldn + csn * alpha)
        occ = jnp.minimum(jnp.maximum(occ, 0.0), 1.0)

        # --- 5x5 median, reflect padding built in-kernel ---
        mpad[pad:pad + H, pad:pad + W] = occ
        mpad[0:1, pad:pad + W] = occ[2:3, :]
        mpad[1:2, pad:pad + W] = occ[1:2, :]
        mpad[H + 2:H + 3, pad:pad + W] = occ[H - 2:H - 1, :]
        mpad[H + 3:H + 4, pad:pad + W] = occ[H - 3:H - 2, :]
        mpad[:, 0:1] = mpad[:, 4:5]
        mpad[:, 1:2] = mpad[:, 3:4]
        mpad[:, W + 2:W + 3] = mpad[:, W:W + 1]
        mpad[:, W + 3:W + 4] = mpad[:, W - 1:W]

        def win(i):                       # shifted load of one window plane
            dy, dx = divmod(i, ws)
            return mpad[dy:dy + H, dx:dx + W]

        def drop_min(work):
            run = work[0]
            kept = []
            for v in work[1:]:
                kept.append(jnp.maximum(run, v))
                run = jnp.minimum(run, v)   # running min bubbles out
            return kept

        def drop_max(work):
            run = work[0]
            kept = []
            for v in work[1:]:
                kept.append(jnp.minimum(run, v))
                run = jnp.maximum(run, v)   # running max bubbles out
            return kept

        K = ws * ws                      # 25
        NKEEP = K // 2 + 2               # 14 -> exact rank-13 (median) of 25
        work = [win(i) for i in range(NKEEP)]
        for nxt in range(NKEEP, K):
            work = drop_min(work)        # provably below the median
            work = drop_max(work)        # provably above the median
            work.append(win(nxt))
        a, b, c = work                   # 3 candidates remain
        med = jnp.maximum(jnp.minimum(a, b),
                          jnp.minimum(jnp.maximum(a, b), c))
        out_ref[0, 0, :, :] = med

    return kernel


# -------------------------------- wrapper -----------------------------------
def _compiler_params():
    kwargs = dict(dimension_semantics=("parallel",))
    try:
        cap = int(pltpu.get_tpu_info().vmem_capacity_bytes)
        # Raise the scoped-VMEM limit but stay well under physical VMEM
        # (64 MiB on v7x, 128 MiB on v5e/v6e).
        kwargs["vmem_limit_bytes"] = int(min(cap * 3 // 4, 96 << 20))
    except Exception:
        pass  # fall back to compiler defaults if the query is unavailable
    return pltpu.CompilerParams(**kwargs)


def sc_differ(img1, img2, alpha=0.33, filter_size=5):
    N, C, H, W = img1.shape
    assert C == 3, "SCDiffer expects RGB (C=3) NCHW inputs"
    assert filter_size == 5
    assert H >= 3 and W >= 3, "reflect padding (pad=2) requires H, W >= 3"
    img1 = img1.astype(jnp.float32)
    img2 = img2.astype(jnp.float32)
    g1d = _gaussian_1d(filter_size, 1.5)
    pad = filter_size // 2

    # LAB difference (blur is linear, so blur(lab1)-blur(lab2) == blur(lab1-lab2)).
    ld = _rgb_to_lab(img1) - _rgb_to_lab(img2)

    out = pl.pallas_call(
        _make_scdiff_kernel(g1d, C, H, W, float(alpha)),
        out_shape=jax.ShapeDtypeStruct((N, 1, H, W), jnp.float32),
        grid=(N,),
        in_specs=[pl.BlockSpec((1, C, H, W), lambda n: (n, 0, 0, 0)),
                  pl.BlockSpec((1, C, H, W), lambda n: (n, 0, 0, 0)),
                  pl.BlockSpec((1, C, H, W), lambda n: (n, 0, 0, 0))],
        out_specs=pl.BlockSpec((1, 1, H, W), lambda n: (n, 0, 0, 0)),
        scratch_shapes=[
            pltpu.VMEM((C, H + 2 * pad, W), jnp.float32),       # vertical pad
            pltpu.VMEM((C, H, W + 2 * pad), jnp.float32),       # horizontal pad
            pltpu.VMEM((H + 2 * pad, W + 2 * pad), jnp.float32)  # median reflect pad
        ],
        compiler_params=_compiler_params(),
    )(img1, img2, ld)
    return out


if __name__ == "__main__":
    key = jax.random.PRNGKey(0)
    k1, k2 = jax.random.split(key)
    N, C, H, W = 2, 3, 16, 16
    img1 = jax.random.uniform(k1, (N, C, H, W), dtype=jnp.float32)
    img2 = jax.random.uniform(k2, (N, C, H, W), dtype=jnp.float32)

    occ_map = sc_differ(img1, img2, alpha=0.33)
    jax.block_until_ready(occ_map)
    assert occ_map.shape == (N, 1, H, W)
    assert occ_map.dtype == jnp.float32
    assert bool(jnp.all(jnp.isfinite(occ_map)))
    assert bool(jnp.all(occ_map >= 0.0)) and bool(jnp.all(occ_map <= 1.0))
    print("KERNEL_OK")
</pallas_src>

<mosaic_0001>
module attributes {stable_mosaic.version = 11 : i64} {
  func.func @kernel(%arg0: i32, %arg1: memref<1x3x16x16xf32, #tpu.memory_space<vmem>>, %arg2: memref<1x3x16x16xf32, #tpu.memory_space<vmem>>, %arg3: memref<1x3x16x16xf32, #tpu.memory_space<vmem>>, %arg4: memref<1x1x16x16xf32, #tpu.memory_space<vmem>>, %arg5: memref<3x20x16xf32, #tpu.memory_space<vmem>>, %arg6: memref<3x16x20xf32, #tpu.memory_space<vmem>>, %arg7: memref<20x20xf32, #tpu.memory_space<vmem>>) attributes {dimension_semantics = [#tpu.dimension_semantics<parallel>], iteration_bounds = array<i64: 2>, scalar_prefetch = 0 : i64, scratch_operands = 3 : i64, tpu.core_type = #tpu.core_type<tc>, window_params = [{transform_indices = @transform_0, window_bounds = array<i64: 1, 3, 16, 16>}, {transform_indices = @transform_1, window_bounds = array<i64: 1, 3, 16, 16>}, {transform_indices = @transform_2, window_bounds = array<i64: 1, 3, 16, 16>}, {transform_indices = @transform_3, window_bounds = array<i64: 1, 1, 16, 16>}]} {
    %cst = arith.constant 0.000000e+00 : f32
    %0 = vector.broadcast %cst : f32 to vector<3x2x16xf32>
    %c0 = arith.constant 0 : index
    %c0_0 = arith.constant 0 : index
    %c0_1 = arith.constant 0 : index
    %1 = vector.load %arg5[%c0, %c0_0, %c0_1] : memref<3x20x16xf32, #tpu.memory_space<vmem>>, vector<3x2x16xf32>
    tpu.vector_store %arg5[%c0, %c0_0, %c0_1], %0 {strides = array<i32>} : memref<3x20x16xf32, #tpu.memory_space<vmem>>, vector<3x2x16xf32>,
    %c0_2 = arith.constant 0 : index
    %c18 = arith.constant 18 : index
    %c0_3 = arith.constant 0 : index
    %2 = vector.load %arg5[%c0_2, %c18, %c0_3] : memref<3x20x16xf32, #tpu.memory_space<vmem>>, vector<3x2x16xf32>
    tpu.vector_store %arg5[%c0_2, %c18, %c0_3], %0 {strides = array<i32>} : memref<3x20x16xf32, #tpu.memory_space<vmem>>, vector<3x2x16xf32>,
    %cst_4 = arith.constant 0.000000e+00 : f32
    %3 = vector.broadcast %cst_4 : f32 to vector<3x16x2xf32>
    %c0_5 = arith.constant 0 : index
    %c0_6 = arith.constant 0 : index
    %c0_7 = arith.constant 0 : index
    %4 = vector.load %arg6[%c0_5, %c0_6, %c0_7] : memref<3x16x20xf32, #tpu.memory_space<vmem>>, vector<3x16x2xf32>
    tpu.vector_store %arg6[%c0_5, %c0_6, %c0_7], %3 {strides = array<i32>} : memref<3x16x20xf32, #tpu.memory_space<vmem>>, vector<3x16x2xf32>,
    %c0_8 = arith.constant 0 : index
    %c0_9 = arith.constant 0 : index
    %c18_10 = arith.constant 18 : index
    %5 = vector.load %arg6[%c0_8, %c0_9, %c18_10] : memref<3x16x20xf32, #tpu.memory_space<vmem>>, vector<3x16x2xf32>
    tpu.vector_store %arg6[%c0_8, %c0_9, %c18_10], %3 {strides = array<i32>} : memref<3x16x20xf32, #tpu.memory_space<vmem>>, vector<3x16x2xf32>,
    %c0_11 = arith.constant 0 : index
    %c0_12 = arith.constant 0 : index
    %c0_13 = arith.constant 0 : index
    %c0_14 = arith.constant 0 : index
    %6 = vector.load %arg1[%c0_11, %c0_12, %c0_13, %c0_14] : memref<1x3x16x16xf32, #tpu.memory_space<vmem>>, vector<1x3x16x16xf32>
    %7 = vector.shape_cast %6 : vector<1x3x16x16xf32> to vector<3x16x16xf32>
    %c0_15 = arith.constant 0 : index
    %c0_16 = arith.constant 0 : index
    %c0_17 = arith.constant 0 : index
    %c0_18 = arith.constant 0 : index
    %8 = vector.load %arg2[%c0_15, %c0_16, %c0_17, %c0_18] : memref<1x3x16x16xf32, #tpu.memory_space<vmem>>, vector<1x3x16x16xf32>
    %9 = vector.shape_cast %8 : vector<1x3x16x16xf32> to vector<3x16x16xf32>
    %c0_19 = arith.constant 0 : index
    %c2 = arith.constant 2 : index
    %c0_20 = arith.constant 0 : index
    %10 = vector.load %arg5[%c0_19, %c2, %c0_20] : memref<3x20x16xf32, #tpu.memory_space<vmem>>, vector<3x16x16xf32>
    tpu.vector_store %arg5[%c0_19, %c2, %c0_20], %7 {strides = array<i32>} : memref<3x20x16xf32, #tpu.memory_space<vmem>>, vector<3x16x16xf32>,
    %cst_21 = arith.constant 0.292081714 : f32
    %11 = vector.broadcast %cst_21 : f32 to vector<3x16x16xf32>
    %12 = arith.mulf %11, %7 : vector<3x16x16xf32>
    %c0_22 = arith.constant 0 : index
    %c1 = arith.constant 1 : index
    %c0_23 = arith.constant 0 : index
    %13 = vector.load %arg5[%c0_22, %c1, %c0_23] : memref<3x20x16xf32, #tpu.memory_space<vmem>>, vector<3x16x16xf32>
    %c0_24 = arith.constant 0 : index
    %c3 = arith.constant 3 : index
    %c0_25 = arith.constant 0 : index
    %14 = vector.load %arg5[%c0_24, %c3, %c0_25] : memref<3x20x16xf32, #tpu.memory_space<vmem>>, vector<3x16x16xf32>
    %15 = arith.addf %13, %14 : vector<3x16x16xf32>
    %cst_26 = arith.constant 0.233880758 : f32
    %16 = vector.broadcast %cst_26 : f32 to vector<3x16x16xf32>
    %17 = arith.mulf %16, %15 : vector<3x16x16xf32>
    %18 = arith.addf %12, %17 : vector<3x16x16xf32>
    %c0_27 = arith.constant 0 : index
    %c0_28 = arith.constant 0 : index
    %c0_29 = arith.constant 0 : index
    %19 = vector.load %arg5[%c0_27, %c0_28, %c0_29] : memref<3x20x16xf32, #tpu.memory_space<vmem>>, vector<3x16x16xf32>
    %c0_30 = arith.constant 0 : index
    %c4 = arith.constant 4 : index
    %c0_31 = arith.constant 0 : index
    %20 = vector.load %arg5[%c0_30, %c4, %c0_31] : memref<3x20x16xf32, #tpu.memory_space<vmem>>, vector<3x16x16xf32>
    %21 = arith.addf %19, %20 : vector<3x16x16xf32>
    %cst_32 = arith.constant 0.120078385 : f32
    %22 = vector.broadcast %cst_32 : f32 to vector<3x16x16xf32>
    %23 = arith.mulf %22, %21 : vector<3x16x16xf32>
    %24 = arith.addf %18, %23 : vector<3x16x16xf32>
    %c0_33 = arith.constant 0 : index
    %c0_34 = arith.constant 0 : index
    %c2_35 = arith.constant 2 : index
    %25 = vector.load %arg6[%c0_33, %c0_34, %c2_35] : memref<3x16x20xf32, #tpu.memory_space<vmem>>, vector<3x16x16xf32>
    tpu.vector_store %arg6[%c0_33, %c0_34, %c2_35], %24 {strides = array<i32>} : memref<3x16x20xf32, #tpu.memory_space<vmem>>, vector<3x16x16xf32>,
    %cst_36 = arith.constant 0.292081714 : f32
    %26 = vector.broadcast %cst_36 : f32 to vector<3x16x16xf32>
    %27 = arith.mulf %26, %24 : vector<3x16x16xf32>
    %c0_37 = arith.constant 0 : index
    %c0_38 = arith.constant 0 : index
    %c1_39 = arith.constant 1 : index
    %28 = vector.load %arg6[%c0_37, %c0_38, %c1_39] : memref<3x16x20xf32, #tpu.memory_space<vmem>>, vector<3x16x16xf32>
    %c0_40 = arith.constant 0 : index
    %c0_41 = arith.constant 0 : index
    %c3_42 = arith.constant 3 : index
    %29 = vector.load %arg6[%c0_40, %c0_41, %c3_42] : memref<3x16x20xf32, #tpu.memory_space<vmem>>, vector<3x16x16xf32>
    %30 = arith.addf %28, %29 : vector<3x16x16xf32>
    %cst_43 = arith.constant 0.233880758 : f32
    %31 = vector.broadcast %cst_43 : f32 to vector<3x16x16xf32>
    %32 = arith.mulf %31, %30 : vector<3x16x16xf32>
    %33 = arith.addf %27, %32 : vector<3x16x16xf32>
    %c0_44 = arith.constant 0 : index
    %c0_45 = arith.constant 0 : index
    %c0_46 = arith.constant 0 : index
    %34 = vector.load %arg6[%c0_44, %c0_45, %c0_46] : memref<3x16x20xf32, #tpu.memory_space<vmem>>, vector<3x16x16xf32>
    %c0_47 = arith.constant 0 : index
    %c0_48 = arith.constant 0 : index
    %c4_49 = arith.constant 4 : index
    %35 = vector.load %arg6[%c0_47, %c0_48, %c4_49] : memref<3x16x20xf32, #tpu.memory_space<vmem>>, vector<3x16x16xf32>
    %36 = arith.addf %34, %35 : vector<3x16x16xf32>
    %cst_50 = arith.constant 0.120078385 : f32
    %37 = vector.broadcast %cst_50 : f32 to vector<3x16x16xf32>
    %38 = arith.mulf %37, %36 : vector<3x16x16xf32>
    %39 = arith.addf %33, %38 : vector<3x16x16xf32>
    %c0_51 = arith.constant 0 : index
    %c2_52 = arith.constant 2 : index
    %c0_53 = arith.constant 0 : index
    %40 = vector.load %arg5[%c0_51, %c2_52, %c0_53] : memref<3x20x16xf32, #tpu.memory_space<vmem>>, vector<3x16x16xf32>
    tpu.vector_store %arg5[%c0_51, %c2_52, %c0_53], %9 {strides = array<i32>} : memref<3x20x16xf32, #tpu.memory_space<vmem>>, vector<3x16x16xf32>,
    %cst_54 = arith.constant 0.292081714 : f32
    %41 = vector.broadcast %cst_54 : f32 to vector<3x16x16xf32>
    %42 = arith.mulf %41, %9 : vector<3x16x16xf32>
    %c0_55 = arith.constant 0 : index
    %c1_56 = arith.constant 1 : index
    %c0_57 = arith.constant 0 : index
    %43 = vector.load %arg5[%c0_55, %c1_56, %c0_57] : memref<3x20x16xf32, #tpu.memory_space<vmem>>, vector<3x16x16xf32>
    %c0_58 = arith.constant 0 : index
    %c3_59 = arith.constant 3 : index
    %c0_60 = arith.constant 0 : index
    %44 = vector.load %arg5[%c0_58, %c3_59, %c0_60] : memref<3x20x16xf32, #tpu.memory_space<vmem>>, vector<3x16x16xf32>
    %45 = arith.addf %43, %44 : vector<3x16x16xf32>
    %cst_61 = arith.constant 0.233880758 : f32
    %46 = vector.broadcast %cst_61 : f32 to vector<3x16x16xf32>
    %47 = arith.mulf %46, %45 : vector<3x16x16xf32>
    %48 = arith.addf %42, %47 : vector<3x16x16xf32>
    %c0_62 = arith.constant 0 : index
    %c0_63 = arith.constant 0 : index
    %c0_64 = arith.constant 0 : index
    %49 = vector.load %arg5[%c0_62, %c0_63, %c0_64] : memref<3x20x16xf32, #tpu.memory_space<vmem>>, vector<3x16x16xf32>
    %c0_65 = arith.constant 0 : index
    %c4_66 = arith.constant 4 : index
    %c0_67 = arith.constant 0 : index
    %50 = vector.load %arg5[%c0_65, %c4_66, %c0_67] : memref<3x20x16xf32, #tpu.memory_space<vmem>>, vector<3x16x16xf32>
    %51 = arith.addf %49, %50 : vector<3x16x16xf32>
    %cst_68 = arith.constant 0.120078385 : f32
    %52 = vector.broadcast %cst_68 : f32 to vector<3x16x16xf32>
    %53 = arith.mulf %52, %51 : vector<3x16x16xf32>
    %54 = arith.addf %48, %53 : vector<3x16x16xf32>
    %c0_69 = arith.constant 0 : index
    %c0_70 = arith.constant 0 : index
    %c2_71 = arith.constant 2 : index
    %55 = vector.load %arg6[%c0_69, %c0_70, %c2_71] : memref<3x16x20xf32, #tpu.memory_space<vmem>>, vector<3x16x16xf32>
    tpu.vector_store %arg6[%c0_69, %c0_70, %c2_71], %54 {strides = array<i32>} : memref<3x16x20xf32, #tpu.memory_space<vmem>>, vector<3x16x16xf32>,
    %cst_72 = arith.constant 0.292081714 : f32
    %56 = vector.broadcast %cst_72 : f32 to vector<3x16x16xf32>
    %57 = arith.mulf %56, %54 : vector<3x16x16xf32>
    %c0_73 = arith.constant 0 : index
    %c0_74 = arith.constant 0 : index
    %c1_75 = arith.constant 1 : index
    %58 = vector.load %arg6[%c0_73, %c0_74, %c1_75] : memref<3x16x20xf32, #tpu.memory_space<vmem>>, vector<3x16x16xf32>
    %c0_76 = arith.constant 0 : index
    %c0_77 = arith.constant 0 : index
    %c3_78 = arith.constant 3 : index
    %59 = vector.load %arg6[%c0_76, %c0_77, %c3_78] : memref<3x16x20xf32, #tpu.memory_space<vmem>>, vector<3x16x16xf32>
    %60 = arith.addf %58, %59 : vector<3x16x16xf32>
    %cst_79 = arith.constant 0.233880758 : f32
    %61 = vector.broadcast %cst_79 : f32 to vector<3x16x16xf32>
    %62 = arith.mulf %61, %60 : vector<3x16x16xf32>
    %63 = arith.addf %57, %62 : vector<3x16x16xf32>
    %c0_80 = arith.constant 0 : index
    %c0_81 = arith.constant 0 : index
    %c0_82 = arith.constant 0 : index
    %64 = vector.load %arg6[%c0_80, %c0_81, %c0_82] : memref<3x16x20xf32, #tpu.memory_space<vmem>>, vector<3x16x16xf32>
    %c0_83 = arith.constant 0 : index
    %c0_84 = arith.constant 0 : index
    %c4_85 = arith.constant 4 : index
    %65 = vector.load %arg6[%c0_83, %c0_84, %c4_85] : memref<3x16x20xf32, #tpu.memory_space<vmem>>, vector<3x16x16xf32>
    %66 = arith.addf %64, %65 : vector<3x16x16xf32>
    %cst_86 = arith.constant 0.120078385 : f32
    %67 = vector.broadcast %cst_86 : f32 to vector<3x16x16xf32>
    %68 = arith.mulf %67, %66 : vector<3x16x16xf32>
    %69 = arith.addf %63, %68 : vector<3x16x16xf32>
    %70 = arith.mulf %7, %7 : vector<3x16x16xf32>
    %c0_87 = arith.constant 0 : index
    %c2_88 = arith.constant 2 : index
    %c0_89 = arith.constant 0 : index
    %71 = vector.load %arg5[%c0_87, %c2_88, %c0_89] : memref<3x20x16xf32, #tpu.memory_space<vmem>>, vector<3x16x16xf32>
    tpu.vector_store %arg5[%c0_87, %c2_88, %c0_89], %70 {strides = array<i32>} : memref<3x20x16xf32, #tpu.memory_space<vmem>>, vector<3x16x16xf32>,
    %cst_90 = arith.constant 0.292081714 : f32
    %72 = vector.broadcast %cst_90 : f32 to vector<3x16x16xf32>
    %73 = arith.mulf %72, %70 : vector<3x16x16xf32>
    %c0_91 = arith.constant 0 : index
    %c1_92 = arith.constant 1 : index
    %c0_93 = arith.constant 0 : index
    %74 = vector.load %arg5[%c0_91, %c1_92, %c0_93] : memref<3x20x16xf32, #tpu.memory_space<vmem>>, vector<3x16x16xf32>
    %c0_94 = arith.constant 0 : index
    %c3_95 = arith.constant 3 : index
    %c0_96 = arith.constant 0 : index
    %75 = vector.load %arg5[%c0_94, %c3_95, %c0_96] : memref<3x20x16xf32, #tpu.memory_space<vmem>>, vector<3x16x16xf32>
    %76 = arith.addf %74, %75 : vector<3x16x16xf32>
    %cst_97 = arith.constant 0.233880758 : f32
    %77 = vector.broadcast %cst_97 : f32 to vector<3x16x16xf32>
    %78 = arith.mulf %77, %76 : vector<3x16x16xf32>
    %79 = arith.addf %73, %78 : vector<3x16x16xf32>
    %c0_98 = arith.constant 0 : index
    %c0_99 = arith.constant 0 : index
    %c0_100 = arith.constant 0 : index
    %80 = vector.load %arg5[%c0_98, %c0_99, %c0_100] : memref<3x20x16xf32, #tpu.memory_space<vmem>>, vector<3x16x16xf32>
    %c0_101 = arith.constant 0 : index
    %c4_102 = arith.constant 4 : index
    %c0_103 = arith.constant 0 : index
    %81 = vector.load %arg5[%c0_101, %c4_102, %c0_103] : memref<3x20x16xf32, #tpu.memory_space<vmem>>, vector<3x16x16xf32>
    %82 = arith.addf %80, %81 : vector<3x16x16xf32>
    %cst_104 = arith.constant 0.120078385 : f32
    %83 = vector.broadcast %cst_104 : f32 to vector<3x16x16xf32>
    %84 = arith.mulf %83, %82 : vector<3x16x16xf32>
    %85 = arith.addf %79, %84 : vector<3x16x16xf32>
    %c0_105 = arith.constant 0 : index
    %c0_106 = arith.constant 0 : index
    %c2_107 = arith.constant 2 : index
    %86 = vector.load %arg6[%c0_105, %c0_106, %c2_107] : memref<3x16x20xf32, #tpu.memory_space<vmem>>, vector<3x16x16xf32>
    tpu.vector_store %arg6[%c0_105, %c0_106, %c2_107], %85 {strides = array<i32>} : memref<3x16x20xf32, #tpu.memory_space<vmem>>, vector<3x16x16xf32>,
    %cst_108 = arith.constant 0.292081714 : f32
    %87 = vector.broadcast %cst_108 : f32 to vector<3x16x16xf32>
    %88 = arith.mulf %87, %85 : vector<3x16x16xf32>
    %c0_109 = arith.constant 0 : index
    %c0_110 = arith.constant 0 : index
    %c1_111 = arith.constant 1 : index
    %89 = vector.load %arg6[%c0_109, %c0_110, %c1_111] : memref<3x16x20xf32, #tpu.memory_space<vmem>>, vector<3x16x16xf32>
    %c0_112 = arith.constant 0 : index
    %c0_113 = arith.constant 0 : index
    %c3_114 = arith.constant 3 : index
    %90 = vector.load %arg6[%c0_112, %c0_113, %c3_114] : memref<3x16x20xf32, #tpu.memory_space<vmem>>, vector<3x16x16xf32>
    %91 = arith.addf %89, %90 : vector<3x16x16xf32>
    %cst_115 = arith.constant 0.233880758 : f32
    %92 = vector.broadcast %cst_115 : f32 to vector<3x16x16xf32>
    %93 = arith.mulf %92, %91 : vector<3x16x16xf32>
    %94 = arith.addf %88, %93 : vector<3x16x16xf32>
    %c0_116 = arith.constant 0 : index
    %c0_117 = arith.constant 0 : index
    %c0_118 = arith.constant 0 : index
    %95 = vector.load %arg6[%c0_116, %c0_117, %c0_118] : memref<3x16x20xf32, #tpu.memory_space<vmem>>, vector<3x16x16xf32>
    %c0_119 = arith.constant 0 : index
    %c0_120 = arith.constant 0 : index
    %c4_121 = arith.constant 4 : index
    %96 = vector.load %arg6[%c0_119, %c0_120, %c4_121] : memref<3x16x20xf32, #tpu.memory_space<vmem>>, vector<3x16x16xf32>
    %97 = arith.addf %95, %96 : vector<3x16x16xf32>
    %cst_122 = arith.constant 0.120078385 : f32
    %98 = vector.broadcast %cst_122 : f32 to vector<3x16x16xf32>
    %99 = arith.mulf %98, %97 : vector<3x16x16xf32>
    %100 = arith.addf %94, %99 : vector<3x16x16xf32>
    %101 = arith.mulf %9, %9 : vector<3x16x16xf32>
    %c0_123 = arith.constant 0 : index
    %c2_124 = arith.constant 2 : index
    %c0_125 = arith.constant 0 : index
    %102 = vector.load %arg5[%c0_123, %c2_124, %c0_125] : memref<3x20x16xf32, #tpu.memory_space<vmem>>, vector<3x16x16xf32>
    tpu.vector_store %arg5[%c0_123, %c2_124, %c0_125], %101 {strides = array<i32>} : memref<3x20x16xf32, #tpu.memory_space<vmem>>, vector<3x16x16xf32>,
    %cst_126 = arith.constant 0.292081714 : f32
    %103 = vector.broadcast %cst_126 : f32 to vector<3x16x16xf32>
    %104 = arith.mulf %103, %101 : vector<3x16x16xf32>
    %c0_127 = arith.constant 0 : index
    %c1_128 = arith.constant 1 : index
    %c0_129 = arith.constant 0 : index
    %105 = vector.load %arg5[%c0_127, %c1_128, %c0_129] : memref<3x20x16xf32, #tpu.memory_space<vmem>>, vector<3x16x16xf32>
    %c0_130 = arith.constant 0 : index
    %c3_131 = arith.constant 3 : index
    %c0_132 = arith.constant 0 : index
    %106 = vector.load %arg5[%c0_130, %c3_131, %c0_132] : memref<3x20x16xf32, #tpu.memory_space<vmem>>, vector<3x16x16xf32>
    %107 = arith.addf %105, %106 : vector<3x16x16xf32>
    %cst_133 = arith.constant 0.233880758 : f32
    %108 = vector.broadcast %cst_133 : f32 to vector<3x16x16xf32>
    %109 = arith.mulf %108, %107 : vector<3x16x16xf32>
    %110 = arith.addf %104, %109 : vector<3x16x16xf32>
    %c0_134 = arith.constant 0 : index
    %c0_135 = arith.constant 0 : index
    %c0_136 = arith.constant 0 : index
    %111 = vector.load %arg5[%c0_134, %c0_135, %c0_136] : memref<3x20x16xf32, #tpu.memory_space<vmem>>, vector<3x16x16xf32>
    %c0_137 = arith.constant 0 : index
    %c4_138 = arith.constant 4 : index
    %c0_139 = arith.constant 0 : index
    %112 = vector.load %arg5[%c0_137, %c4_138, %c0_139] : memref<3x20x16xf32, #tpu.memory_space<vmem>>, vector<3x16x16xf32>
    %113 = arith.addf %111, %112 : vector<3x16x16xf32>
    %cst_140 = arith.constant 0.120078385 : f32
    %114 = vector.broadcast %cst_140 : f32 to vector<3x16x16xf32>
    %115 = arith.mulf %114, %113 : vector<3x16x16xf32>
    %116 = arith.addf %110, %115 : vector<3x16x16xf32>
    %c0_141 = arith.constant 0 : index
    %c0_142 = arith.constant 0 : index
    %c2_143 = arith.constant 2 : index
    %117 = vector.load %arg6[%c0_141, %c0_142, %c2_143] : memref<3x16x20xf32, #tpu.memory_space<vmem>>, vector<3x16x16xf32>
    tpu.vector_store %arg6[%c0_141, %c0_142, %c2_143], %116 {strides = array<i32>} : memref<3x16x20xf32, #tpu.memory_space<vmem>>, vector<3x16x16xf32>,
    %cst_144 = arith.constant 0.292081714 : f32
    %118 = vector.broadcast %cst_144 : f32 to vector<3x16x16xf32>
    %119 = arith.mulf %118, %116 : vector<3x16x16xf32>
    %c0_145 = arith.constant 0 : index
    %c0_146 = arith.constant 0 : index
    %c1_147 = arith.constant 1 : index
    %120 = vector.load %arg6[%c0_145, %c0_146, %c1_147] : memref<3x16x20xf32, #tpu.memory_space<vmem>>, vector<3x16x16xf32>
    %c0_148 = arith.constant 0 : index
    %c0_149 = arith.constant 0 : index
    %c3_150 = arith.constant 3 : index
    %121 = vector.load %arg6[%c0_148, %c0_149, %c3_150] : memref<3x16x20xf32, #tpu.memory_space<vmem>>, vector<3x16x16xf32>
    %122 = arith.addf %120, %121 : vector<3x16x16xf32>
    %cst_151 = arith.constant 0.233880758 : f32
    %123 = vector.broadcast %cst_151 : f32 to vector<3x16x16xf32>
    %124 = arith.mulf %123, %122 : vector<3x16x16xf32>
    %125 = arith.addf %119, %124 : vector<3x16x16xf32>
    %c0_152 = arith.constant 0 : index
    %c0_153 = arith.constant 0 : index
    %c0_154 = arith.constant 0 : index
    %126 = vector.load %arg6[%c0_152, %c0_153, %c0_154] : memref<3x16x20xf32, #tpu.memory_space<vmem>>, vector<3x16x16xf32>
    %c0_155 = arith.constant 0 : index
    %c0_156 = arith.constant 0 : index
    %c4_157 = arith.constant 4 : index
    %127 = vector.load %arg6[%c0_155, %c0_156, %c4_157] : memref<3x16x20xf32, #tpu.memory_space<vmem>>, vector<3x16x16xf32>
    %128 = arith.addf %126, %127 : vector<3x16x16xf32>
    %cst_158 = arith.constant 0.120078385 : f32
    %129 = vector.broadcast %cst_158 : f32 to vector<3x16x16xf32>
    %130 = arith.mulf %129, %128 : vector<3x16x16xf32>
    %131 = arith.addf %125, %130 : vector<3x16x16xf32>
    %132 = arith.mulf %7, %9 : vector<3x16x16xf32>
    %c0_159 = arith.constant 0 : index
    %c2_160 = arith.constant 2 : index
    %c0_161 = arith.constant 0 : index
    %133 = vector.load %arg5[%c0_159, %c2_160, %c0_161] : memref<3x20x16xf32, #tpu.memory_space<vmem>>, vector<3x16x16xf32>
    tpu.vector_store %arg5[%c0_159, %c2_160, %c0_161], %132 {strides = array<i32>} : memref<3x20x16xf32, #tpu.memory_space<vmem>>, vector<3x16x16xf32>,
    %cst_162 = arith.constant 0.292081714 : f32
    %134 = vector.broadcast %cst_162 : f32 to vector<3x16x16xf32>
    %135 = arith.mulf %134, %132 : vector<3x16x16xf32>
    %c0_163 = arith.constant 0 : index
    %c1_164 = arith.constant 1 : index
    %c0_165 = arith.constant 0 : index
    %136 = vector.load %arg5[%c0_163, %c1_164, %c0_165] : memref<3x20x16xf32, #tpu.memory_space<vmem>>, vector<3x16x16xf32>
    %c0_166 = arith.constant 0 : index
    %c3_167 = arith.constant 3 : index
    %c0_168 = arith.constant 0 : index
    %137 = vector.load %arg5[%c0_166, %c3_167, %c0_168] : memref<3x20x16xf32, #tpu.memory_space<vmem>>, vector<3x16x16xf32>
    %138 = arith.addf %136, %137 : vector<3x16x16xf32>
    %cst_169 = arith.constant 0.233880758 : f32
    %139 = vector.broadcast %cst_169 : f32 to vector<3x16x16xf32>
    %140 = arith.mulf %139, %138 : vector<3x16x16xf32>
    %141 = arith.addf %135, %140 : vector<3x16x16xf32>
    %c0_170 = arith.constant 0 : index
    %c0_171 = arith.constant 0 : index
    %c0_172 = arith.constant 0 : index
    %142 = vector.load %arg5[%c0_170, %c0_171, %c0_172] : memref<3x20x16xf32, #tpu.memory_space<vmem>>, vector<3x16x16xf32>
    %c0_173 = arith.constant 0 : index
    %c4_174 = arith.constant 4 : index
    %c0_175 = arith.constant 0 : index
    %143 = vector.load %arg5[%c0_173, %c4_174, %c0_175] : memref<3x20x16xf32, #tpu.memory_space<vmem>>, vector<3x16x16xf32>
    %144 = arith.addf %142, %143 : vector<3x16x16xf32>
    %cst_176 = arith.constant 0.120078385 : f32
    %145 = vector.broadcast %cst_176 : f32 to vector<3x16x16xf32>
    %146 = arith.mulf %145, %144 : vector<3x16x16xf32>
    %147 = arith.addf %141, %146 : vector<3x16x16xf32>
    %c0_177 = arith.constant 0 : index
    %c0_178 = arith.constant 0 : index
    %c2_179 = arith.constant 2 : index
    %148 = vector.load %arg6[%c0_177, %c0_178, %c2_179] : memref<3x16x20xf32, #tpu.memory_space<vmem>>, vector<3x16x16xf32>
    tpu.vector_store %arg6[%c0_177, %c0_178, %c2_179], %147 {strides = array<i32>} : memref<3x16x20xf32, #tpu.memory_space<vmem>>, vector<3x16x16xf32>,
    %cst_180 = arith.constant 0.292081714 : f32
    %149 = vector.broadcast %cst_180 : f32 to vector<3x16x16xf32>
    %150 = arith.mulf %149, %147 : vector<3x16x16xf32>
    %c0_181 = arith.constant 0 : index
    %c0_182 = arith.constant 0 : index
    %c1_183 = arith.constant 1 : index
    %151 = vector.load %arg6[%c0_181, %c0_182, %c1_183] : memref<3x16x20xf32, #tpu.memory_space<vmem>>, vector<3x16x16xf32>
    %c0_184 = arith.constant 0 : index
    %c0_185 = arith.constant 0 : index
    %c3_186 = arith.constant 3 : index
    %152 = vector.load %arg6[%c0_184, %c0_185, %c3_186] : memref<3x16x20xf32, #tpu.memory_space<vmem>>, vector<3x16x16xf32>
    %153 = arith.addf %151, %152 : vector<3x16x16xf32>
    %cst_187 = arith.constant 0.233880758 : f32
    %154 = vector.broadcast %cst_187 : f32 to vector<3x16x16xf32>
    %155 = arith.mulf %154, %153 : vector<3x16x16xf32>
    %156 = arith.addf %150, %155 : vector<3x16x16xf32>
    %c0_188 = arith.constant 0 : index
    %c0_189 = arith.constant 0 : index
    %c0_190 = arith.constant 0 : index
    %157 = vector.load %arg6[%c0_188, %c0_189, %c0_190] : memref<3x16x20xf32, #tpu.memory_space<vmem>>, vector<3x16x16xf32>
    %c0_191 = arith.constant 0 : index
    %c0_192 = arith.constant 0 : index
    %c4_193 = arith.constant 4 : index
    %158 = vector.load %arg6[%c0_191, %c0_192, %c4_193] : memref<3x16x20xf32, #tpu.memory_space<vmem>>, vector<3x16x16xf32>
    %159 = arith.addf %157, %158 : vector<3x16x16xf32>
    %cst_194 = arith.constant 0.120078385 : f32
    %160 = vector.broadcast %cst_194 : f32 to vector<3x16x16xf32>
    %161 = arith.mulf %160, %159 : vector<3x16x16xf32>
    %162 = arith.addf %156, %161 : vector<3x16x16xf32>
    %163 = arith.mulf %39, %39 : vector<3x16x16xf32>
    %164 = arith.subf %100, %163 : vector<3x16x16xf32>
    %165 = arith.mulf %69, %69 : vector<3x16x16xf32>
    %166 = arith.subf %131, %165 : vector<3x16x16xf32>
    %167 = arith.mulf %39, %69 : vector<3x16x16xf32>
    %168 = arith.subf %162, %167 : vector<3x16x16xf32>
    %cst_195 = arith.constant 2.000000e+00 : f32
    %169 = vector.broadcast %cst_195 : f32 to vector<3x16x16xf32>
    %170 = arith.mulf %169, %168 : vector<3x16x16xf32>
    %cst_196 = arith.constant 8.99999984E-4 : f32
    %171 = vector.broadcast %cst_196 : f32 to vector<3x16x16xf32>
    %172 = arith.addf %170, %171 : vector<3x16x16xf32>
    %173 = arith.addf %164, %166 : vector<3x16x16xf32>
    %cst_197 = arith.constant 8.99999984E-4 : f32
    %174 = vector.broadcast %cst_197 : f32 to vector<3x16x16xf32>
    %175 = arith.addf %173, %174 : vector<3x16x16xf32>
    %176 = tpu.reciprocal %175 {approx = true} : vector<3x16x16xf32> -> vector<3x16x16xf32>
    %177 = arith.mulf %172, %176 : vector<3x16x16xf32>
    %cst_198 = arith.constant dense<0.000000e+00> : vector<16x16xf32>
    %178 = vector.multi_reduction <add>, %177, %cst_198 [0] : vector<3x16x16xf32> to vector<16x16xf32>
    %cst_199 = arith.constant 0.333333343 : f32
    %179 = vector.broadcast %cst_199 : f32 to vector<16x16xf32>
    %180 = arith.mulf %178, %179 : vector<16x16xf32>
    %cst_200 = arith.constant 1.000000e+00 : f32
    %181 = vector.broadcast %cst_200 : f32 to vector<16x16xf32>
    %182 = arith.subf %181, %180 : vector<16x16xf32>
    %c0_201 = arith.constant 0 : index
    %c0_202 = arith.constant 0 : index
    %c0_203 = arith.constant 0 : index
    %c0_204 = arith.constant 0 : index
    %183 = vector.load %arg3[%c0_201, %c0_202, %c0_203, %c0_204] : memref<1x3x16x16xf32, #tpu.memory_space<vmem>>, vector<1x3x16x16xf32>
    %184 = vector.shape_cast %183 : vector<1x3x16x16xf32> to vector<3x16x16xf32>
    %c0_205 = arith.constant 0 : index
    %c2_206 = arith.constant 2 : index
    %c0_207 = arith.constant 0 : index
    %185 = vector.load %arg5[%c0_205, %c2_206, %c0_207] : memref<3x20x16xf32, #tpu.memory_space<vmem>>, vector<3x16x16xf32>
    tpu.vector_store %arg5[%c0_205, %c2_206, %c0_207], %184 {strides = array<i32>} : memref<3x20x16xf32, #tpu.memory_space<vmem>>, vector<3x16x16xf32>,
    %c0_208 = arith.constant 0 : index
    %c1_209 = arith.constant 1 : index
    %c0_210 = arith.constant 0 : index
    %186 = vector.load %arg5[%c0_208, %c1_209, %c0_210] : memref<3x20x16xf32, #tpu.memory_space<vmem>>, vector<3x16x16xf32>
    %187 = arith.addf %184, %186 : vector<3x16x16xf32>
    %c0_211 = arith.constant 0 : index
    %c3_212 = arith.constant 3 : index
    %c0_213 = arith.constant 0 : index
    %188 = vector.load %arg5[%c0_211, %c3_212, %c0_213] : memref<3x20x16xf32, #tpu.memory_space<vmem>>, vector<3x16x16xf32>
    %189 = arith.addf %187, %188 : vector<3x16x16xf32>
    %c0_214 = arith.constant 0 : index
    %c0_215 = arith.constant 0 : index
    %c2_216 = arith.constant 2 : index
    %190 = vector.load %arg6[%c0_214, %c0_215, %c2_216] : memref<3x16x20xf32, #tpu.memory_space<vmem>>, vector<3x16x16xf32>
    tpu.vector_store %arg6[%c0_214, %c0_215, %c2_216], %189 {strides = array<i32>} : memref<3x16x20xf32, #tpu.memory_space<vmem>>, vector<3x16x16xf32>,
    %c0_217 = arith.constant 0 : index
    %c0_218 = arith.constant 0 : index
    %c1_219 = arith.constant 1 : index
    %191 = vector.load %arg6[%c0_217, %c0_218, %c1_219] : memref<3x16x20xf32, #tpu.memory_space<vmem>>, vector<3x16x16xf32>
    %192 = arith.addf %189, %191 : vector<3x16x16xf32>
    %c0_220 = arith.constant 0 : index
    %c0_221 = arith.constant 0 : index
    %c3_222 = arith.constant 3 : index
    %193 = vector.load %arg6[%c0_220, %c0_221, %c3_222] : memref<3x16x20xf32, #tpu.memory_space<vmem>>, vector<3x16x16xf32>
    %194 = arith.addf %192, %193 : vector<3x16x16xf32>
    %cst_223 = arith.constant 0.111111112 : f32
    %195 = vector.broadcast %cst_223 : f32 to vector<3x16x16xf32>
    %196 = arith.mulf %194, %195 : vector<3x16x16xf32>
    %197 = arith.mulf %196, %196 : vector<3x16x16xf32>
    %cst_224 = arith.constant dense<0.000000e+00> : vector<16x16xf32>
    %198 = vector.multi_reduction <add>, %197, %cst_224 [0] : vector<3x16x16xf32> to vector<16x16xf32>
    %199 = math.sqrt %198 : vector<16x16xf32>
    %200 = vector.shape_cast %182 : vector<16x16xf32> to vector<1x16x16xf32>
    %cst_225 = arith.constant dense<0.000000e+00> : vector<1xf32>
    %201 = vector.multi_reduction <add>, %200, %cst_225 [1, 2] : vector<1x16x16xf32> to vector<1xf32>
    %202 = vector.shape_cast %201 : vector<1xf32> to vector<1x1x1xf32>
    %203 = vector.extract %202[0, 0, 0] : f32 from vector<1x1x1xf32>
    %204 = vector.broadcast %203 : f32 to vector<1x1xf32>
    %cst_226 = arith.constant 3.906250e-03 : f32
    %205 = vector.broadcast %cst_226 : f32 to vector<1x1xf32>
    %206 = arith.mulf %204, %205 : vector<1x1xf32>
    %207 = vector.broadcast %206 : vector<1x1xf32> to vector<16x16xf32>
    %208 = arith.subf %182, %207 : vector<16x16xf32>
    %209 = arith.mulf %208, %208 : vector<16x16xf32>
    %210 = vector.shape_cast %209 : vector<16x16xf32> to vector<1x16x16xf32>
    %cst_227 = arith.constant dense<0.000000e+00> : vector<1xf32>
    %211 = vector.multi_reduction <add>, %210, %cst_227 [1, 2] : vector<1x16x16xf32> to vector<1xf32>
    %212 = vector.shape_cast %211 : vector<1xf32> to vector<1x1x1xf32>
    %213 = vector.extract %212[0, 0, 0] : f32 from vector<1x1x1xf32>
    %214 = vector.broadcast %213 : f32 to vector<1x1xf32>
    %cst_228 = arith.constant 0.00392156886 : f32
    %215 = vector.broadcast %cst_228 : f32 to vector<1x1xf32>
    %216 = arith.mulf %214, %215 : vector<1x1xf32>
    %217 = math.rsqrt %216 : vector<1x1xf32>
    %218 = vector.broadcast %217 : vector<1x1xf32> to vector<16x16xf32>
    %219 = arith.mulf %208, %218 : vector<16x16xf32>
    %220 = vector.shape_cast %199 : vector<16x16xf32> to vector<1x16x16xf32>
    %cst_229 = arith.constant dense<0.000000e+00> : vector<1xf32>
    %221 = vector.multi_reduction <add>, %220, %cst_229 [1, 2] : vector<1x16x16xf32> to vector<1xf32>
    %222 = vector.shape_cast %221 : vector<1xf32> to vector<1x1x1xf32>
    %223 = vector.extract %222[0, 0, 0] : f32 from vector<1x1x1xf32>
    %224 = vector.broadcast %223 : f32 to vector<1x1xf32>
    %cst_230 = arith.constant 3.906250e-03 : f32
    %225 = vector.broadcast %cst_230 : f32 to vector<1x1xf32>
    %226 = arith.mulf %224, %225 : vector<1x1xf32>
    %227 = vector.broadcast %226 : vector<1x1xf32> to vector<16x16xf32>
    %228 = arith.subf %199, %227 : vector<16x16xf32>
    %229 = arith.mulf %228, %228 : vector<16x16xf32>
    %230 = vector.shape_cast %229 : vector<16x16xf32> to vector<1x16x16xf32>
    %cst_231 = arith.constant dense<0.000000e+00> : vector<1xf32>
    %231 = vector.multi_reduction <add>, %230, %cst_231 [1, 2] : vector<1x16x16xf32> to vector<1xf32>
    %232 = vector.shape_cast %231 : vector<1xf32> to vector<1x1x1xf32>
    %233 = vector.extract %232[0, 0, 0] : f32 from vector<1x1x1xf32>
    %234 = vector.broadcast %233 : f32 to vector<1x1xf32>
    %cst_232 = arith.constant 0.00392156886 : f32
    %235 = vector.broadcast %cst_232 : f32 to vector<1x1xf32>
    %236 = arith.mulf %234, %235 : vector<1x1xf32>
    %237 = math.rsqrt %236 : vector<1x1xf32>
    %238 = vector.broadcast %237 : vector<1x1xf32> to vector<16x16xf32>
    %239 = arith.mulf %228, %238 : vector<16x16xf32>
    %240 = arith.mulf %239, %219 : vector<16x16xf32>
    %241 = arith.addf %240, %239 : vector<16x16xf32>
    %cst_233 = arith.constant 3.300000e-01 : f32
    %242 = vector.broadcast %cst_233 : f32 to vector<16x16xf32>
    %243 = arith.mulf %219, %242 : vector<16x16xf32>
    %244 = arith.addf %241, %243 : vector<16x16xf32>
    %245 = vector.shape_cast %244 : vector<16x16xf32> to vector<1x16x16xf32>
    %cst_234 = arith.constant dense<0.000000e+00> : vector<1xf32>
    %246 = vector.multi_reduction <add>, %245, %cst_234 [1, 2] : vector<1x16x16xf32> to vector<1xf32>
    %247 = vector.shape_cast %246 : vector<1xf32> to vector<1x1x1xf32>
    %248 = vector.extract %247[0, 0, 0] : f32 from vector<1x1x1xf32>
    %249 = vector.broadcast %248 : f32 to vector<1x1xf32>
    %cst_235 = arith.constant 3.906250e-03 : f32
    %250 = vector.broadcast %cst_235 : f32 to vector<1x1xf32>
    %251 = arith.mulf %249, %250 : vector<1x1xf32>
    %252 = vector.broadcast %251 : vector<1x1xf32> to vector<16x16xf32>
    %253 = arith.subf %244, %252 : vector<16x16xf32>
    %254 = arith.mulf %253, %253 : vector<16x16xf32>
    %255 = vector.shape_cast %254 : vector<16x16xf32> to vector<1x16x16xf32>
    %cst_236 = arith.constant dense<0.000000e+00> : vector<1xf32>
    %256 = vector.multi_reduction <add>, %255, %cst_236 [1, 2] : vector<1x16x16xf32> to vector<1xf32>
    %257 = vector.shape_cast %256 : vector<1xf32> to vector<1x1x1xf32>
    %258 = vector.extract %257[0, 0, 0] : f32 from vector<1x1x1xf32>
    %259 = vector.broadcast %258 : f32 to vector<1x1xf32>
    %cst_237 = arith.constant 0.00392156886 : f32
    %260 = vector.broadcast %cst_237 : f32 to vector<1x1xf32>
    %261 = arith.mulf %259, %260 : vector<1x1xf32>
    %262 = math.rsqrt %261 : vector<1x1xf32>
    %263 = vector.broadcast %262 : vector<1x1xf32> to vector<16x16xf32>
    %264 = arith.mulf %253, %263 : vector<16x16xf32>
    %cst_238 = arith.constant 0.000000e+00 : f32
    %265 = vector.broadcast %cst_238 : f32 to vector<16x16xf32>
    %266 = arith.maximumf %264, %265 : vector<16x16xf32>
    %cst_239 = arith.constant 1.000000e+00 : f32
    %267 = vector.broadcast %cst_239 : f32 to vector<16x16xf32>
    %268 = arith.minimumf %266, %267 : vector<16x16xf32>
    %c2_240 = arith.constant 2 : index
    %c2_241 = arith.constant 2 : index
    %269 = vector.load %arg7[%c2_240, %c2_241] : memref<20x20xf32, #tpu.memory_space<vmem>>, vector<16x16xf32>
    tpu.vector_store %arg7[%c2_240, %c2_241], %268 {strides = array<i32>} : memref<20x20xf32, #tpu.memory_space<vmem>>, vector<16x16xf32>,
    %270 = vector.extract_strided_slice %268 {offsets = [2, 0], sizes = [1, 16], strides = [1, 1]} : vector<16x16xf32> to vector<1x16xf32>
    %c0_242 = arith.constant 0 : index
    %c2_243 = arith.constant 2 : index
    %271 = vector.load %arg7[%c0_242, %c2_243] : memref<20x20xf32, #tpu.memory_space<vmem>>, vector<1x16xf32>
    tpu.vector_store %arg7[%c0_242, %c2_243], %270 {strides = array<i32>} : memref<20x20xf32, #tpu.memory_space<vmem>>, vector<1x16xf32>,
    %272 = vector.extract_strided_slice %268 {offsets = [1, 0], sizes = [1, 16], strides = [1, 1]} : vector<16x16xf32> to vector<1x16xf32>
    %c1_244 = arith.constant 1 : index
    %c2_245 = arith.constant 2 : index
    %273 = vector.load %arg7[%c1_244, %c2_245] : memref<20x20xf32, #tpu.memory_space<vmem>>, vector<1x16xf32>
    tpu.vector_store %arg7[%c1_244, %c2_245], %272 {strides = array<i32>} : memref<20x20xf32, #tpu.memory_space<vmem>>, vector<1x16xf32>,
    %274 = vector.extract_strided_slice %268 {offsets = [14, 0], sizes = [1, 16], strides = [1, 1]} : vector<16x16xf32> to vector<1x16xf32>
    %c18_246 = arith.constant 18 : index
    %c2_247 = arith.constant 2 : index
    %275 = vector.load %arg7[%c18_246, %c2_247] : memref<20x20xf32, #tpu.memory_space<vmem>>, vector<1x16xf32>
    tpu.vector_store %arg7[%c18_246, %c2_247], %274 {strides = array<i32>} : memref<20x20xf32, #tpu.memory_space<vmem>>, vector<1x16xf32>,
    %276 = vector.extract_strided_slice %268 {offsets = [13, 0], sizes = [1, 16], strides = [1, 1]} : vector<16x16xf32> to vector<1x16xf32>
    %c19 = arith.constant 19 : index
    %c2_248 = arith.constant 2 : index
    %277 = vector.load %arg7[%c19, %c2_248] : memref<20x20xf32, #tpu.memory_space<vmem>>, vector<1x16xf32>
    tpu.vector_store %arg7[%c19, %c2_248], %276 {strides = array<i32>} : memref<20x20xf32, #tpu.memory_space<vmem>>, vector<1x16xf32>,
    %c0_249 = arith.constant 0 : index
    %c4_250 = arith.constant 4 : index
    %278 = vector.load %arg7[%c0_249, %c4_250] : memref<20x20xf32, #tpu.memory_space<vmem>>, vector<20x1xf32>
    %c0_251 = arith.constant 0 : index
    %c0_252 = arith.constant 0 : index
    %279 = vector.load %arg7[%c0_251, %c0_252] : memref<20x20xf32, #tpu.memory_space<vmem>>, vector<20x1xf32>
    tpu.vector_store %arg7[%c0_251, %c0_252], %278 {strides = array<i32>} : memref<20x20xf32, #tpu.memory_space<vmem>>, vector<20x1xf32>,
    %c0_253 = arith.constant 0 : index
    %c3_254 = arith.constant 3 : index
    %280 = vector.load %arg7[%c0_253, %c3_254] : memref<20x20xf32, #tpu.memory_space<vmem>>, vector<20x1xf32>
    %c0_255 = arith.constant 0 : index
    %c1_256 = arith.constant 1 : index
    %281 = vector.load %arg7[%c0_255, %c1_256] : memref<20x20xf32, #tpu.memory_space<vmem>>, vector<20x1xf32>
    tpu.vector_store %arg7[%c0_255, %c1_256], %280 {strides = array<i32>} : memref<20x20xf32, #tpu.memory_space<vmem>>, vector<20x1xf32>,
    %c0_257 = arith.constant 0 : index
    %c16 = arith.constant 16 : index
    %282 = vector.load %arg7[%c0_257, %c16] : memref<20x20xf32, #tpu.memory_space<vmem>>, vector<20x1xf32>
    %c0_258 = arith.constant 0 : index
    %c18_259 = arith.constant 18 : index
    %283 = vector.load %arg7[%c0_258, %c18_259] : memref<20x20xf32, #tpu.memory_space<vmem>>, vector<20x1xf32>
    tpu.vector_store %arg7[%c0_258, %c18_259], %282 {strides = array<i32>} : memref<20x20xf32, #tpu.memory_space<vmem>>, vector<20x1xf32>,
    %c0_260 = arith.constant 0 : index
    %c15 = arith.constant 15 : index
    %284 = vector.load %arg7[%c0_260, %c15] : memref<20x20xf32, #tpu.memory_space<vmem>>, vector<20x1xf32>
    %c0_261 = arith.constant 0 : index
    %c19_262 = arith.constant 19 : index
    %285 = vector.load %arg7[%c0_261, %c19_262] : memref<20x20xf32, #tpu.memory_space<vmem>>, vector<20x1xf32>
    tpu.vector_store %arg7[%c0_261, %c19_262], %284 {strides = array<i32>} : memref<20x20xf32, #tpu.memory_space<vmem>>, vector<20x1xf32>,
    %c0_263 = arith.constant 0 : index
    %c0_264 = arith.constant 0 : index
    %286 = vector.load %arg7[%c0_263, %c0_264] : memref<20x20xf32, #tpu.memory_space<vmem>>, vector<16x16xf32>
    %c0_265 = arith.constant 0 : index
    %c1_266 = arith.constant 1 : index
    %287 = vector.load %arg7[%c0_265, %c1_266] : memref<20x20xf32, #tpu.memory_space<vmem>>, vector<16x16xf32>
    %c0_267 = arith.constant 0 : index
    %c2_268 = arith.constant 2 : index
    %288 = vector.load %arg7[%c0_267, %c2_268] : memref<20x20xf32, #tpu.memory_space<vmem>>, vector<16x16xf32>
    %c0_269 = arith.constant 0 : index
    %c3_270 = arith.constant 3 : index
    %289 = vector.load %arg7[%c0_269, %c3_270] : memref<20x20xf32, #tpu.memory_space<vmem>>, vector<16x16xf32>
    %c0_271 = arith.constant 0 : index
    %c4_272 = arith.constant 4 : index
    %290 = vector.load %arg7[%c0_271, %c4_272] : memref<20x20xf32, #tpu.memory_space<vmem>>, vector<16x16xf32>
    %c1_273 = arith.constant 1 : index
    %c0_274 = arith.constant 0 : index
    %291 = vector.load %arg7[%c1_273, %c0_274] : memref<20x20xf32, #tpu.memory_space<vmem>>, vector<16x16xf32>
    %c1_275 = arith.constant 1 : index
    %c1_276 = arith.constant 1 : index
    %292 = vector.load %arg7[%c1_275, %c1_276] : memref<20x20xf32, #tpu.memory_space<vmem>>, vector<16x16xf32>
    %c1_277 = arith.constant 1 : index
    %c2_278 = arith.constant 2 : index
    %293 = vector.load %arg7[%c1_277, %c2_278] : memref<20x20xf32, #tpu.memory_space<vmem>>, vector<16x16xf32>
    %c1_279 = arith.constant 1 : index
    %c3_280 = arith.constant 3 : index
    %294 = vector.load %arg7[%c1_279, %c3_280] : memref<20x20xf32, #tpu.memory_space<vmem>>, vector<16x16xf32>
    %c1_281 = arith.constant 1 : index
    %c4_282 = arith.constant 4 : index
    %295 = vector.load %arg7[%c1_281, %c4_282] : memref<20x20xf32, #tpu.memory_space<vmem>>, vector<16x16xf32>
    %c2_283 = arith.constant 2 : index
    %c0_284 = arith.constant 0 : index
    %296 = vector.load %arg7[%c2_283, %c0_284] : memref<20x20xf32, #tpu.memory_space<vmem>>, vector<16x16xf32>
    %c2_285 = arith.constant 2 : index
    %c1_286 = arith.constant 1 : index
    %297 = vector.load %arg7[%c2_285, %c1_286] : memref<20x20xf32, #tpu.memory_space<vmem>>, vector<16x16xf32>
    %c2_287 = arith.constant 2 : index
    %c2_288 = arith.constant 2 : index
    %298 = vector.load %arg7[%c2_287, %c2_288] : memref<20x20xf32, #tpu.memory_space<vmem>>, vector<16x16xf32>
    %c2_289 = arith.constant 2 : index
    %c3_290 = arith.constant 3 : index
    %299 = vector.load %arg7[%c2_289, %c3_290] : memref<20x20xf32, #tpu.memory_space<vmem>>, vector<16x16xf32>
    %300 = arith.maximumf %286, %287 : vector<16x16xf32>
    %301 = arith.minimumf %286, %287 : vector<16x16xf32>
    %302 = arith.maximumf %301, %288 : vector<16x16xf32>
    %303 = arith.minimumf %301, %288 : vector<16x16xf32>
    %304 = arith.maximumf %303, %289 : vector<16x16xf32>
    %305 = arith.minimumf %303, %289 : vector<16x16xf32>
    %306 = arith.maximumf %305, %290 : vector<16x16xf32>
    %307 = arith.minimumf %305, %290 : vector<16x16xf32>
    %308 = arith.maximumf %307, %291 : vector<16x16xf32>
    %309 = arith.minimumf %307, %291 : vector<16x16xf32>
    %310 = arith.maximumf %309, %292 : vector<16x16xf32>
    %311 = arith.minimumf %309, %292 : vector<16x16xf32>
    %312 = arith.maximumf %311, %293 : vector<16x16xf32>
    %313 = arith.minimumf %311, %293 : vector<16x16xf32>
    %314 = arith.maximumf %313, %294 : vector<16x16xf32>
    %315 = arith.minimumf %313, %294 : vector<16x16xf32>
    %316 = arith.maximumf %315, %295 : vector<16x16xf32>
    %317 = arith.minimumf %315, %295 : vector<16x16xf32>
    %318 = arith.maximumf %317, %296 : vector<16x16xf32>
    %319 = arith.minimumf %317, %296 : vector<16x16xf32>
    %320 = arith.maximumf %319, %297 : vector<16x16xf32>
    %321 = arith.minimumf %319, %297 : vector<16x16xf32>
    %322 = arith.maximumf %321, %298 : vector<16x16xf32>
    %323 = arith.minimumf %321, %298 : vector<16x16xf32>
    %324 = arith.maximumf %323, %299 : vector<16x16xf32>
    %325 = arith.minimumf %300, %302 : vector<16x16xf32>
    %326 = arith.maximumf %300, %302 : vector<16x16xf32>
    %327 = arith.minimumf %326, %304 : vector<16x16xf32>
    %328 = arith.maximumf %326, %304 : vector<16x16xf32>
    %329 = arith.minimumf %328, %306 : vector<16x16xf32>
    %330 = arith.maximumf %328, %306 : vector<16x16xf32>
    %331 = arith.minimumf %330, %308 : vector<16x16xf32>
    %332 = arith.maximumf %330, %308 : vector<16x16xf32>
    %333 = arith.minimumf %332, %310 : vector<16x16xf32>
    %334 = arith.maximumf %332, %310 : vector<16x16xf32>
    %335 = arith.minimumf %334, %312 : vector<16x16xf32>
    %336 = arith.maximumf %334, %312 : vector<16x16xf32>
    %337 = arith.minimumf %336, %314 : vector<16x16xf32>
    %338 = arith.maximumf %336, %314 : vector<16x16xf32>
    %339 = arith.minimumf %338, %316 : vector<16x16xf32>
    %340 = arith.maximumf %338, %316 : vector<16x16xf32>
    %341 = arith.minimumf %340, %318 : vector<16x16xf32>
    %342 = arith.maximumf %340, %318 : vector<16x16xf32>
    %343 = arith.minimumf %342, %320 : vector<16x16xf32>
    %344 = arith.maximumf %342, %320 : vector<16x16xf32>
    %345 = arith.minimumf %344, %322 : vector<16x16xf32>
    %346 = arith.maximumf %344, %322 : vector<16x16xf32>
    %347 = arith.minimumf %346, %324 : vector<16x16xf32>
    %c2_291 = arith.constant 2 : index
    %c4_292 = arith.constant 4 : index
    %348 = vector.load %arg7[%c2_291, %c4_292] : memref<20x20xf32, #tpu.memory_space<vmem>>, vector<16x16xf32>
    %349 = arith.maximumf %325, %327 : vector<16x16xf32>
    %350 = arith.minimumf %325, %327 : vector<16x16xf32>
    %351 = arith.maximumf %350, %329 : vector<16x16xf32>
    %352 = arith.minimumf %350, %329 : vector<16x16xf32>
    %353 = arith.maximumf %352, %331 : vector<16x16xf32>
    %354 = arith.minimumf %352, %331 : vector<16x16xf32>
    %355 = arith.maximumf %354, %333 : vector<16x16xf32>
    %356 = arith.minimumf %354, %333 : vector<16x16xf32>
    %357 = arith.maximumf %356, %335 : vector<16x16xf32>
    %358 = arith.minimumf %356, %335 : vector<16x16xf32>
    %359 = arith.maximumf %358, %337 : vector<16x16xf32>
    %360 = arith.minimumf %358, %337 : vector<16x16xf32>
    %361 = arith.maximumf %360, %339 : vector<16x16xf32>
    %362 = arith.minimumf %360, %339 : vector<16x16xf32>
    %363 = arith.maximumf %362, %341 : vector<16x16xf32>
    %364 = arith.minimumf %362, %341 : vector<16x16xf32>
    %365 = arith.maximumf %364, %343 : vector<16x16xf32>
    %366 = arith.minimumf %364, %343 : vector<16x16xf32>
    %367 = arith.maximumf %366, %345 : vector<16x16xf32>
    %368 = arith.minimumf %366, %345 : vector<16x16xf32>
    %369 = arith.maximumf %368, %347 : vector<16x16xf32>
    %370 = arith.minimumf %368, %347 : vector<16x16xf32>
    %371 = arith.maximumf %370, %348 : vector<16x16xf32>
    %372 = arith.minimumf %349, %351 : vector<16x16xf32>
    %373 = arith.maximumf %349, %351 : vector<16x16xf32>
    %374 = arith.minimumf %373, %353 : vector<16x16xf32>
    %375 = arith.maximumf %373, %353 : vector<16x16xf32>
    %376 = arith.minimumf %375, %355 : vector<16x16xf32>
    %377 = arith.maximumf %375, %355 : vector<16x16xf32>
    %378 = arith.minimumf %377, %357 : vector<16x16xf32>
    %379 = arith.maximumf %377, %357 : vector<16x16xf32>
    %380 = arith.minimumf %379, %359 : vector<16x16xf32>
    %381 = arith.maximumf %379, %359 : vector<16x16xf32>
    %382 = arith.minimumf %381, %361 : vector<16x16xf32>
    %383 = arith.maximumf %381, %361 : vector<16x16xf32>
    %384 = arith.minimumf %383, %363 : vector<16x16xf32>
    %385 = arith.maximumf %383, %363 : vector<16x16xf32>
    %386 = arith.minimumf %385, %365 : vector<16x16xf32>
    %387 = arith.maximumf %385, %365 : vector<16x16xf32>
    %388 = arith.minimumf %387, %367 : vector<16x16xf32>
    %389 = arith.maximumf %387, %367 : vector<16x16xf32>
    %390 = arith.minimumf %389, %369 : vector<16x16xf32>
    %391 = arith.maximumf %389, %369 : vector<16x16xf32>
    %392 = arith.minimumf %391, %371 : vector<16x16xf32>
    %c3_293 = arith.constant 3 : index
    %c0_294 = arith.constant 0 : index
    %393 = vector.load %arg7[%c3_293, %c0_294] : memref<20x20xf32, #tpu.memory_space<vmem>>, vector<16x16xf32>
    %394 = arith.maximumf %372, %374 : vector<16x16xf32>
    %395 = arith.minimumf %372, %374 : vector<16x16xf32>
    %396 = arith.maximumf %395, %376 : vector<16x16xf32>
    %397 = arith.minimumf %395, %376 : vector<16x16xf32>
    %398 = arith.maximumf %397, %378 : vector<16x16xf32>
    %399 = arith.minimumf %397, %378 : vector<16x16xf32>
    %400 = arith.maximumf %399, %380 : vector<16x16xf32>
    %401 = arith.minimumf %399, %380 : vector<16x16xf32>
    %402 = arith.maximumf %401, %382 : vector<16x16xf32>
    %403 = arith.minimumf %401, %382 : vector<16x16xf32>
    %404 = arith.maximumf %403, %384 : vector<16x16xf32>
    %405 = arith.minimumf %403, %384 : vector<16x16xf32>
    %406 = arith.maximumf %405, %386 : vector<16x16xf32>
    %407 = arith.minimumf %405, %386 : vector<16x16xf32>
    %408 = arith.maximumf %407, %388 : vector<16x16xf32>
    %409 = arith.minimumf %407, %388 : vector<16x16xf32>
    %410 = arith.maximumf %409, %390 : vector<16x16xf32>
    %411 = arith.minimumf %409, %390 : vector<16x16xf32>
    %412 = arith.maximumf %411, %392 : vector<16x16xf32>
    %413 = arith.minimumf %411, %392 : vector<16x16xf32>
    %414 = arith.maximumf %413, %393 : vector<16x16xf32>
    %415 = arith.minimumf %394, %396 : vector<16x16xf32>
    %416 = arith.maximumf %394, %396 : vector<16x16xf32>
    %417 = arith.minimumf %416, %398 : vector<16x16xf32>
    %418 = arith.maximumf %416, %398 : vector<16x16xf32>
    %419 = arith.minimumf %418, %400 : vector<16x16xf32>
    %420 = arith.maximumf %418, %400 : vector<16x16xf32>
    %421 = arith.minimumf %420, %402 : vector<16x16xf32>
    %422 = arith.maximumf %420, %402 : vector<16x16xf32>
    %423 = arith.minimumf %422, %404 : vector<16x16xf32>
    %424 = arith.maximumf %422, %404 : vector<16x16xf32>
    %425 = arith.minimumf %424, %406 : vector<16x16xf32>
    %426 = arith.maximumf %424, %406 : vector<16x16xf32>
    %427 = arith.minimumf %426, %408 : vector<16x16xf32>
    %428 = arith.maximumf %426, %408 : vector<16x16xf32>
    %429 = arith.minimumf %428, %410 : vector<16x16xf32>
    %430 = arith.maximumf %428, %410 : vector<16x16xf32>
    %431 = arith.minimumf %430, %412 : vector<16x16xf32>
    %432 = arith.maximumf %430, %412 : vector<16x16xf32>
    %433 = arith.minimumf %432, %414 : vector<16x16xf32>
    %c3_295 = arith.constant 3 : index
    %c1_296 = arith.constant 1 : index
    %434 = vector.load %arg7[%c3_295, %c1_296] : memref<20x20xf32, #tpu.memory_space<vmem>>, vector<16x16xf32>
    %435 = arith.maximumf %415, %417 : vector<16x16xf32>
    %436 = arith.minimumf %415, %417 : vector<16x16xf32>
    %437 = arith.maximumf %436, %419 : vector<16x16xf32>
    %438 = arith.minimumf %436, %419 : vector<16x16xf32>
    %439 = arith.maximumf %438, %421 : vector<16x16xf32>
    %440 = arith.minimumf %438, %421 : vector<16x16xf32>
    %441 = arith.maximumf %440, %423 : vector<16x16xf32>
    %442 = arith.minimumf %440, %423 : vector<16x16xf32>
    %443 = arith.maximumf %442, %425 : vector<16x16xf32>
    %444 = arith.minimumf %442, %425 : vector<16x16xf32>
    %445 = arith.maximumf %444, %427 : vector<16x16xf32>
    %446 = arith.minimumf %444, %427 : vector<16x16xf32>
    %447 = arith.maximumf %446, %429 : vector<16x16xf32>
    %448 = arith.minimumf %446, %429 : vector<16x16xf32>
    %449 = arith.maximumf %448, %431 : vector<16x16xf32>
    %450 = arith.minimumf %448, %431 : vector<16x16xf32>
    %451 = arith.maximumf %450, %433 : vector<16x16xf32>
    %452 = arith.minimumf %450, %433 : vector<16x16xf32>
    %453 = arith.maximumf %452, %434 : vector<16x16xf32>
    %454 = arith.minimumf %435, %437 : vector<16x16xf32>
    %455 = arith.maximumf %435, %437 : vector<16x16xf32>
    %456 = arith.minimumf %455, %439 : vector<16x16xf32>
    %457 = arith.maximumf %455, %439 : vector<16x16xf32>
    %458 = arith.minimumf %457, %441 : vector<16x16xf32>
    %459 = arith.maximumf %457, %441 : vector<16x16xf32>
    %460 = arith.minimumf %459, %443 : vector<16x16xf32>
    %461 = arith.maximumf %459, %443 : vector<16x16xf32>
    %462 = arith.minimumf %461, %445 : vector<16x16xf32>
    %463 = arith.maximumf %461, %445 : vector<16x16xf32>
    %464 = arith.minimumf %463, %447 : vector<16x16xf32>
    %465 = arith.maximumf %463, %447 : vector<16x16xf32>
    %466 = arith.minimumf %465, %449 : vector<16x16xf32>
    %467 = arith.maximumf %465, %449 : vector<16x16xf32>
    %468 = arith.minimumf %467, %451 : vector<16x16xf32>
    %469 = arith.maximumf %467, %451 : vector<16x16xf32>
    %470 = arith.minimumf %469, %453 : vector<16x16xf32>
    %c3_297 = arith.constant 3 : index
    %c2_298 = arith.constant 2 : index
    %471 = vector.load %arg7[%c3_297, %c2_298] : memref<20x20xf32, #tpu.memory_space<vmem>>, vector<16x16xf32>
    %472 = arith.maximumf %454, %456 : vector<16x16xf32>
    %473 = arith.minimumf %454, %456 : vector<16x16xf32>
    %474 = arith.maximumf %473, %458 : vector<16x16xf32>
    %475 = arith.minimumf %473, %458 : vector<16x16xf32>
    %476 = arith.maximumf %475, %460 : vector<16x16xf32>
    %477 = arith.minimumf %475, %460 : vector<16x16xf32>
    %478 = arith.maximumf %477, %462 : vector<16x16xf32>
    %479 = arith.minimumf %477, %462 : vector<16x16xf32>
    %480 = arith.maximumf %479, %464 : vector<16x16xf32>
    %481 = arith.minimumf %479, %464 : vector<16x16xf32>
    %482 = arith.maximumf %481, %466 : vector<16x16xf32>
    %483 = arith.minimumf %481, %466 : vector<16x16xf32>
    %484 = arith.maximumf %483, %468 : vector<16x16xf32>
    %485 = arith.minimumf %483, %468 : vector<16x16xf32>
    %486 = arith.maximumf %485, %470 : vector<16x16xf32>
    %487 = arith.minimumf %485, %470 : vector<16x16xf32>
    %488 = arith.maximumf %487, %471 : vector<16x16xf32>
    %489 = arith.minimumf %472, %474 : vector<16x16xf32>
    %490 = arith.maximumf %472, %474 : vector<16x16xf32>
    %491 = arith.minimumf %490, %476 : vector<16x16xf32>
    %492 = arith.maximumf %490, %476 : vector<16x16xf32>
    %493 = arith.minimumf %492, %478 : vector<16x16xf32>
    %494 = arith.maximumf %492, %478 : vector<16x16xf32>
    %495 = arith.minimumf %494, %480 : vector<16x16xf32>
    %496 = arith.maximumf %494, %480 : vector<16x16xf32>
    %497 = arith.minimumf %496, %482 : vector<16x16xf32>
    %498 = arith.maximumf %496, %482 : vector<16x16xf32>
    %499 = arith.minimumf %498, %484 : vector<16x16xf32>
    %500 = arith.maximumf %498, %484 : vector<16x16xf32>
    %501 = arith.minimumf %500, %486 : vector<16x16xf32>
    %502 = arith.maximumf %500, %486 : vector<16x16xf32>
    %503 = arith.minimumf %502, %488 : vector<16x16xf32>
    %c3_299 = arith.constant 3 : index
    %c3_300 = arith.constant 3 : index
    %504 = vector.load %arg7[%c3_299, %c3_300] : memref<20x20xf32, #tpu.memory_space<vmem>>, vector<16x16xf32>
    %505 = arith.maximumf %489, %491 : vector<16x16xf32>
    %506 = arith.minimumf %489, %491 : vector<16x16xf32>
    %507 = arith.maximumf %506, %493 : vector<16x16xf32>
    %508 = arith.minimumf %506, %493 : vector<16x16xf32>
    %509 = arith.maximumf %508, %495 : vector<16x16xf32>
    %510 = arith.minimumf %508, %495 : vector<16x16xf32>
    %511 = arith.maximumf %510, %497 : vector<16x16xf32>
    %512 = arith.minimumf %510, %497 : vector<16x16xf32>
    %513 = arith.maximumf %512, %499 : vector<16x16xf32>
    %514 = arith.minimumf %512, %499 : vector<16x16xf32>
    %515 = arith.maximumf %514, %501 : vector<16x16xf32>
    %516 = arith.minimumf %514, %501 : vector<16x16xf32>
    %517 = arith.maximumf %516, %503 : vector<16x16xf32>
    %518 = arith.minimumf %516, %503 : vector<16x16xf32>
    %519 = arith.maximumf %518, %504 : vector<16x16xf32>
    %520 = arith.minimumf %505, %507 : vector<16x16xf32>
    %521 = arith.maximumf %505, %507 : vector<16x16xf32>
    %522 = arith.minimumf %521, %509 : vector<16x16xf32>
    %523 = arith.maximumf %521, %509 : vector<16x16xf32>
    %524 = arith.minimumf %523, %511 : vector<16x16xf32>
    %525 = arith.maximumf %523, %511 : vector<16x16xf32>
    %526 = arith.minimumf %525, %513 : vector<16x16xf32>
    %527 = arith.maximumf %525, %513 : vector<16x16xf32>
    %528 = arith.minimumf %527, %515 : vector<16x16xf32>
    %529 = arith.maximumf %527, %515 : vector<16x16xf32>
    %530 = arith.minimumf %529, %517 : vector<16x16xf32>
    %531 = arith.maximumf %529, %517 : vector<16x16xf32>
    %532 = arith.minimumf %531, %519 : vector<16x16xf32>
    %c3_301 = arith.constant 3 : index
    %c4_302 = arith.constant 4 : index
    %533 = vector.load %arg7[%c3_301, %c4_302] : memref<20x20xf32, #tpu.memory_space<vmem>>, vector<16x16xf32>
    %534 = arith.maximumf %520, %522 : vector<16x16xf32>
    %535 = arith.minimumf %520, %522 : vector<16x16xf32>
    %536 = arith.maximumf %535, %524 : vector<16x16xf32>
    %537 = arith.minimumf %535, %524 : vector<16x16xf32>
    %538 = arith.maximumf %537, %526 : vector<16x16xf32>
    %539 = arith.minimumf %537, %526 : vector<16x16xf32>
    %540 = arith.maximumf %539, %528 : vector<16x16xf32>
    %541 = arith.minimumf %539, %528 : vector<16x16xf32>
    %542 = arith.maximumf %541, %530 : vector<16x16xf32>
    %543 = arith.minimumf %541, %530 : vector<16x16xf32>
    %544 = arith.maximumf %543, %532 : vector<16x16xf32>
    %545 = arith.minimumf %543, %532 : vector<16x16xf32>
    %546 = arith.maximumf %545, %533 : vector<16x16xf32>
    %547 = arith.minimumf %534, %536 : vector<16x16xf32>
    %548 = arith.maximumf %534, %536 : vector<16x16xf32>
    %549 = arith.minimumf %548, %538 : vector<16x16xf32>
    %550 = arith.maximumf %548, %538 : vector<16x16xf32>
    %551 = arith.minimumf %550, %540 : vector<16x16xf32>
    %552 = arith.maximumf %550, %540 : vector<16x16xf32>
    %553 = arith.minimumf %552, %542 : vector<16x16xf32>
    %554 = arith.maximumf %552, %542 : vector<16x16xf32>
    %555 = arith.minimumf %554, %544 : vector<16x16xf32>
    %556 = arith.maximumf %554, %544 : vector<16x16xf32>
    %557 = arith.minimumf %556, %546 : vector<16x16xf32>
    %c4_303 = arith.constant 4 : index
    %c0_304 = arith.constant 0 : index
    %558 = vector.load %arg7[%c4_303, %c0_304] : memref<20x20xf32, #tpu.memory_space<vmem>>, vector<16x16xf32>
    %559 = arith.maximumf %547, %549 : vector<16x16xf32>
    %560 = arith.minimumf %547, %549 : vector<16x16xf32>
    %561 = arith.maximumf %560, %551 : vector<16x16xf32>
    %562 = arith.minimumf %560, %551 : vector<16x16xf32>
    %563 = arith.maximumf %562, %553 : vector<16x16xf32>
    %564 = arith.minimumf %562, %553 : vector<16x16xf32>
    %565 = arith.maximumf %564, %555 : vector<16x16xf32>
    %566 = arith.minimumf %564, %555 : vector<16x16xf32>
    %567 = arith.maximumf %566, %557 : vector<16x16xf32>
    %568 = arith.minimumf %566, %557 : vector<16x16xf32>
    %569 = arith.maximumf %568, %558 : vector<16x16xf32>
    %570 = arith.minimumf %559, %561 : vector<16x16xf32>
    %571 = arith.maximumf %559, %561 : vector<16x16xf32>
    %572 = arith.minimumf %571, %563 : vector<16x16xf32>
    %573 = arith.maximumf %571, %563 : vector<16x16xf32>
    %574 = arith.minimumf %573, %565 : vector<16x16xf32>
    %575 = arith.maximumf %573, %565 : vector<16x16xf32>
    %576 = arith.minimumf %575, %567 : vector<16x16xf32>
    %577 = arith.maximumf %575, %567 : vector<16x16xf32>
    %578 = arith.minimumf %577, %569 : vector<16x16xf32>
    %c4_305 = arith.constant 4 : index
    %c1_306 = arith.constant 1 : index
    %579 = vector.load %arg7[%c4_305, %c1_306] : memref<20x20xf32, #tpu.memory_space<vmem>>, vector<16x16xf32>
    %580 = arith.maximumf %570, %572 : vector<16x16xf32>
    %581 = arith.minimumf %570, %572 : vector<16x16xf32>
    %582 = arith.maximumf %581, %574 : vector<16x16xf32>
    %583 = arith.minimumf %581, %574 : vector<16x16xf32>
    %584 = arith.maximumf %583, %576 : vector<16x16xf32>
    %585 = arith.minimumf %583, %576 : vector<16x16xf32>
    %586 = arith.maximumf %585, %578 : vector<16x16xf32>
    %587 = arith.minimumf %585, %578 : vector<16x16xf32>
    %588 = arith.maximumf %587, %579 : vector<16x16xf32>
    %589 = arith.minimumf %580, %582 : vector<16x16xf32>
    %590 = arith.maximumf %580, %582 : vector<16x16xf32>
    %591 = arith.minimumf %590, %584 : vector<16x16xf32>
    %592 = arith.maximumf %590, %584 : vector<16x16xf32>
    %593 = arith.minimumf %592, %586 : vector<16x16xf32>
    %594 = arith.maximumf %592, %586 : vector<16x16xf32>
    %595 = arith.minimumf %594, %588 : vector<16x16xf32>
    %c4_307 = arith.constant 4 : index
    %c2_308 = arith.constant 2 : index
    %596 = vector.load %arg7[%c4_307, %c2_308] : memref<20x20xf32, #tpu.memory_space<vmem>>, vector<16x16xf32>
    %597 = arith.maximumf %589, %591 : vector<16x16xf32>
    %598 = arith.minimumf %589, %591 : vector<16x16xf32>
    %599 = arith.maximumf %598, %593 : vector<16x16xf32>
    %600 = arith.minimumf %598, %593 : vector<16x16xf32>
    %601 = arith.maximumf %600, %595 : vector<16x16xf32>
    %602 = arith.minimumf %600, %595 : vector<16x16xf32>
    %603 = arith.maximumf %602, %596 : vector<16x16xf32>
    %604 = arith.minimumf %597, %599 : vector<16x16xf32>
    %605 = arith.maximumf %597, %599 : vector<16x16xf32>
    %606 = arith.minimumf %605, %601 : vector<16x16xf32>
    %607 = arith.maximumf %605, %601 : vector<16x16xf32>
    %608 = arith.minimumf %607, %603 : vector<16x16xf32>
    %c4_309 = arith.constant 4 : index
    %c3_310 = arith.constant 3 : index
    %609 = vector.load %arg7[%c4_309, %c3_310] : memref<20x20xf32, #tpu.memory_space<vmem>>, vector<16x16xf32>
    %610 = arith.maximumf %604, %606 : vector<16x16xf32>
    %611 = arith.minimumf %604, %606 : vector<16x16xf32>
    %612 = arith.maximumf %611, %608 : vector<16x16xf32>
    %613 = arith.minimumf %611, %608 : vector<16x16xf32>
    %614 = arith.maximumf %613, %609 : vector<16x16xf32>
    %615 = arith.minimumf %610, %612 : vector<16x16xf32>
    %616 = arith.maximumf %610, %612 : vector<16x16xf32>
    %617 = arith.minimumf %616, %614 : vector<16x16xf32>
    %c4_311 = arith.constant 4 : index
    %c4_312 = arith.constant 4 : index
    %618 = vector.load %arg7[%c4_311, %c4_312] : memref<20x20xf32, #tpu.memory_space<vmem>>, vector<16x16xf32>
    %619 = arith.minimumf %615, %617 : vector<16x16xf32>
    %620 = arith.maximumf %615, %617 : vector<16x16xf32>
    %621 = arith.minimumf %620, %618 : vector<16x16xf32>
    %622 = arith.maximumf %619, %621 : vector<16x16xf32>
    %c0_313 = arith.constant 0 : index
    %c0_314 = arith.constant 0 : index
    %c0_315 = arith.constant 0 : index
    %c0_316 = arith.constant 0 : index
    %623 = vector.load %arg4[%c0_313, %c0_314, %c0_315, %c0_316] : memref<1x1x16x16xf32, #tpu.memory_space<vmem>>, vector<1x1x16x16xf32>
    %624 = vector.shape_cast %623 : vector<1x1x16x16xf32> to vector<16x16xf32>
    %625 = vector.shape_cast %622 : vector<16x16xf32> to vector<1x1x16x16xf32>
    tpu.vector_store %arg4[%c0_313, %c0_314, %c0_315, %c0_316], %625 {strides = array<i32>} : memref<1x1x16x16xf32, #tpu.memory_space<vmem>>, vector<1x1x16x16xf32>,
    return
  }
  func.func @transform_0(%arg0: i32) -> (i32, i32, i32, i32) {
    %c0_i32 = arith.constant 0 : i32
    %c0_i32_0 = arith.constant 0 : i32
    %c0_i32_1 = arith.constant 0 : i32
    %c0_i32_2 = arith.constant 0 : i32
    return %arg0, %c0_i32, %c0_i32_0, %c0_i32_1 : i32, i32, i32, i32
  }
  func.func @transform_1(%arg0: i32) -> (i32, i32, i32, i32) {
    %c0_i32 = arith.constant 0 : i32
    %c0_i32_0 = arith.constant 0 : i32
    %c0_i32_1 = arith.constant 0 : i32
    %c0_i32_2 = arith.constant 0 : i32
    return %arg0, %c0_i32, %c0_i32_0, %c0_i32_1 : i32, i32, i32, i32
  }
  func.func @transform_2(%arg0: i32) -> (i32, i32, i32, i32) {
    %c0_i32 = arith.constant 0 : i32
    %c0_i32_0 = arith.constant 0 : i32
    %c0_i32_1 = arith.constant 0 : i32
    %c0_i32_2 = arith.constant 0 : i32
    return %arg0, %c0_i32, %c0_i32_0, %c0_i32_1 : i32, i32, i32, i32
  }
  func.func @transform_3(%arg0: i32) -> (i32, i32, i32, i32) {
    %c0_i32 = arith.constant 0 : i32
    %c0_i32_0 = arith.constant 0 : i32
    %c0_i32_1 = arith.constant 0 : i32
    %c0_i32_2 = arith.constant 0 : i32
    return %arg0, %c0_i32, %c0_i32_0, %c0_i32_1 : i32, i32, i32, i32
  }
}

</mosaic_0001>

<bundles_post_ra>
// kernel: tpu_custom_call.1
= control target key start
LH: loop header
LB: loop body
LE: loop exit
PB: predicated region body
PF: predicated region fallthrough
CT: control target
= control target key end

     0   :  { %s4599_s0 = inlined_call_operand.hbm [shape: f32[2,3,16,16], index: 0, kind: input, shape index: {}]   ;;  %s4600_s1 = inlined_call_operand.hbm [shape: f32[2,3,16,16], index: 1, kind: input, shape index: {}]   ;;  %s4601_s2 = inlined_call_operand.hbm [shape: f32[2,3,16,16], index: 2, kind: input, shape index: {}]   ;;  %s4602_s3 = inlined_call_operand.hbm [shape: f32[2,1,16,16], index: 3, kind: output, shape index: {}]  }
   0x1   :  { %4652 = sst [smem:[#allocation72_spill]] %s4599_s0 }
   0x2   :  { %4653 = sst [smem:[#allocation73_spill]] %s4600_s1 }
   0x3   :  { %8 = vsyncpa [#allocation6], 0 }
   0x4   :  { %10 = vsyncpa [#allocation6 + $0x1], 0 }
   0x5   :  { %11 = vsyncpa [#allocation9], 0 }
   0x6   :  { %13 = vsyncpa [#allocation9 + $0x1], 0 }
   0x7   :  { %14 = vsyncpa [#allocation7], 0 }
   0x8   :  { %16 = vsyncpa [#allocation7 + $0x1], 0  ;;  %s3071_s12 = smov 0   ;;  %s3073_s13 = smov 0  }
   0x9   :  { %s3075_s14 = smov 0   ;;  %s3077_s15 = smov 0  }
   0xa LB: > { %s3092_s16 = sadd.s32 4294967295, %s3034_s15   ;;  %s2758_s17 = sadd.s32 4294967294, %s3034_s15   ;;  %s3034_s15 = sphi %s3077_s15, %s4807_s15   ;;  %s3030_s14 = sphi %s3075_s14, %s4806_s14   ;;  %s3026_s13 = sphi %s3073_s13, %s4805_s13   ;;  %s3022_s12 = sphi %s3071_s12, %s4804_s12  }
   0xb   : > { %s3096_s18 = sadd.s32 1, %s3034_s15   ;;  %s29_s19 = sadd.s32 1, %s3030_s14 }
   0xc   : > { %s26_s20 = ssub.s32 %s3034_s15, %s3096_s18  ;;  %p36_p0 = scmp.ne.s32.totalorder %s3030_s14, %s3026_s13 }
   0xd   : > { %p27_p1 = scmp.eq.s32.totalorder %s26_s20, 0  ;;  %p37_p2 = scmp.eq.s32.totalorder %s3034_s15, 0 }
   0xe   : > { %p42_p3 = scmp.ne.s32.totalorder %s3026_s13, %s3022_s12  ;;  %p43_p4 = scmp.eq.s32.totalorder %s3092_s16, 0 }
   0xf   : > { %s3108_s21 = scalar_select %p27_p1, %s3030_s14, %s29_s19  }
  0x10   : > { %p38_p5 = por %p37_p2, %p36_p0  ;;  %p3110_p6 = por %p43_p4, %p42_p3 }
  0x11   : > { %p118_p7 = scmp.eq.s32.totalorder %s3092_s16, 1  ;;  %p124_p8 = scmp.eq.s32.totalorder %s2758_s17, 1 }
  0x12   : > { %s4654_s22 = scalar_select %p3110_p6, 1, 0 }
  0x13   : > { %p2813_p10 = scmp.lt.s32.totalorder %s3034_s15, 2  ;;  %p3117_p11 = por %p118_p7, %p36_p0 }
  0x14   : > { %p3121_p12 = por %p124_p8, %p42_p3  ;;  %s144_s25 = sand.u32 1, %s3030_s14  }
  0x15   : > { %s4655_s23 = scalar_select %p3117_p11, 1, 0 }
  0x16   : > { %s4656_s24 = scalar_select %p3121_p12, 1, 0 }
  0x17   : > { %s3127_s26 = smul.u32 768, %s3034_s15  ;;  %p3133_p13 = pnand %p2813_p10, %p38_p5 }
  0x18   : > { %s3131_s27 = smul.u32 48, %s144_s25  ;;  %s165_s29 = sand.u32 1, %s3034_s15  }
  0x19   : > { %s4658_s1 = sld [smem:[#allocation73_spill]]  ;;  %s3148_s8 = scalar_lea.sflag [#allocation9], %s165_s29 }
  0x1a   : > { %s169_s6 = scalar_lea.vmem [#allocation8], %s3131_s27  ;;  %p3154_p2 = pneg %p3133_p13 }
  0x1b   : > { %s176_s7 = sshll.u32 %s169_s6, 4  ;;  %s3145_s7 = int_to_ptr.vmem [resolvable:$true] %s176_s7 }
  0x1f   : > { %s3142_s5 = scalar_lea.hbm %s4658_s1, %s3127_s26  ;;  %s2887_s19 = scalar_lea.hbm %s4658_s1, 1536 }
  0x20   : > { %s2882_s9 = scalar_lea.hbm %s3142_s5, 768  ;;  %p2888_p5 = scmp.lt.s32.totalorder %s3142_s5, %s4658_s1 }
  0x21   : > { %p2883_p1 = scmp.ne.s32.totalorder %s3142_s5, %s2882_s9  ;;  %p2889_p7 = scmp.lt.s32.totalorder %s2887_s19, %s2882_s9 }
  0x23   : > { %p2885_p3 = pnand %p3154_p2, %p2883_p1  ;;  %p2890_p8 = por %p2889_p7, %p2888_p5 }
  0x25   : > { %p2886_p4 = pneg %p2885_p3 }
  0x27   : > { %p2891_p10 = pnand %p2890_p8, %p2886_p4 }
  0x29   : > { %2894 = shalt.err (!%p2891_p10)
}
  0x2a   : > { %s2895_s29 = scalar_lea.vmem %s3145_s7, 768  ;;  %s3036_s4 = smov [#allocation8]  }
  0x2b   : > { %p2896_p9 = scmp.ne.s32.totalorder %s3145_s7, %s2895_s29  ;;  %s2900_s6 = sshll.u32 %s3036_s4, 4  ;;  %s2901_s6 = int_to_ptr.vmem [resolvable:$false] %s2900_s6 }
  0x2c   : > { %s2902_s11 = scalar_lea.vmem %s2901_s6, 1536  ;;  %p2903_p0 = scmp.lt.s32.totalorder %s3145_s7, %s2901_s6 }
  0x2d   : > { %p2898_p1 = pnand %p2896_p9, %p3154_p2  ;;  %p2904_p12 = scmp.lt.s32.totalorder %s2902_s11, %s2895_s29 }
  0x2f   : > { %p2899_p3 = pneg %p2898_p1  ;;  %p2905_p11 = por %p2904_p12, %p2903_p0 }
  0x31   : > { %p2906_p6 = pnand %p2905_p11, %p2899_p3 }
  0x33   : > { %2909 = shalt.err (!%p2906_p6)
}
  0x34   : > { %s4605_s9 = smov 128   ;;  %s4607_s17 = smov 8  }
  0x35   : > { %2805 = dma.hbm_to_vmem [thread:$0]  (!%p3133_p13), %s3142_s5, 768, %s3145_s7, %s3148_s8, %s4605_s9, %s4605_s9, %s4607_s17  }
  0x36   : > { %p205_p9 = scmp.lt.s32.totalorder %s3034_s15, 3  ;;  %s4660_s0 = sld [smem:[#allocation72_spill]] }
  0x37   : > { %p4661_p6 = scmp.ge.s32.totalorder %s3034_s15, 1  ;;  %s148_s4 = scalar_lea.vmem [#allocation5], %s3131_s27 }
  0x38   : > { %s155_s6 = sshll.u32 %s148_s4, 4  ;;  %s145_s5 = scalar_lea.sflag [#allocation6], %s144_s25  ;;  %s3194_s6 = int_to_ptr.vmem [resolvable:$true] %s155_s6 }
  0x39   : > { %p3189_p11 = pnand %p4661_p6, %p205_p9 }
  0x3b   : > { %s4662_s29 = scalar_select %p3189_p11, 1, 0 }
  0x3c   : > { %s3185_s30 = scalar_lea.hbm %s4660_s0, %s3127_s26  ;;  %s2915_s20 = scalar_lea.hbm %s4660_s0, 1536 }
  0x3d   : > { %s2910_s7 = scalar_lea.hbm %s3185_s30, 768  ;;  %p2916_p5 = scmp.lt.s32.totalorder %s3185_s30, %s4660_s0 }
  0x3e   : > { %p2911_p12 = scmp.ne.s32.totalorder %s3185_s30, %s2910_s7  ;;  %p2917_p7 = scmp.lt.s32.totalorder %s2915_s20, %s2910_s7 }
  0x40   : > { %p2913_p0 = pnand %p2911_p12, %p3154_p2  ;;  %p2918_p8 = por %p2917_p7, %p2916_p5 }
  0x42   : > { %p2914_p4 = pneg %p2913_p0 }
  0x44   : > { %p2919_p10 = pnand %p2918_p8, %p2914_p4 }
  0x46   : > { %2922 = shalt.err (!%p2919_p10)
}
  0x47   : > { %s2923_s25 = scalar_lea.vmem %s3194_s6, 768  ;;  %s3039_s4 = smov [#allocation5]  }
  0x48   : > { %p2924_p1 = scmp.ne.s32.totalorder %s3194_s6, %s2923_s25  ;;  %s2928_s11 = sshll.u32 %s3039_s4, 4  ;;  %s2929_s11 = int_to_ptr.vmem [resolvable:$false] %s2928_s11 }
  0x49   : > { %s2930_s19 = scalar_lea.vmem %s2929_s11, 1536  ;;  %p2931_p6 = scmp.lt.s32.totalorder %s3194_s6, %s2929_s11 }
  0x4a   : > { %p2926_p3 = pnand %p2924_p1, %p3154_p2  ;;  %p2932_p12 = scmp.lt.s32.totalorder %s2930_s19, %s2923_s25 }
  0x4c   : > { %p2927_p9 = pneg %p2926_p3  ;;  %p2933_p0 = por %p2932_p12, %p2931_p6 }
  0x4e   : > { %p2934_p11 = pnand %p2933_p0, %p2927_p9 }
  0x50   : > { %2937 = shalt.err (!%p2934_p11)
}
  0x51   : > { %s4663_s9 = smov 8   ;;  %s4664_s17 = smov 128  }
  0x52   : > { %2802 = dma.hbm_to_vmem [thread:$0]  (!%p3133_p13), %s3185_s30, 768, %s3194_s6, %s145_s5, %s4664_s17, %s4664_s17, %s4663_s9  }
  0x53   : > { %s3225_s4 = scalar_lea.hbm %s4601_s2, %s3127_s26  ;;  %s190_s25 = scalar_lea.vmem [#allocation10], %s3131_s27 }
  0x54   : > { %s197_s11 = sshll.u32 %s190_s25, 4  ;;  %s2938_s19 = scalar_lea.hbm %s3225_s4, 768  ;;  %s198_s11 = int_to_ptr.vmem [resolvable:$true] %s197_s11 }
  0x55   : > { %p2939_p11 = scmp.ne.s32.totalorder %s3225_s4, %s2938_s19  ;;  %s2943_s30 = scalar_lea.hbm %s4601_s2, 1536 }
  0x56   : > { %p2944_p7 = scmp.lt.s32.totalorder %s3225_s4, %s4601_s2  ;;  %p2945_p8 = scmp.lt.s32.totalorder %s2943_s30, %s2938_s19 }
  0x57   : > { %p2941_p4 = pnand %p2939_p11, %p3154_p2 }
  0x58   : > { %p2946_p10 = por %p2945_p8, %p2944_p7 }
  0x59   : > { %p2942_p5 = pneg %p2941_p4 }
  0x5b   : > { %p2947_p1 = pnand %p2946_p10, %p2942_p5 }
  0x5d   : > { %2950 = shalt.err (!%p2947_p1)
}
  0x5e   : > { %s2951_s26 = scalar_lea.vmem %s198_s11, 768  ;;  %s3040_s27 = smov [#allocation10]  }
  0x5f   : > { %p2952_p3 = scmp.ne.s32.totalorder %s198_s11, %s2951_s26  ;;  %s2956_s7 = sshll.u32 %s3040_s27, 4  ;;  %s2957_s7 = int_to_ptr.vmem [resolvable:$false] %s2956_s7 }
  0x60   : > { %s2958_s20 = scalar_lea.vmem %s2957_s7, 1536  ;;  %p2959_p12 = scmp.lt.s32.totalorder %s198_s11, %s2957_s7 }
  0x61   : > { %p2954_p9 = pnand %p2952_p3, %p3154_p2  ;;  %p2960_p0 = scmp.lt.s32.totalorder %s2958_s20, %s2951_s26 }
  0x63   : > { %p2955_p6 = pneg %p2954_p9  ;;  %p2961_p11 = por %p2960_p0, %p2959_p12 }
  0x65   : > { %p2962_p4 = pnand %p2961_p11, %p2955_p6 }
  0x67   : > { %2965 = shalt.err (!%p2962_p4)
}
  0x68   : > { %2808 = dma.hbm_to_vmem [thread:$0]  (!%p3133_p13), %s3225_s4, 768, %s198_s11, %s3148_s8, %s4664_s17, %s4664_s17, %s4663_s9  }
  0x69   : > { %p4665_p2 = scmp.ne.s32.totalorder %s4662_s29, 0 }
  0x6b   : > { %209 = sbr.rel (%p4665_p2) target bundleno = 2642 (0xa52), region = 32 }
  0x70   : > { %s3251_s0 = sand.u32 1, %s3026_s13   ;;  %p4666_p5 = scmp.ne.s32.totalorder %s4654_s22, 0 }
  0x71   : > { %s3254_s1 = smul.u32 48, %s3251_s0  ;;  %s212_s10 = scalar_lea.sflag [#allocation6], %s3251_s0 }
  0x73   : > { %s3258_s28 = scalar_lea.vmem [#allocation5], %s3254_s1 }
  0x74   : > { %3009 = dma.done.wait (%p4666_p5), %s212_s10, 768  }
  0x75   : > { %3011 = vsyncadd (%p4666_p5), %s212_s10, 4294966528  ;;  %s220_s8 = sand.u32 1, %s3092_s16   ;;  %s3266_s9 = scalar_lea.vmem [#allocation8], %s3254_s1 }
  0x76   : > { %s221_s29 = scalar_lea.sflag [#allocation9], %s220_s8 }
  0x77   : > { %3013 = dma.done.wait (%p4666_p5), %s221_s29, 1536  }
  0x78   : > { %3015 = vsyncadd (%p4666_p5), %s221_s29, 4294965760  ;;  %vm266_vm0 = vcmask 123904   ;;  %vm273_vm1 = vcmask 15360   ;;  %v3041_v0 = vmov 0.0   ;;  %vm280_vm2 = vcmask 162960   ;;  %v3273_v1 = vld [vmem:[%s3258_s28] sm:$0xff] }
  0x79   : > { %267 = vst.msk [vmem:[#allocation2] sm:$0x3] %vm266_vm0, %v3041_v0  ;;  %268 = vst.msk [vmem:[#allocation2 + $0x18] sm:$0x3] %vm266_vm0, %v3041_v0  ;;  %vm299_vm3 = vcmask 130048   ;;  %v3276_v2 = vld [vmem:[%s3258_s28 + $0x8] sm:$0xff]  ;;  %v3348_v22 = vmul.f32 %v3273_v1, %v3273_v1 }
  0x7a   : > { %269 = vst.msk [vmem:[#allocation2 + $0x30] sm:$0x3] %vm266_vm0, %v3041_v0  ;;  %270 = vst.msk [vmem:[#allocation2 + $0x12] sm:$0x3] %vm266_vm0, %v3041_v0  ;;  %v3279_v3 = vld [vmem:[%s3258_s28 + $0x10] sm:$0xff]  ;;  %v3286_v4 = vld [vmem:[%s3258_s28 + $0x18] sm:$0xff]  ;;  %v3332_v17 = vmul.f32 %v3276_v2, %v3276_v2 }
  0x7b   : > { %271 = vst.msk [vmem:[#allocation2 + $0x2a] sm:$0x3] %vm266_vm0, %v3041_v0  ;;  %272 = vst.msk [vmem:[#allocation2 + $0x42] sm:$0x3] %vm266_vm0, %v3041_v0  ;;  %v306_v5 = vmul.f32 0.2920817, %v3273_v1  ;;  %v3361_v26 = vmul.f32 %v3279_v3, %v3279_v3  ;;  %v3365_v27 = vmul.f32 %v3286_v4, %v3286_v4 }
  0x7c   : > { %274 = vst.msk [vmem:[#allocation3] sm:$0xff] %vm273_vm1, %v3041_v0  ;;  %275 = vst.msk [vmem:[#allocation3 + $0x8] sm:$0xff] %vm273_vm1, %v3041_v0  ;;  %v3294_v6 = vmul.f32 0.2920817, %v3279_v3  ;;  %v3297_v7 = vld [vmem:[%s3258_s28 + $0x20] sm:$0xff]  ;;  %v3300_v8 = vld [vmem:[%s3258_s28 + $0x28] sm:$0xff] }
  0x7d   : > { %276 = vst.msk [vmem:[#allocation3 + $0x10] sm:$0xff] %vm273_vm1, %v3041_v0  ;;  %277 = vst.msk [vmem:[#allocation3 + $0x18] sm:$0xff] %vm273_vm1, %v3041_v0  ;;  %v3303_v9 = vld [vmem:[%s3266_s9 + $0x8] sm:$0xff]  ;;  %v3306_v10 = vmul.f32 0.2920817, %v3276_v2  ;;  %v3309_v11 = vld [vmem:[%s3266_s9 + $0x18] sm:$0xff]  ;;  %v3381_v35 = vmul.f32 %v3297_v7, %v3297_v7  ;;  %v3395_v53 = vmul.f32 %v3300_v8, %v3300_v8 }
  0x7e   : > { %278 = vst.msk [vmem:[#allocation3 + $0x20] sm:$0xff] %vm273_vm1, %v3041_v0  ;;  %279 = vst.msk [vmem:[#allocation3 + $0x28] sm:$0xff] %vm273_vm1, %v3041_v0  ;;  %v3312_v12 = vmul.f32 0.2920817, %v3286_v4  ;;  %v3319_v13 = vmul.f32 0.2920817, %v3297_v7  ;;  %v3391_v52 = vmul.f32 %v3303_v9, %v3303_v9 }
  0x7f   : > { %281 = vst.msk [vmem:[#allocation3] sm:$0xff] %vm280_vm2, %v3041_v0  ;;  %283 = vst.msk [vmem:[#allocation3 + $0x10] sm:$0xff] %vm280_vm2, %v3041_v0  ;;  %v3322_v14 = vld [vmem:[%s3266_s9 + $0x28] sm:$0xff]  ;;  %v3325_v15 = vmul.f32 0.2920817, %v3300_v8  ;;  %v3328_v16 = vld [vmem:[%s3266_s9] sm:$0xff] }
  0x80   : > { %282 = vst.msk [vmem:[#allocation3 + $0x8] sm:$0xff] %vm280_vm2, %v3041_v0  ;;  %284 = vst.msk [vmem:[#allocation3 + $0x18] sm:$0xff] %vm280_vm2, %v3041_v0  ;;  %v3335_v18 = vmul.f32 0.2920817, %v3328_v16  ;;  %v3338_v19 = vmul.f32 0.2920817, %v3303_v9 }
  0x81   : > { %285 = vst.msk [vmem:[#allocation3 + $0x20] sm:$0xff] %vm280_vm2, %v3041_v0  ;;  %286 = vst.msk [vmem:[#allocation3 + $0x28] sm:$0xff] %vm280_vm2, %v3041_v0  ;;  %v3341_v20 = vld [vmem:[%s3266_s9 + $0x10] sm:$0xff]  ;;  %v3344_v21 = vld [vmem:[%s3266_s9 + $0x20] sm:$0xff]  ;;  %v3354_v24 = vmul.f32 0.2920817, %v3309_v11 }
  0x82   : > { %300 = vst.msk [vmem:[#allocation2 + $0x2] sm:$0xff] %vm299_vm3, %v3273_v1  ;;  %301 = vst.msk [vmem:[#allocation2 + $0xa] sm:$0xff] %vm299_vm3, %v3276_v2  ;;  %v3351_v23 = vmul.f32 0.2920817, %v3341_v20  ;;  %v3357_v25 = vmul.f32 0.2920817, %v3344_v21 }
  0x83   : > { %302 = vst.msk [vmem:[#allocation2 + $0x1a] sm:$0xff] %vm299_vm3, %v3279_v3  ;;  %303 = vst.msk [vmem:[#allocation2 + $0x22] sm:$0xff] %vm299_vm3, %v3286_v4  ;;  %v3368_v28 = vmul.f32 0.2920817, %v3322_v14  ;;  %v3371_v29 = vmul.f32 0.2920817, %v3348_v22 }
  0x84   : > { %304 = vst.msk [vmem:[#allocation2 + $0x32] sm:$0xff] %vm299_vm3, %v3297_v7  ;;  %305 = vst.msk [vmem:[#allocation2 + $0x3a] sm:$0xff] %vm299_vm3, %v3300_v8  ;;  %v3374_v30 = vmul.f32 0.2920817, %v3332_v17  ;;  %v3377_v34 = vmul.f32 0.2920817, %v3361_v26 }
  0x85   : > { %v3384_v40 = vmul.f32 0.2920817, %v3365_v27  ;;  %v3387_v46 = vmul.f32 0.2920817, %v3381_v35  ;;  %s3042_s22 = smov 2   ;;  %vm396_vm4 = vcmask 146448  }
  0x86   : > { %s3043_s17 = smov 126   ;;  %s3044_s4 = smov 124   ;;  %vm1778_vm9 = vcmask 145430   ;;  %vm1780_vm10 = vcmask 144405   ;;  %vm1774_vm11 = vcmask 141330   ;;  %vm1776_vm12 = vcmask 140305  }
  0x87   : > { %s233_s25 = scalar_lea.vmem [#allocation10], %s3254_s1  ;;  %s3045_s11 = smov 127   ;;  %vm1797_vm13 = vcmask 7168   ;;  %vm1800_vm14 = vcmask 3072   ;;  %vm1817_vm15 = vcmask 15368   ;;  %vm1820_vm0 = vcmask 11272  }
  0x88   : > { %s3046_s19 = smov 125   ;;  %vm1837_vm1 = vcmask 154768   ;;  %vm1840_vm2 = vcmask 150672   ;;  %s3047_s20 = smov 4  }
  0x89   : > { %v312_v31 = vld [vmem:[#allocation2 + $0x1] sm:$0xff]  ;;  %v313_v45 = vld [vmem:[#allocation2 + $0x9] sm:$0xff]  ;;  %s2765_s1 = sshll.u32 %s3251_s0, 4  ;;  %s2771_s10 = sshll.u32 %s3092_s16, 8 }
  0x8a   : > { %v318_v32 = vld [vmem:[#allocation2 + $0x3] sm:$0xff]  ;;  %v314_v38 = vld [vmem:[#allocation2 + $0x19] sm:$0xff]  ;;  %v319_v49 = vld [vmem:[#allocation2 + $0xb] sm:$0xff]  ;;  %s265_s28 = scalar_lea.vmem [#allocation11], %s2765_s1  ;;  %s2629_s16 = scalar_lea.sflag [#allocation7], %s3251_s0 }
  0x8b   : > { %v342_v33 = vld [vmem:[#allocation2] sm:$0xff]  ;;  %v324_v36 = vadd.f32 %v318_v32, %v312_v31  ;;  %v344_v43 = vld [vmem:[#allocation2 + $0x18] sm:$0xff]  ;;  %v343_v50 = vld [vmem:[#allocation2 + $0x8] sm:$0xff]  ;;  %v325_v56 = vadd.f32 %v319_v49, %v313_v45  ;;  %v3403_v32 = vmul.f32 %v3328_v16, %v3328_v16  ;;  %s2642_s8 = sshll.u32 %s265_s28, 4  ;;  %p4801_p7 = scmp.ne.s32.totalorder %s4655_s23, 0  ;;  %s4555_s8 = int_to_ptr.vmem [resolvable:$true] %s2642_s8 }
  0x8c   : > { %v348_v37 = vld [vmem:[#allocation2 + $0x4] sm:$0xff]  ;;  %v320_v39 = vld [vmem:[#allocation2 + $0x1b] sm:$0xff]  ;;  %v349_v51 = vld [vmem:[#allocation2 + $0xc] sm:$0xff] }
  0x8d   : > { %v354_v41 = vadd.f32 %v348_v37, %v342_v33  ;;  %v326_v42 = vadd.f32 %v320_v39, %v314_v38  ;;  %v350_v44 = vld [vmem:[#allocation2 + $0x1c] sm:$0xff]  ;;  %v330_v47 = vmul.f32 0.23388076, %v324_v36  ;;  %v355_v57 = vadd.f32 %v349_v51, %v343_v50  ;;  %518 = vst.msk [vmem:[#allocation2 + $0xa] sm:$0xff] %vm299_vm3, %v3303_v9  ;;  %517 = vst.msk [vmem:[#allocation2 + $0x2] sm:$0xff] %vm299_vm3, %v3328_v16  ;;  %v351_v0 = vld [vmem:[#allocation2 + $0x24] sm:$0xff] }
  0x8e   : > { %v356_v48 = vadd.f32 %v350_v44, %v344_v43  ;;  %v315_v58 = vld [vmem:[#allocation2 + $0x21] sm:$0xff]  ;;  %v316_v31 = vld [vmem:[#allocation2 + $0x31] sm:$0xff]  ;;  %v331_v36 = vmul.f32 0.23388076, %v325_v56  ;;  %v317_v45 = vld [vmem:[#allocation2 + $0x39] sm:$0xff] }
  0x8f   : > { %v360_v54 = vmul.f32 0.120078385, %v354_v41  ;;  %v332_v55 = vmul.f32 0.23388076, %v326_v42  ;;  %v321_v59 = vld [vmem:[#allocation2 + $0x23] sm:$0xff]  ;;  %v336_v60 = vadd.f32 %v330_v47, %v306_v5  ;;  %v322_v39 = vld [vmem:[#allocation2 + $0x33] sm:$0xff] }
  0x90   : > { %v362_v61 = vmul.f32 0.120078385, %v356_v48  ;;  %v327_v62 = vadd.f32 %v321_v59, %v315_v58  ;;  %v345_v63 = vld [vmem:[#allocation2 + $0x20] sm:$0xff]  ;;  %v361_v37 = vmul.f32 0.120078385, %v355_v57  ;;  %v346_v41 = vld [vmem:[#allocation2 + $0x30] sm:$0xff]  ;;  %v328_v43 = vadd.f32 %v322_v39, %v316_v31 }
  0x91   : > { %v338_v33 = vadd.f32 %v332_v55, %v3294_v6  ;;  %v357_v38 = vadd.f32 %v351_v0, %v345_v63  ;;  %520 = vst.msk [vmem:[#allocation2 + $0x22] sm:$0xff] %vm299_vm3, %v3309_v11  ;;  %519 = vst.msk [vmem:[#allocation2 + $0x1a] sm:$0xff] %vm299_vm3, %v3341_v20  ;;  %v3410_v5 = vadd.f32 %v360_v54, %v336_v60  ;;  %v352_v44 = vld [vmem:[#allocation2 + $0x34] sm:$0xff]  ;;  %v353_v56 = vld [vmem:[#allocation2 + $0x3c] sm:$0xff] }
  0x92   : > { %v333_v42 = vmul.f32 0.23388076, %v327_v62  ;;  %v323_v47 = vld [vmem:[#allocation2 + $0x3b] sm:$0xff]  ;;  %v3414_v6 = vmul.f32 %v3341_v20, %v3341_v20  ;;  %v337_v49 = vadd.f32 %v331_v36, %v3306_v10  ;;  %v358_v51 = vadd.f32 %v352_v44, %v346_v41 }
  0x93   : > { %v3416_v48 = vadd.f32 %v362_v61, %v338_v33  ;;  %v363_v50 = vmul.f32 0.120078385, %v357_v38  ;;  %v347_v55 = vld [vmem:[#allocation2 + $0x38] sm:$0xff]  ;;  %378 = vrot.lane.b32.xlu0 %v3410_v5, %s3042_s22  ;;  %v334_v57 = vmul.f32 0.23388076, %v328_v43  ;;  %v329_v58 = vadd.f32 %v323_v47, %v317_v45 }
  0x94   : > { %v339_v54 = vadd.f32 %v333_v42, %v3312_v12  ;;  %v359_v59 = vadd.f32 %v353_v56, %v347_v55  ;;  %522 = vst.msk [vmem:[#allocation2 + $0x3a] sm:$0xff] %vm299_vm3, %v3322_v14  ;;  %521 = vst.msk [vmem:[#allocation2 + $0x32] sm:$0xff] %vm299_vm3, %v3344_v21  ;;  %v3428_v10 = vadd.f32 %v361_v37, %v337_v49  ;;  %v364_v60 = vmul.f32 0.120078385, %v358_v51  ;;  %v529_v33 = vld [vmem:[#allocation2 + $0x1] sm:$0xff]  ;;  %v530_v37 = vld [vmem:[#allocation2 + $0x9] sm:$0xff] }
  0x95   : > { %382 = vrot.lane.b32.xlu1 %v3416_v48, %s3042_s22  ;;  %v3431_v61 = vmul.f32 0.2920817, %v3395_v53  ;;  %v3434_v12 = vmul.f32 0.2920817, %v3403_v32  ;;  %v340_v63 = vadd.f32 %v334_v57, %v3319_v13  ;;  %v335_v0 = vmul.f32 0.23388076, %v329_v58 }
  0x96   : > { %v3436_v62 = vadd.f32 %v363_v50, %v339_v54  ;;  %v365_v31 = vmul.f32 0.120078385, %v359_v59  ;;  %v535_v36 = vld [vmem:[#allocation2 + $0x3] sm:$0xff]  ;;  %v3440_v42 = vmul.f32 0.2920817, %v3391_v52  ;;  %v536_v13 = vld [vmem:[#allocation2 + $0xb] sm:$0xff]  ;;  %v3452_v51 = vmul.f32 %v3303_v9, %v3276_v2 }
  0x97   : > { %v541_v38 = vadd.f32 %v535_v36, %v529_v33  ;;  %v559_v39 = vld [vmem:[#allocation2] sm:$0xff]  ;;  %380 = vrot.lane.b32.xlu0 %v3428_v10, %s3042_s22  ;;  %v3444_v43 = vadd.f32 %v364_v60, %v340_v63  ;;  %v341_v44 = vadd.f32 %v335_v0, %v3325_v15  ;;  %v560_v47 = vld [vmem:[#allocation2 + $0x8] sm:$0xff]  ;;  %v3448_v50 = vmul.f32 0.2920817, %v3414_v6 }
  0x98   : > { %v565_v41 = vld [vmem:[#allocation2 + $0x4] sm:$0xff]  ;;  %v566_v49 = vld [vmem:[#allocation2 + $0xc] sm:$0xff]  ;;  %v542_v56 = vadd.f32 %v536_v13, %v530_v37  ;;  %v531_v15 = vld [vmem:[#allocation2 + $0x19] sm:$0xff]  ;;  %v3462_v59 = vmul.f32 %v3309_v11, %v3309_v11 }
  0x99   : > { %v571_v45 = vadd.f32 %v565_v41, %v559_v39  ;;  %384 = vrot.lane.b32.xlu1 %v3436_v62, %s3042_s22  ;;  %v547_v55 = vmul.f32 0.23388076, %v541_v38  ;;  %v572_v54 = vadd.f32 %v566_v49, %v560_v47  ;;  %740 = vst.msk [vmem:[#allocation2 + $0xa] sm:$0xff] %vm299_vm3, %v3332_v17  ;;  %v537_v57 = vld [vmem:[#allocation2 + $0x1b] sm:$0xff]  ;;  %739 = vst.msk [vmem:[#allocation2 + $0x2] sm:$0xff] %vm299_vm3, %v3348_v22  ;;  %v538_v33 = vld [vmem:[#allocation2 + $0x23] sm:$0xff] }
  0x9a   : > { %v561_v58 = vld [vmem:[#allocation2 + $0x18] sm:$0xff]  ;;  %v3464_v2 = vadd.f32 %v365_v31, %v341_v44  ;;  %v543_v60 = vadd.f32 %v537_v57, %v531_v15  ;;  %v532_v0 = vld [vmem:[#allocation2 + $0x21] sm:$0xff]  ;;  %v548_v17 = vmul.f32 0.23388076, %v542_v56  ;;  %v3469_v22 = vmul.f32 %v3309_v11, %v3286_v4 }
  0x9b   : > { %v577_v9 = vmul.f32 0.120078385, %v571_v45  ;;  %v567_v63 = vld [vmem:[#allocation2 + $0x1c] sm:$0xff]  ;;  %v553_v36 = vadd.f32 %v547_v55, %v3335_v18  ;;  %v578_v38 = vmul.f32 0.120078385, %v572_v54  ;;  %v568_v37 = vld [vmem:[#allocation2 + $0x24] sm:$0xff]  ;;  %386 = vrot.lane.b32.xlu0 %v3444_v43, %s3042_s22  ;;  %v544_v44 = vadd.f32 %v538_v33, %v532_v0 }
  0x9c   : > { %v573_v39 = vadd.f32 %v567_v63, %v561_v58  ;;  %v562_v41 = vld [vmem:[#allocation2 + $0x20] sm:$0xff]  ;;  %v549_v31 = vmul.f32 0.23388076, %v543_v60  ;;  %v533_v13 = vld [vmem:[#allocation2 + $0x31] sm:$0xff]  ;;  %v554_v11 = vadd.f32 %v548_v17, %v3338_v19  ;;  %v3491_v19 = vmul.f32 %v3322_v14, %v3322_v14 }
  0x9d   : > { %v574_v45 = vadd.f32 %v568_v37, %v562_v41  ;;  %742 = vst.msk [vmem:[#allocation2 + $0x22] sm:$0xff] %vm299_vm3, %v3365_v27  ;;  %v539_v18 = vld [vmem:[#allocation2 + $0x33] sm:$0xff]  ;;  %741 = vst.msk [vmem:[#allocation2 + $0x1a] sm:$0xff] %vm299_vm3, %v3361_v26  ;;  %388 = vrot.lane.b32.xlu1 %v3464_v2, %s3042_s22  ;;  %v3479_v4 = vadd.f32 %v577_v9, %v553_v36  ;;  %v540_v15 = vld [vmem:[#allocation2 + $0x3b] sm:$0xff]  ;;  %v550_v57 = vmul.f32 0.23388076, %v544_v44 }
  0x9e   : > { %v563_v47 = vld [vmem:[#allocation2 + $0x30] sm:$0xff]  ;;  %v579_v49 = vmul.f32 0.120078385, %v573_v39  ;;  %v545_v55 = vadd.f32 %v539_v18, %v533_v13  ;;  %v534_v54 = vld [vmem:[#allocation2 + $0x39] sm:$0xff]  ;;  %v555_v27 = vadd.f32 %v549_v31, %v3351_v23  ;;  %v3483_v26 = vadd.f32 %v578_v38, %v554_v11 }
  0x9f   : > { %v569_v56 = vld [vmem:[#allocation2 + $0x34] sm:$0xff]  ;;  %v580_v58 = vmul.f32 0.120078385, %v574_v45  ;;  %v570_v0 = vld [vmem:[#allocation2 + $0x3c] sm:$0xff]  ;;  %v546_v41 = vadd.f32 %v540_v15, %v534_v54  ;;  %595 = vrot.lane.b32.xlu0 %v3479_v4, %s3042_s22  ;;  %v556_v36 = vadd.f32 %v550_v57, %v3354_v24 }
  0xa0   : > { %v575_v60 = vadd.f32 %v569_v56, %v563_v47  ;;  %v564_v63 = vld [vmem:[#allocation2 + $0x38] sm:$0xff]  ;;  %v551_v33 = vmul.f32 0.23388076, %v545_v55  ;;  %v3495_v23 = vadd.f32 %v579_v49, %v555_v27  ;;  %v751_v38 = vld [vmem:[#allocation2 + $0x1] sm:$0xff]  ;;  %v752_v13 = vld [vmem:[#allocation2 + $0x9] sm:$0xff]  ;;  %v959_v56 = vmul.f32 %v3344_v21, %v3344_v21 }
  0xa1   : > { %v576_v9 = vadd.f32 %v570_v0, %v564_v63  ;;  %744 = vst.msk [vmem:[#allocation2 + $0x3a] sm:$0xff] %vm299_vm3, %v3395_v53  ;;  %743 = vst.msk [vmem:[#allocation2 + $0x32] sm:$0xff] %vm299_vm3, %v3381_v35  ;;  %v757_v39 = vld [vmem:[#allocation2 + $0x3] sm:$0xff]  ;;  %597 = vrot.lane.b32.xlu1 %v3483_v26, %s3042_s22  ;;  %v552_v53 = vmul.f32 0.23388076, %v546_v41  ;;  %v3501_v18 = vadd.f32 %v580_v58, %v556_v36  ;;  %v758_v11 = vld [vmem:[#allocation2 + $0xb] sm:$0xff] }
  0xa2   : > { %4667 = vst [vmem:[#allocation15_spill] sm:$0xff] %v3495_v23  ;;  %v581_v17 = vmul.f32 0.120078385, %v575_v60  ;;  %v781_v37 = vld [vmem:[#allocation2] sm:$0xff]  ;;  %v557_v35 = vadd.f32 %v551_v33, %v3357_v25  ;;  %v763_v44 = vadd.f32 %v757_v39, %v751_v38  ;;  %v782_v49 = vld [vmem:[#allocation2 + $0x8] sm:$0xff]  ;;  %v764_v15 = vadd.f32 %v758_v11, %v752_v13 }
  0xa3   : > { %v582_v31 = vmul.f32 0.120078385, %v576_v9  ;;  %v787_v45 = vld [vmem:[#allocation2 + $0x4] sm:$0xff]  ;;  %4668 = vst [vmem:[#allocation16_spill] sm:$0xff] %v3501_v18  ;;  %v788_v24 = vld [vmem:[#allocation2 + $0xc] sm:$0xff]  ;;  %v558_v54 = vadd.f32 %v552_v53, %v3368_v28  ;;  %v3515_v60 = vmul.f32 %v3328_v16, %v3273_v1  ;;  %599 = vrot.lane.b32.xlu0 %v3495_v23, %s3042_s22 }
  0xa4   : > { %v793_v47 = vadd.f32 %v787_v45, %v781_v37  ;;  %v3504_v55 = vmul.f32 0.2920817, %v3462_v59  ;;  %v769_v25 = vmul.f32 0.23388076, %v763_v44  ;;  %962 = vst.msk [vmem:[#allocation2 + $0xa] sm:$0xff] %vm299_vm3, %v3391_v52  ;;  %v753_v27 = vld [vmem:[#allocation2 + $0x19] sm:$0xff]  ;;  %v3519_v63 = vadd.f32 %v581_v17, %v557_v35 }
  0xa5   : > { %v759_v57 = vld [vmem:[#allocation2 + $0x1b] sm:$0xff]  ;;  %961 = vst.msk [vmem:[#allocation2 + $0x2] sm:$0xff] %vm299_vm3, %v3403_v32  ;;  %v794_v0 = vadd.f32 %v788_v24, %v782_v49  ;;  %v760_v9 = vld [vmem:[#allocation2 + $0x23] sm:$0xff]  ;;  %601 = vrot.lane.b32.xlu1 %v3501_v18, %s3042_s22  ;;  %v3523_v36 = vadd.f32 %v582_v31, %v558_v54  ;;  %v770_v1 = vmul.f32 0.23388076, %v764_v15 }
  0xa6   : > { %v783_v58 = vld [vmem:[#allocation2 + $0x18] sm:$0xff]  ;;  %4669 = vst [vmem:[#allocation17_spill] sm:$0xff] %v3519_v63  ;;  %v799_v28 = vmul.f32 0.120078385, %v793_v47  ;;  %v765_v33 = vadd.f32 %v759_v57, %v753_v27  ;;  %v754_v52 = vld [vmem:[#allocation2 + $0x21] sm:$0xff]  ;;  %v775_v32 = vadd.f32 %v769_v25, %v3371_v29 }
  0xa7   : > { %v789_v41 = vld [vmem:[#allocation2 + $0x1c] sm:$0xff]  ;;  %4670 = vst [vmem:[#allocation18_spill] sm:$0xff] %v3523_v36  ;;  %v790_v39 = vld [vmem:[#allocation2 + $0x24] sm:$0xff]  ;;  %v800_v37 = vmul.f32 0.120078385, %v794_v0  ;;  %v766_v35 = vadd.f32 %v760_v9, %v754_v52  ;;  %v776_v29 = vadd.f32 %v770_v1, %v3374_v30  ;;  %603 = vrot.lane.b32.xlu0 %v3519_v63, %s3042_s22 }
  0xa8   : > { %v795_v16 = vadd.f32 %v789_v41, %v783_v58  ;;  %v784_v38 = vld [vmem:[#allocation2 + $0x20] sm:$0xff]  ;;  %v771_v17 = vmul.f32 0.23388076, %v765_v33  ;;  %v755_v44 = vld [vmem:[#allocation2 + $0x31] sm:$0xff]  ;;  %v3530_v31 = vadd.f32 %v799_v28, %v775_v32  ;;  %v3533_v24 = vmul.f32 0.2920817, %v959_v56 }
  0xa9   : > { %v796_v53 = vadd.f32 %v790_v39, %v784_v38  ;;  %964 = vst.msk [vmem:[#allocation2 + $0x22] sm:$0xff] %vm299_vm3, %v3462_v59  ;;  %v761_v45 = vld [vmem:[#allocation2 + $0x33] sm:$0xff]  ;;  %963 = vst.msk [vmem:[#allocation2 + $0x1a] sm:$0xff] %vm299_vm3, %v3414_v6  ;;  %v772_v25 = vmul.f32 0.23388076, %v766_v35  ;;  %v762_v27 = vld [vmem:[#allocation2 + $0x3b] sm:$0xff]  ;;  %605 = vrot.lane.b32.xlu1 %v3523_v36, %s3042_s22  ;;  %v3540_v30 = vadd.f32 %v800_v37, %v776_v29 }
  0xaa   : > { %4671 = vst [vmem:[#allocation19_spill] sm:$0xff] %v3530_v31  ;;  %v767_v13 = vadd.f32 %v761_v45, %v755_v44  ;;  %v785_v47 = vld [vmem:[#allocation2 + $0x30] sm:$0xff]  ;;  %v756_v49 = vld [vmem:[#allocation2 + $0x39] sm:$0xff]  ;;  %v777_v59 = vadd.f32 %v771_v17, %v3377_v34  ;;  %v801_v54 = vmul.f32 0.120078385, %v795_v16  ;;  %v3545_v33 = vmul.f32 %v3322_v14, %v3300_v8 }
  0xab   : > { %v791_v11 = vld [vmem:[#allocation2 + $0x34] sm:$0xff]  ;;  %4672 = vst [vmem:[#allocation20_spill] sm:$0xff] %v3540_v30  ;;  %v802_v57 = vmul.f32 0.120078385, %v796_v53  ;;  %v768_v28 = vadd.f32 %v762_v27, %v756_v49  ;;  %v792_v0 = vld [vmem:[#allocation2 + $0x3c] sm:$0xff]  ;;  %v778_v34 = vadd.f32 %v772_v25, %v3384_v40  ;;  %v980_v17 = vld [vmem:[#allocation2 + $0xb] sm:$0xff]  ;;  %v3553_v8 = vmul.f32 %v3341_v20, %v3279_v3  ;;  %817 = vrot.lane.b32.xlu0 %v3530_v31, %s3042_s22 }
  0xac   : > { %v797_v15 = vadd.f32 %v791_v11, %v785_v47  ;;  %v786_v6 = vld [vmem:[#allocation2 + $0x38] sm:$0xff]  ;;  %v773_v58 = vmul.f32 0.23388076, %v767_v13  ;;  %v973_v9 = vld [vmem:[#allocation2 + $0x1] sm:$0xff]  ;;  %v3557_v14 = vadd.f32 %v801_v54, %v777_v59  ;;  %v1010_v45 = vld [vmem:[#allocation2 + $0xc] sm:$0xff]  ;;  %v3570_v27 = vmul.f32 %v3344_v21, %v3297_v7 }
  0xad   : > { %965 = vst.msk [vmem:[#allocation2 + $0x32] sm:$0xff] %vm299_vm3, %v959_v56  ;;  %v798_v52 = vadd.f32 %v792_v0, %v786_v6  ;;  %966 = vst.msk [vmem:[#allocation2 + $0x3a] sm:$0xff] %vm299_vm3, %v3491_v19  ;;  %v979_v32 = vld [vmem:[#allocation2 + $0x3] sm:$0xff]  ;;  %v774_v38 = vmul.f32 0.23388076, %v768_v28  ;;  %819 = vrot.lane.b32.xlu1 %v3540_v30, %s3042_s22 }
  0xae   : > { %v803_v41 = vmul.f32 0.120078385, %v797_v15  ;;  %v1003_v1 = vld [vmem:[#allocation2] sm:$0xff]  ;;  %v779_v16 = vadd.f32 %v773_v58, %v3387_v46  ;;  %v985_v39 = vadd.f32 %v979_v32, %v973_v9  ;;  %v974_v56 = vld [vmem:[#allocation2 + $0x9] sm:$0xff]  ;;  %4673 = vst [vmem:[#allocation21_spill] sm:$0xff] %v3557_v14  ;;  %v3561_v46 = vadd.f32 %v802_v57, %v778_v34 }
  0xaf   : > { %v1009_v37 = vld [vmem:[#allocation2 + $0x4] sm:$0xff]  ;;  %v804_v40 = vmul.f32 0.120078385, %v798_v52  ;;  %v986_v53 = vadd.f32 %v980_v17, %v974_v56  ;;  %v780_v29 = vadd.f32 %v774_v38, %v3431_v61  ;;  %821 = vrot.lane.b32.xlu0 %v3557_v14, %s3042_s22 }
  0xb0   : > { %v1015_v35 = vadd.f32 %v1009_v37, %v1003_v1  ;;  %v1004_v44 = vld [vmem:[#allocation2 + $0x8] sm:$0xff]  ;;  %4674 = vst [vmem:[#allocation22_spill] sm:$0xff] %v3561_v46  ;;  %v991_v13 = vmul.f32 0.23388076, %v985_v39  ;;  %v975_v20 = vld [vmem:[#allocation2 + $0x19] sm:$0xff]  ;;  %v3572_v61 = vadd.f32 %v803_v41, %v779_v16 }
  0xb1   : > { %v1016_v3 = vadd.f32 %v1010_v45, %v1004_v44  ;;  %1184 = vst.msk [vmem:[#allocation2 + $0xa] sm:$0xff] %vm299_vm3, %v3452_v51  ;;  %v981_v47 = vld [vmem:[#allocation2 + $0x1b] sm:$0xff]  ;;  %1183 = vst.msk [vmem:[#allocation2 + $0x2] sm:$0xff] %vm299_vm3, %v3515_v60  ;;  %v992_v59 = vmul.f32 0.23388076, %v986_v53  ;;  %v982_v28 = vld [vmem:[#allocation2 + $0x23] sm:$0xff]  ;;  %823 = vrot.lane.b32.xlu1 %v3561_v46, %s3042_s22 }
  0xb2   : > { %v1005_v11 = vld [vmem:[#allocation2 + $0x18] sm:$0xff]  ;;  %v1021_v49 = vmul.f32 0.120078385, %v1015_v35  ;;  %v987_v54 = vadd.f32 %v981_v47, %v975_v20  ;;  %v976_v15 = vld [vmem:[#allocation2 + $0x21] sm:$0xff]  ;;  %4675 = vst [vmem:[#allocation23_spill] sm:$0xff] %v3572_v61  ;;  %v997_v6 = vadd.f32 %v991_v13, %v3434_v12  ;;  %v3584_v12 = vadd.f32 %v804_v40, %v780_v29 }
  0xb3   : > { %v1011_v25 = vld [vmem:[#allocation2 + $0x1c] sm:$0xff]  ;;  %v1022_v57 = vmul.f32 0.120078385, %v1016_v3  ;;  %v1012_v34 = vld [vmem:[#allocation2 + $0x24] sm:$0xff]  ;;  %v998_v52 = vadd.f32 %v992_v59, %v3440_v42  ;;  %v988_v32 = vadd.f32 %v982_v28, %v976_v15  ;;  %v972_v42 = vmul.f32 0.2920817, %v3491_v19  ;;  %825 = vrot.lane.b32.xlu0 %v3572_v61, %s3042_s22 }
  0xb4   : > { %v1017_v58 = vadd.f32 %v1011_v25, %v1005_v11  ;;  %v1006_v0 = vld [vmem:[#allocation2 + $0x20] sm:$0xff]  ;;  %v993_v9 = vmul.f32 0.23388076, %v987_v54  ;;  %v977_v7 = vld [vmem:[#allocation2 + $0x31] sm:$0xff]  ;;  %4676 = vst [vmem:[#allocation24_spill] sm:$0xff] %v3584_v12  ;;  %v3587_v39 = vadd.f32 %v1021_v49, %v997_v6 }
  0xb5   : > { %v1018_v1 = vadd.f32 %v1012_v34, %v1006_v0  ;;  %1186 = vst.msk [vmem:[#allocation2 + $0x22] sm:$0xff] %vm299_vm3, %v3469_v22  ;;  %v1007_v21 = vld [vmem:[#allocation2 + $0x30] sm:$0xff]  ;;  %1185 = vst.msk [vmem:[#allocation2 + $0x1a] sm:$0xff] %vm299_vm3, %v3553_v8  ;;  %v978_v38 = vld [vmem:[#allocation2 + $0x39] sm:$0xff]  ;;  %v994_v17 = vmul.f32 0.23388076, %v988_v32  ;;  %v3594_v19 = vadd.f32 %v1022_v57, %v998_v52  ;;  %827 = vrot.lane.b32.xlu1 %v3584_v12, %s3042_s22 }
  0xb6   : > { %v983_v41 = vld [vmem:[#allocation2 + $0x33] sm:$0xff]  ;;  %4677 = vst [vmem:[#allocation25_spill] sm:$0xff] %v3587_v39  ;;  %v999_v37 = vadd.f32 %v993_v9, %v3448_v50  ;;  %v1023_v56 = vmul.f32 0.120078385, %v1017_v58  ;;  %v984_v35 = vld [vmem:[#allocation2 + $0x3b] sm:$0xff] }
  0xb7   : > { %v1013_v16 = vld [vmem:[#allocation2 + $0x34] sm:$0xff]  ;;  %v1024_v44 = vmul.f32 0.120078385, %v1018_v1  ;;  %v989_v45 = vadd.f32 %v983_v41, %v977_v7  ;;  %v990_v3 = vadd.f32 %v984_v35, %v978_v38  ;;  %v1014_v20 = vld [vmem:[#allocation2 + $0x3c] sm:$0xff]  ;;  %4678 = vst [vmem:[#allocation26_spill] sm:$0xff] %v3594_v19  ;;  %v1000_v40 = vadd.f32 %v994_v17, %v3504_v55  ;;  %1039 = vrot.lane.b32.xlu0 %v3587_v39, %s3042_s22 }
  0xb8   : > { %v1008_v53 = vld [vmem:[#allocation2 + $0x38] sm:$0xff]  ;;  %v1019_v13 = vadd.f32 %v1013_v16, %v1007_v21  ;;  %v1189_v29 = vmul.f32 0.2920817, %v3515_v60  ;;  %v1195_v47 = vld [vmem:[#allocation2 + $0x1] sm:$0xff]  ;;  %v1190_v15 = vmul.f32 0.2920817, %v3452_v51  ;;  %v3603_v28 = vadd.f32 %v1023_v56, %v999_v37 }
  0xb9   : > { %1187 = vst.msk [vmem:[#allocation2 + $0x32] sm:$0xff] %vm299_vm3, %v3570_v27  ;;  %v1020_v50 = vadd.f32 %v1014_v20, %v1008_v53  ;;  %1188 = vst.msk [vmem:[#allocation2 + $0x3a] sm:$0xff] %vm299_vm3, %v3545_v33  ;;  %v1201_v11 = vld [vmem:[#allocation2 + $0x3] sm:$0xff]  ;;  %v995_v59 = vmul.f32 0.23388076, %v989_v45  ;;  %v1202_v58 = vld [vmem:[#allocation2 + $0xb] sm:$0xff]  ;;  %1041 = vrot.lane.b32.xlu1 %v3594_v19, %s3042_s22  ;;  %v3610_v38 = vadd.f32 %v1024_v44, %v1000_v40 }
  0xba   : > { %v1225_v49 = vld [vmem:[#allocation2] sm:$0xff]  ;;  %v996_v54 = vmul.f32 0.23388076, %v990_v3  ;;  %v1207_v25 = vadd.f32 %v1201_v11, %v1195_v47  ;;  %v1025_v6 = vmul.f32 0.120078385, %v1019_v13  ;;  %v1196_v55 = vld [vmem:[#allocation2 + $0x9] sm:$0xff] }
  0xbb   : > { %v1231_v57 = vld [vmem:[#allocation2 + $0x4] sm:$0xff]  ;;  %4679 = vst [vmem:[#allocation27_spill] sm:$0xff] %v3603_v28  ;;  %v1232_v52 = vld [vmem:[#allocation2 + $0xc] sm:$0xff]  ;;  %v1001_v32 = vadd.f32 %v995_v59, %v3533_v24  ;;  %v1026_v1 = vmul.f32 0.120078385, %v1020_v50  ;;  %v1208_v7 = vadd.f32 %v1202_v58, %v1196_v55  ;;  %4680 = vst [vmem:[#allocation28_spill] sm:$0xff] %v3610_v38  ;;  %1043 = vrot.lane.b32.xlu0 %v3603_v28, %s3042_s22 }
  0xbc   : > { %v1213_v0 = vmul.f32 0.23388076, %v1207_v25  ;;  %v1237_v34 = vadd.f32 %v1231_v57, %v1225_v49  ;;  %v1226_v60 = vld [vmem:[#allocation2 + $0x8] sm:$0xff]  ;;  %v1197_v9 = vld [vmem:[#allocation2 + $0x19] sm:$0xff]  ;;  %v1002_v37 = vadd.f32 %v996_v54, %v972_v42  ;;  %v1191_v56 = vmul.f32 0.2920817, %v3553_v8 }
  0xbd   : > { %v1238_v21 = vadd.f32 %v1232_v52, %v1226_v60  ;;  %v1203_v51 = vld [vmem:[#allocation2 + $0x1b] sm:$0xff]  ;;  %v1204_v35 = vld [vmem:[#allocation2 + $0x23] sm:$0xff]  ;;  %v1214_v24 = vmul.f32 0.23388076, %v1208_v7  ;;  %v3615_v42 = vadd.f32 %v1025_v6, %v1001_v32  ;;  %v1192_v40 = vmul.f32 0.2920817, %v3469_v22  ;;  %1045 = vrot.lane.b32.xlu1 %v3610_v38, %s3042_s22 }
  0xbe   : > { %v1227_v41 = vld [vmem:[#allocation2 + $0x18] sm:$0xff]  ;;  %v1198_v17 = vld [vmem:[#allocation2 + $0x21] sm:$0xff]  ;;  %v1219_v45 = vadd.f32 %v1213_v0, %v1189_v29  ;;  %v1243_v13 = vmul.f32 0.120078385, %v1237_v34  ;;  %v1209_v3 = vadd.f32 %v1203_v51, %v1197_v9  ;;  %v3620_v54 = vadd.f32 %v1026_v1, %v1002_v37 }
  0xbf   : > { %v1233_v16 = vld [vmem:[#allocation2 + $0x1c] sm:$0xff]  ;;  %v1234_v20 = vld [vmem:[#allocation2 + $0x24] sm:$0xff]  ;;  %v1244_v47 = vmul.f32 0.120078385, %v1238_v21  ;;  %v1210_v49 = vadd.f32 %v1204_v35, %v1198_v17  ;;  %4681 = vst [vmem:[#allocation29_spill] sm:$0xff] %v3615_v42  ;;  %v1220_v8 = vadd.f32 %v1214_v24, %v1190_v15  ;;  %1047 = vrot.lane.b32.xlu0 %v3615_v42, %s3042_s22 }
  0xc0   : > { %v1228_v53 = vld [vmem:[#allocation2 + $0x20] sm:$0xff]  ;;  %v1199_v50 = vld [vmem:[#allocation2 + $0x31] sm:$0xff]  ;;  %v1239_v11 = vadd.f32 %v1233_v16, %v1227_v41  ;;  %v1215_v44 = vmul.f32 0.23388076, %v1209_v3  ;;  %4682 = vst [vmem:[#allocation30_spill] sm:$0xff] %v3620_v54  ;;  %v3622_v6 = vadd.f32 %v1243_v13, %v1219_v45 }
  0xc1   : > { %v1240_v59 = vadd.f32 %v1234_v20, %v1228_v53  ;;  %v1205_v25 = vld [vmem:[#allocation2 + $0x33] sm:$0xff]  ;;  %v1216_v57 = vmul.f32 0.23388076, %v1210_v49  ;;  %v1206_v34 = vld [vmem:[#allocation2 + $0x3b] sm:$0xff]  ;;  %v1193_v22 = vmul.f32 0.2920817, %v3570_v27  ;;  %v3627_v7 = vadd.f32 %v1244_v47, %v1220_v8  ;;  %1049 = vrot.lane.b32.xlu1 %v3620_v54, %s3042_s22 }
  0xc2   : > { %v1229_v29 = vld [vmem:[#allocation2 + $0x30] sm:$0xff]  ;;  %v1211_v55 = vadd.f32 %v1205_v25, %v1199_v50  ;;  %v1200_v0 = vld [vmem:[#allocation2 + $0x39] sm:$0xff]  ;;  %4683 = vst [vmem:[#allocation31_spill] sm:$0xff] %v3622_v6  ;;  %v1245_v15 = vmul.f32 0.120078385, %v1239_v11  ;;  %v1221_v1 = vadd.f32 %v1215_v44, %v1191_v56 }
  0xc3   : > { %v1235_v58 = vld [vmem:[#allocation2 + $0x34] sm:$0xff]  ;;  %v1212_v60 = vadd.f32 %v1206_v34, %v1200_v0  ;;  %v1236_v9 = vld [vmem:[#allocation2 + $0x3c] sm:$0xff]  ;;  %v1246_v32 = vmul.f32 0.120078385, %v1240_v59  ;;  %4684 = vst [vmem:[#allocation32_spill] sm:$0xff] %v3627_v7  ;;  %v1222_v41 = vadd.f32 %v1216_v57, %v1192_v40  ;;  %1261 = vrot.lane.b32.xlu0 %v3622_v6, %s3042_s22 }
  0xc4   : > { %v1230_v52 = vld [vmem:[#allocation2 + $0x38] sm:$0xff]  ;;  %v1217_v21 = vmul.f32 0.23388076, %v1211_v55  ;;  %v1241_v51 = vadd.f32 %v1235_v58, %v1229_v29  ;;  %v1194_v16 = vmul.f32 0.2920817, %v3545_v33  ;;  %v3634_v27 = vadd.f32 %v1245_v15, %v1221_v1 }
  0xc5   : > { %v1218_v37 = vmul.f32 0.23388076, %v1212_v60  ;;  %v1242_v17 = vadd.f32 %v1236_v9, %v1230_v52  ;;  %1263 = vrot.lane.b32.xlu1 %v3627_v7, %s3042_s22  ;;  %v3638_v56 = vadd.f32 %v1246_v32, %v1222_v41 }
  0xc6   : > { %4685 = vst [vmem:[#allocation33_spill] sm:$0xff] %v3634_v27  ;;  %v1223_v35 = vadd.f32 %v1217_v21, %v1193_v22  ;;  %v1247_v53 = vmul.f32 0.120078385, %v1241_v51 }
  0xc7   : > { %4686 = vst [vmem:[#allocation34_spill] sm:$0xff] %v3638_v56  ;;  %v1224_v45 = vadd.f32 %v1218_v37, %v1194_v16  ;;  %v1248_v13 = vmul.f32 0.120078385, %v1242_v17  ;;  %1265 = vrot.lane.b32.xlu0 %v3634_v27, %s3042_s22 }
  0xc8   : > { %v3642_v33 = vadd.f32 %v1247_v53, %v1223_v35 }
  0xc9   : > { %1267 = vrot.lane.b32.xlu1 %v3638_v56, %s3042_s22  ;;  %v3646_v24 = vadd.f32 %v1248_v13, %v1224_v45 }
  0xca   : > { %4687 = vst [vmem:[#allocation35_spill] sm:$0xff] %v3642_v33 }
  0xcb   : > { %4688 = vst [vmem:[#allocation36_spill] sm:$0xff] %v3646_v24  ;;  %1269 = vrot.lane.b32.xlu0 %v3642_v33, %s3042_s22 }
  0xcd   : > { %1271 = vrot.lane.b32.xlu1 %v3646_v24, %s3042_s22  ;;  %v3863_v24 = vld [vmem:[%s233_s25 + $0x20] sm:$0xff] }
  0xce   : > { %1495 = vst.msk [vmem:[#allocation2 + $0x32] sm:$0xff] %vm299_vm3, %v3863_v24 }
 0x105   : > { %v379_v3 = vpop.permute.xlu0 %378 }
 0x106   : > { %397 = vst.msk [vmem:[#allocation3] sm:$0xff] %vm396_vm4, %v379_v3 }
 0x107   : > { %v383_v20 = vpop.permute.xlu1 %382 }
 0x108   : > { %399 = vst.msk [vmem:[#allocation3 + $0x10] sm:$0xff] %vm396_vm4, %v383_v20 }
 0x109   : > { %v381_v50 = vpop.permute.xlu0 %380 }
 0x10a   : > { %398 = vst.msk [vmem:[#allocation3 + $0x8] sm:$0xff] %vm396_vm4, %v381_v50 }
 0x10b   : > { %v385_v47 = vpop.permute.xlu1 %384 }
 0x10c   : > { %400 = vst.msk [vmem:[#allocation3 + $0x18] sm:$0xff] %vm396_vm4, %v385_v47 }
 0x10d   : > { %v387_v11 = vpop.permute.xlu0 %386  ;;  %v3656_v49 = vld [vmem:[#allocation3] sm:$0xff] }
 0x10e   : > { %401 = vst.msk [vmem:[#allocation3 + $0x20] sm:$0xff] %vm396_vm4, %v387_v11  ;;  %421 = vrot.lane.b32.xlu0 %v3656_v49, %s3043_s17 }
 0x10f   : > { %v389_v59 = vpop.permute.xlu1 %388  ;;  %v3662_v25 = vld [vmem:[#allocation3 + $0x10] sm:$0xff] }
 0x110   : > { %402 = vst.msk [vmem:[#allocation3 + $0x28] sm:$0xff] %vm396_vm4, %v389_v59 }
 0x111   : > { %v3664_v8 = vld [vmem:[#allocation3 + $0x8] sm:$0xff]  ;;  %v596_v44 = vpop.permute.xlu0 %595 }
 0x112   : > { %425 = vrot.lane.b32.xlu0 %v3662_v25, %s3043_s17  ;;  %423 = vrot.lane.b32.xlu1 %v3664_v8, %s3043_s17  ;;  %613 = vst.msk [vmem:[#allocation3] sm:$0xff] %vm396_vm4, %v596_v44 }
 0x113   : > { %v598_v40 = vpop.permute.xlu1 %597  ;;  %v3671_v29 = vld [vmem:[#allocation3 + $0x18] sm:$0xff] }
 0x114   : > { %614 = vst.msk [vmem:[#allocation3 + $0x8] sm:$0xff] %vm396_vm4, %v598_v40 }
 0x115   : > { %v3674_v57 = vld [vmem:[#allocation3 + $0x20] sm:$0xff]  ;;  %v600_v55 = vpop.permute.xlu0 %599 }
 0x116   : > { %427 = vrot.lane.b32.xlu1 %v3671_v29, %s3043_s17  ;;  %429 = vrot.lane.b32.xlu0 %v3674_v57, %s3043_s17  ;;  %615 = vst.msk [vmem:[#allocation3 + $0x10] sm:$0xff] %vm396_vm4, %v600_v55 }
 0x117   : > { %v602_v58 = vpop.permute.xlu1 %601  ;;  %v3681_v0 = vld [vmem:[#allocation3 + $0x28] sm:$0xff] }
 0x118   : > { %616 = vst.msk [vmem:[#allocation3 + $0x18] sm:$0xff] %vm396_vm4, %v602_v58 }
 0x119   : > { %v604_v34 = vpop.permute.xlu0 %603  ;;  %v3690_v52 = vld [vmem:[#allocation3] sm:$0xff] }
 0x11a   : > { %431 = vrot.lane.b32.xlu1 %v3681_v0, %s3043_s17  ;;  %481 = vrot.lane.b32.xlu0 %v3656_v49, %s3044_s4  ;;  %617 = vst.msk [vmem:[#allocation3 + $0x20] sm:$0xff] %vm396_vm4, %v604_v34 }
 0x11b   : > { %v606_v60 = vpop.permute.xlu1 %605  ;;  %v3696_v15 = vld [vmem:[#allocation3 + $0x8] sm:$0xff] }
 0x11c   : > { %618 = vst.msk [vmem:[#allocation3 + $0x28] sm:$0xff] %vm396_vm4, %v606_v60 }
 0x11d   : > { %v818_v9 = vpop.permute.xlu0 %817  ;;  %v3700_v22 = vld [vmem:[#allocation3 + $0x10] sm:$0xff] }
 0x11e   : > { %483 = vrot.lane.b32.xlu1 %v3664_v8, %s3044_s4  ;;  %485 = vrot.lane.b32.xlu0 %v3662_v25, %s3044_s4  ;;  %835 = vst.msk [vmem:[#allocation3] sm:$0xff] %vm396_vm4, %v818_v9 }
 0x11f   : > { %v820_v32 = vpop.permute.xlu1 %819  ;;  %v3706_v21 = vld [vmem:[#allocation3 + $0x18] sm:$0xff] }
 0x120   : > { %836 = vst.msk [vmem:[#allocation3 + $0x8] sm:$0xff] %vm396_vm4, %v820_v32 }
 0x121   : > { %v822_v1 = vpop.permute.xlu0 %821  ;;  %v3710_v41 = vld [vmem:[#allocation3 + $0x20] sm:$0xff] }
 0x122   : > { %487 = vrot.lane.b32.xlu1 %v3671_v29, %s3044_s4  ;;  %489 = vrot.lane.b32.xlu0 %v3674_v57, %s3044_s4  ;;  %837 = vst.msk [vmem:[#allocation3 + $0x10] sm:$0xff] %vm396_vm4, %v822_v1  ;;  %4689 = vst [vmem:[#allocation37_spill] sm:$0xff] %v3710_v41 }
 0x123   : > { %v824_v51 = vpop.permute.xlu1 %823  ;;  %v3716_v37 = vld [vmem:[#allocation3 + $0x28] sm:$0xff] }
 0x124   : > { %838 = vst.msk [vmem:[#allocation3 + $0x18] sm:$0xff] %vm396_vm4, %v824_v51  ;;  %4690 = vst [vmem:[#allocation38_spill] sm:$0xff] %v3716_v37 }
 0x125   : > { %v826_v16 = vpop.permute.xlu0 %825  ;;  %v3720_v35 = vld [vmem:[#allocation3] sm:$0xff] }
 0x126   : > { %491 = vrot.lane.b32.xlu1 %v3681_v0, %s3044_s4  ;;  %637 = vrot.lane.b32.xlu0 %v3690_v52, %s3043_s17  ;;  %839 = vst.msk [vmem:[#allocation3 + $0x20] sm:$0xff] %vm396_vm4, %v826_v16  ;;  %4691 = vst [vmem:[#allocation39_spill] sm:$0xff] %v3720_v35 }
 0x127   : > { %v828_v17 = vpop.permute.xlu1 %827  ;;  %v3726_v45 = vld [vmem:[#allocation3 + $0x8] sm:$0xff] }
 0x128   : > { %840 = vst.msk [vmem:[#allocation3 + $0x28] sm:$0xff] %vm396_vm4, %v828_v17 }
 0x129   : > { %v1040_v53 = vpop.permute.xlu0 %1039  ;;  %v3730_v3 = vld [vmem:[#allocation3 + $0x10] sm:$0xff] }
 0x12a   : > { %639 = vrot.lane.b32.xlu1 %v3696_v15, %s3043_s17  ;;  %641 = vrot.lane.b32.xlu0 %v3700_v22, %s3043_s17  ;;  %1057 = vst.msk [vmem:[#allocation3] sm:$0xff] %vm396_vm4, %v1040_v53 }
 0x12b   : > { %v1042_v13 = vpop.permute.xlu1 %1041  ;;  %v3736_v50 = vld [vmem:[#allocation3 + $0x18] sm:$0xff] }
 0x12c   : > { %1058 = vst.msk [vmem:[#allocation3 + $0x8] sm:$0xff] %vm396_vm4, %v1042_v13 }
 0x12d   : > { %v1044_v20 = vpop.permute.xlu0 %1043  ;;  %v3740_v11 = vld [vmem:[#allocation3 + $0x20] sm:$0xff] }
 0x12e   : > { %643 = vrot.lane.b32.xlu1 %v3706_v21, %s3043_s17  ;;  %645 = vrot.lane.b32.xlu0 %v3710_v41, %s3043_s17  ;;  %1059 = vst.msk [vmem:[#allocation3 + $0x10] sm:$0xff] %vm396_vm4, %v1044_v20  ;;  %4692 = vst [vmem:[#allocation40_spill] sm:$0xff] %v3740_v11  ;;  %v3817_v20 = vld [vmem:[%s233_s25] sm:$0xff] }
 0x12f   : > { %v1046_v47 = vpop.permute.xlu1 %1045  ;;  %v3746_v44 = vld [vmem:[#allocation3 + $0x28] sm:$0xff]  ;;  %1491 = vst.msk [vmem:[#allocation2 + $0x2] sm:$0xff] %vm299_vm3, %v3817_v20 }
 0x130   : > { %1060 = vst.msk [vmem:[#allocation3 + $0x18] sm:$0xff] %vm396_vm4, %v1046_v47  ;;  %4693 = vst [vmem:[#allocation41_spill] sm:$0xff] %v3746_v44  ;;  %v3825_v47 = vld [vmem:[%s233_s25 + $0x8] sm:$0xff] }
 0x131   : > { %v1048_v59 = vpop.permute.xlu0 %1047  ;;  %v3750_v55 = vld [vmem:[#allocation3] sm:$0xff]  ;;  %1492 = vst.msk [vmem:[#allocation2 + $0xa] sm:$0xff] %vm299_vm3, %v3825_v47 }
 0x132   : > { %647 = vrot.lane.b32.xlu1 %v3716_v37, %s3043_s17  ;;  %697 = vrot.lane.b32.xlu0 %v3690_v52, %s3044_s4  ;;  %1061 = vst.msk [vmem:[#allocation3 + $0x20] sm:$0xff] %vm396_vm4, %v1048_v59  ;;  %4694 = vst [vmem:[#allocation42_spill] sm:$0xff] %v3750_v55 }
 0x133   : > { %v1050_v40 = vpop.permute.xlu1 %1049  ;;  %v3756_v34 = vld [vmem:[#allocation3 + $0x8] sm:$0xff] }
 0x134   : > { %1062 = vst.msk [vmem:[#allocation3 + $0x28] sm:$0xff] %vm396_vm4, %v1050_v40  ;;  %v3835_v40 = vld [vmem:[%s233_s25 + $0x10] sm:$0xff] }
 0x135   : > { %v1262_v58 = vpop.permute.xlu0 %1261  ;;  %v3760_v9 = vld [vmem:[#allocation3 + $0x10] sm:$0xff]  ;;  %1493 = vst.msk [vmem:[#allocation2 + $0x1a] sm:$0xff] %vm299_vm3, %v3835_v40 }
 0x136   : > { %699 = vrot.lane.b32.xlu1 %v3696_v15, %s3044_s4  ;;  %701 = vrot.lane.b32.xlu0 %v3700_v22, %s3044_s4  ;;  %1279 = vst.msk [vmem:[#allocation3] sm:$0xff] %vm396_vm4, %v1262_v58  ;;  %v3843_v58 = vld [vmem:[%s233_s25 + $0x18] sm:$0xff] }
 0x137   : > { %v1264_v60 = vpop.permute.xlu1 %1263  ;;  %v3766_v1 = vld [vmem:[#allocation3 + $0x18] sm:$0xff]  ;;  %1494 = vst.msk [vmem:[#allocation2 + $0x22] sm:$0xff] %vm299_vm3, %v3843_v58 }
 0x138   : > { %1280 = vst.msk [vmem:[#allocation3 + $0x8] sm:$0xff] %vm396_vm4, %v1264_v60  ;;  %4695 = vst [vmem:[#allocation43_spill] sm:$0xff] %v3766_v1 }
 0x139   : > { %v1266_v32 = vpop.permute.xlu0 %1265  ;;  %v3770_v16 = vld [vmem:[#allocation3 + $0x20] sm:$0xff] }
 0x13a   : > { %703 = vrot.lane.b32.xlu1 %v3706_v21, %s3044_s4  ;;  %705 = vrot.lane.b32.xlu0 %v3710_v41, %s3044_s4  ;;  %1281 = vst.msk [vmem:[#allocation3 + $0x10] sm:$0xff] %vm396_vm4, %v1266_v32  ;;  %4696 = vst [vmem:[#allocation44_spill] sm:$0xff] %v3770_v16 }
 0x13b   : > { %v1268_v51 = vpop.permute.xlu1 %1267  ;;  %v3776_v53 = vld [vmem:[#allocation3 + $0x28] sm:$0xff] }
 0x13c   : > { %1282 = vst.msk [vmem:[#allocation3 + $0x18] sm:$0xff] %vm396_vm4, %v1268_v51  ;;  %4697 = vst [vmem:[#allocation45_spill] sm:$0xff] %v3776_v53 }
 0x13d   : > { %v1270_v17 = vpop.permute.xlu0 %1269  ;;  %v3833_v59 = vld [vmem:[#allocation3] sm:$0xff] }
 0x13e   : > { %707 = vrot.lane.b32.xlu1 %v3716_v37, %s3044_s4  ;;  %859 = vrot.lane.b32.xlu0 %v3720_v35, %s3043_s17  ;;  %1283 = vst.msk [vmem:[#allocation3 + $0x20] sm:$0xff] %vm396_vm4, %v1270_v17  ;;  %4698 = vst [vmem:[#allocation46_spill] sm:$0xff] %v3833_v59 }
 0x13f   : > { %v1272_v13 = vpop.permute.xlu1 %1271  ;;  %v3845_v60 = vld [vmem:[#allocation3 + $0x8] sm:$0xff] }
 0x140   : > { %1284 = vst.msk [vmem:[#allocation3 + $0x28] sm:$0xff] %vm396_vm4, %v1272_v13  ;;  %4699 = vst [vmem:[#allocation47_spill] sm:$0xff] %v3845_v60  ;;  %v3859_v13 = vld [vmem:[%s233_s25 + $0x28] sm:$0xff] }
 0x141   : > { %v3847_v32 = vld [vmem:[#allocation3 + $0x10] sm:$0xff]  ;;  %1496 = vst.msk [vmem:[#allocation2 + $0x3a] sm:$0xff] %vm299_vm3, %v3859_v13 }
 0x142   : > { %861 = vrot.lane.b32.xlu1 %v3726_v45, %s3043_s17  ;;  %863 = vrot.lane.b32.xlu0 %v3730_v3, %s3043_s17  ;;  %4700 = vst [vmem:[#allocation48_spill] sm:$0xff] %v3847_v32 }
 0x143   : > { %v3855_v51 = vld [vmem:[#allocation3 + $0x18] sm:$0xff] }
 0x144   : > { %4701 = vst [vmem:[#allocation49_spill] sm:$0xff] %v3855_v51 }
 0x145   : > { %v3857_v17 = vld [vmem:[#allocation3 + $0x20] sm:$0xff] }
 0x146   : > { %865 = vrot.lane.b32.xlu1 %v3736_v50, %s3043_s17  ;;  %867 = vrot.lane.b32.xlu0 %v3740_v11, %s3043_s17  ;;  %4702 = vst [vmem:[#allocation50_spill] sm:$0xff] %v3857_v17 }
 0x147   : > { %v3871_v33 = vld [vmem:[#allocation3 + $0x28] sm:$0xff] }
 0x148   : > { %4703 = vst [vmem:[#allocation51_spill] sm:$0xff] %v3871_v33 }
 0x14a   : > { %869 = vrot.lane.b32.xlu1 %v3746_v44, %s3043_s17  ;;  %919 = vrot.lane.b32.xlu0 %v3720_v35, %s3044_s4 }
 0x14e   : > { %921 = vrot.lane.b32.xlu1 %v3726_v45, %s3044_s4  ;;  %923 = vrot.lane.b32.xlu0 %v3730_v3, %s3044_s4 }
 0x152   : > { %925 = vrot.lane.b32.xlu1 %v3736_v50, %s3044_s4  ;;  %927 = vrot.lane.b32.xlu0 %v3740_v11, %s3044_s4 }
 0x156   : > { %929 = vrot.lane.b32.xlu1 %v3746_v44, %s3044_s4  ;;  %1081 = vrot.lane.b32.xlu0 %v3750_v55, %s3043_s17 }
 0x15a   : > { %1083 = vrot.lane.b32.xlu1 %v3756_v34, %s3043_s17  ;;  %1085 = vrot.lane.b32.xlu0 %v3760_v9, %s3043_s17 }
 0x15e   : > { %1087 = vrot.lane.b32.xlu1 %v3766_v1, %s3043_s17  ;;  %1089 = vrot.lane.b32.xlu0 %v3770_v16, %s3043_s17 }
 0x162   : > { %1091 = vrot.lane.b32.xlu1 %v3776_v53, %s3043_s17  ;;  %1141 = vrot.lane.b32.xlu0 %v3750_v55, %s3044_s4 }
 0x166   : > { %1143 = vrot.lane.b32.xlu1 %v3756_v34, %s3044_s4  ;;  %1145 = vrot.lane.b32.xlu0 %v3760_v9, %s3044_s4 }
 0x16a   : > { %1147 = vrot.lane.b32.xlu1 %v3766_v1, %s3044_s4  ;;  %1149 = vrot.lane.b32.xlu0 %v3770_v16, %s3044_s4 }
 0x16e   : > { %1151 = vrot.lane.b32.xlu1 %v3776_v53, %s3044_s4  ;;  %1303 = vrot.lane.b32.xlu0 %v3833_v59, %s3043_s17 }
 0x172   : > { %1305 = vrot.lane.b32.xlu1 %v3845_v60, %s3043_s17  ;;  %1307 = vrot.lane.b32.xlu0 %v3847_v32, %s3043_s17 }
 0x176   : > { %1309 = vrot.lane.b32.xlu1 %v3855_v51, %s3043_s17  ;;  %1311 = vrot.lane.b32.xlu0 %v3857_v17, %s3043_s17 }
 0x17a   : > { %1313 = vrot.lane.b32.xlu1 %v3871_v33, %s3043_s17  ;;  %1363 = vrot.lane.b32.xlu0 %v3833_v59, %s3044_s4 }
 0x17e   : > { %1365 = vrot.lane.b32.xlu1 %v3845_v60, %s3044_s4  ;;  %1367 = vrot.lane.b32.xlu0 %v3847_v32, %s3044_s4 }
 0x180   : > { %v422_v56 = vpop.permute.xlu0 %421 }
 0x181   : > { %v439_v27 = vadd.f32 %v422_v56, %v3656_v49 }
 0x182   : > { %1369 = vrot.lane.b32.xlu1 %v3855_v51, %s3044_s4 }
 0x183   : > { %v445_v7 = vmul.f32 0.23388076, %v439_v27 }
 0x184   : > { %v424_v6 = vpop.permute.xlu1 %423  ;;  %v426_v54 = vpop.permute.xlu0 %425 }
 0x185   : > { %v440_v42 = vadd.f32 %v424_v6, %v3664_v8  ;;  %v441_v38 = vadd.f32 %v426_v54, %v3662_v25  ;;  %457 = vrot.lane.b32.xlu0 %v445_v7, %s3045_s11 }
 0x187   : > { %v446_v28 = vmul.f32 0.23388076, %v440_v42  ;;  %v447_v19 = vmul.f32 0.23388076, %v441_v38 }
 0x188   : > { %v428_v39 = vpop.permute.xlu1 %427  ;;  %v430_v12 = vpop.permute.xlu0 %429 }
 0x189   : > { %v442_v61 = vadd.f32 %v428_v39, %v3671_v29  ;;  %v443_v56 = vadd.f32 %v430_v12, %v3674_v57  ;;  %459 = vrot.lane.b32.xlu1 %v446_v28, %s3045_s11  ;;  %461 = vrot.lane.b32.xlu0 %v447_v19, %s3045_s11 }
 0x18b   : > { %v448_v27 = vmul.f32 0.23388076, %v442_v61  ;;  %v449_v46 = vmul.f32 0.23388076, %v443_v56 }
 0x18c   : > { %v432_v6 = vpop.permute.xlu1 %431  ;;  %v3891_v14 = vpop.permute.xlu0 %481 }
 0x18d   : > { %v444_v54 = vadd.f32 %v432_v6, %v3681_v0  ;;  %463 = vrot.lane.b32.xlu1 %v448_v27, %s3045_s11  ;;  %465 = vrot.lane.b32.xlu0 %v449_v46, %s3045_s11 }
 0x18f   : > { %v450_v38 = vmul.f32 0.23388076, %v444_v54 }
 0x190   : > { %v3896_v42 = vpop.permute.xlu1 %483  ;;  %v3898_v39 = vpop.permute.xlu0 %485 }
 0x191   : > { %467 = vrot.lane.b32.xlu1 %v450_v38, %s3045_s11 }
 0x194   : > { %v3901_v12 = vpop.permute.xlu1 %487  ;;  %v3903_v61 = vpop.permute.xlu0 %489 }
 0x198   : > { %v3905_v19 = vpop.permute.xlu1 %491  ;;  %v638_v28 = vpop.permute.xlu0 %637 }
 0x199   : > { %v655_v7 = vadd.f32 %v638_v28, %v3690_v52 }
 0x19b   : > { %v661_v56 = vmul.f32 0.23388076, %v655_v7 }
 0x19c   : > { %v640_v27 = vpop.permute.xlu1 %639  ;;  %v642_v6 = vpop.permute.xlu0 %641 }
 0x19d   : > { %v656_v46 = vadd.f32 %v640_v27, %v3696_v15  ;;  %v657_v54 = vadd.f32 %v642_v6, %v3700_v22  ;;  %673 = vrot.lane.b32.xlu0 %v661_v56, %s3045_s11 }
 0x19f   : > { %v662_v30 = vmul.f32 0.23388076, %v656_v46  ;;  %v663_v38 = vmul.f32 0.23388076, %v657_v54 }
 0x1a0   : > { %v644_v31 = vpop.permute.xlu1 %643  ;;  %v646_v36 = vpop.permute.xlu0 %645 }
 0x1a1   : > { %v658_v63 = vadd.f32 %v644_v31, %v3706_v21  ;;  %v659_v18 = vadd.f32 %v646_v36, %v3710_v41  ;;  %675 = vrot.lane.b32.xlu1 %v662_v30, %s3045_s11  ;;  %677 = vrot.lane.b32.xlu0 %v663_v38, %s3045_s11 }
 0x1a3   : > { %v664_v28 = vmul.f32 0.23388076, %v658_v63  ;;  %v665_v7 = vmul.f32 0.23388076, %v659_v18 }
 0x1a4   : > { %v648_v23 = vpop.permute.xlu1 %647  ;;  %v3915_v27 = vpop.permute.xlu0 %697 }
 0x1a5   : > { %v660_v6 = vadd.f32 %v648_v23, %v3716_v37  ;;  %679 = vrot.lane.b32.xlu1 %v664_v28, %s3045_s11  ;;  %681 = vrot.lane.b32.xlu0 %v665_v7, %s3045_s11 }
 0x1a7   : > { %v666_v56 = vmul.f32 0.23388076, %v660_v6 }
 0x1a8   : > { %v3920_v46 = vpop.permute.xlu1 %699  ;;  %v3922_v31 = vpop.permute.xlu0 %701 }
 0x1a9   : > { %683 = vrot.lane.b32.xlu1 %v666_v56, %s3045_s11 }
 0x1ac   : > { %v3925_v36 = vpop.permute.xlu1 %703  ;;  %v3927_v63 = vpop.permute.xlu0 %705 }
 0x1ad   : > { %4704 = vst [vmem:[#allocation52_spill] sm:$0xff] %v3925_v36  ;;  %4705 = vst [vmem:[#allocation53_spill] sm:$0xff] %v3927_v63 }
 0x1b0   : > { %v3929_v18 = vpop.permute.xlu1 %707  ;;  %v860_v30 = vpop.permute.xlu0 %859 }
 0x1b1   : > { %4706 = vst [vmem:[#allocation54_spill] sm:$0xff] %v3929_v18  ;;  %v877_v23 = vadd.f32 %v860_v30, %v3720_v35 }
 0x1b3   : > { %v883_v54 = vmul.f32 0.23388076, %v877_v23 }
 0x1b4   : > { %v862_v38 = vpop.permute.xlu1 %861  ;;  %v864_v28 = vpop.permute.xlu0 %863 }
 0x1b5   : > { %v878_v7 = vadd.f32 %v862_v38, %v3726_v45  ;;  %v879_v6 = vadd.f32 %v864_v28, %v3730_v3  ;;  %895 = vrot.lane.b32.xlu0 %v883_v54, %s3045_s11 }
 0x1b7   : > { %v884_v37 = vmul.f32 0.23388076, %v878_v7  ;;  %v885_v56 = vmul.f32 0.23388076, %v879_v6 }
 0x1b8   : > { %v866_v41 = vpop.permute.xlu1 %865  ;;  %v868_v36 = vpop.permute.xlu0 %867 }
 0x1b9   : > { %v880_v63 = vadd.f32 %v866_v41, %v3736_v50  ;;  %v881_v18 = vadd.f32 %v868_v36, %v3740_v11  ;;  %897 = vrot.lane.b32.xlu1 %v884_v37, %s3045_s11  ;;  %899 = vrot.lane.b32.xlu0 %v885_v56, %s3045_s11 }
 0x1bb   : > { %v886_v30 = vmul.f32 0.23388076, %v880_v63  ;;  %v887_v23 = vmul.f32 0.23388076, %v881_v18 }
 0x1bc   : > { %v870_v35 = vpop.permute.xlu1 %869  ;;  %v3939_v38 = vpop.permute.xlu0 %919 }
 0x1bd   : > { %v882_v28 = vadd.f32 %v870_v35, %v3746_v44  ;;  %901 = vrot.lane.b32.xlu1 %v886_v30, %s3045_s11  ;;  %903 = vrot.lane.b32.xlu0 %v887_v23, %s3045_s11 }
 0x1bf   : > { %v888_v54 = vmul.f32 0.23388076, %v882_v28 }
 0x1c0   : > { %v3944_v7 = vpop.permute.xlu1 %921  ;;  %v3946_v41 = vpop.permute.xlu0 %923 }
 0x1c1   : > { %905 = vrot.lane.b32.xlu1 %v888_v54, %s3045_s11 }
 0x1c4   : > { %v3949_v37 = vpop.permute.xlu1 %925  ;;  %v3951_v36 = vpop.permute.xlu0 %927 }
 0x1c5   : > { %4707 = vst [vmem:[#allocation55_spill] sm:$0xff] %v3949_v37  ;;  %4708 = vst [vmem:[#allocation56_spill] sm:$0xff] %v3951_v36 }
 0x1c8   : > { %v3953_v63 = vpop.permute.xlu1 %929  ;;  %v1082_v18 = vpop.permute.xlu0 %1081 }
 0x1c9   : > { %4709 = vst [vmem:[#allocation57_spill] sm:$0xff] %v3953_v63  ;;  %v1099_v35 = vadd.f32 %v1082_v18, %v3750_v55 }
 0x1cb   : > { %v1105_v6 = vmul.f32 0.23388076, %v1099_v35 }
 0x1cc   : > { %v1084_v56 = vpop.permute.xlu1 %1083  ;;  %v1086_v30 = vpop.permute.xlu0 %1085 }
 0x1cd   : > { %v1100_v23 = vadd.f32 %v1084_v56, %v3756_v34  ;;  %v1101_v28 = vadd.f32 %v1086_v30, %v3760_v9  ;;  %1117 = vrot.lane.b32.xlu0 %v1105_v6, %s3045_s11 }
 0x1cf   : > { %v1106_v44 = vmul.f32 0.23388076, %v1100_v23  ;;  %v1107_v54 = vmul.f32 0.23388076, %v1101_v28 }
 0x1d0   : > { %v1088_v11 = vpop.permute.xlu1 %1087  ;;  %v1090_v37 = vpop.permute.xlu0 %1089 }
 0x1d1   : > { %v1102_v36 = vadd.f32 %v1088_v11, %v3766_v1  ;;  %v1103_v63 = vadd.f32 %v1090_v37, %v3770_v16  ;;  %1119 = vrot.lane.b32.xlu1 %v1106_v44, %s3045_s11  ;;  %1121 = vrot.lane.b32.xlu0 %v1107_v54, %s3045_s11 }
 0x1d3   : > { %v1108_v18 = vmul.f32 0.23388076, %v1102_v36  ;;  %v1109_v35 = vmul.f32 0.23388076, %v1103_v63 }
 0x1d4   : > { %v1092_v55 = vpop.permute.xlu1 %1091  ;;  %v3963_v56 = vpop.permute.xlu0 %1141 }
 0x1d5   : > { %v1104_v30 = vadd.f32 %v1092_v55, %v3776_v53  ;;  %1123 = vrot.lane.b32.xlu1 %v1108_v18, %s3045_s11  ;;  %1125 = vrot.lane.b32.xlu0 %v1109_v35, %s3045_s11 }
 0x1d7   : > { %v1110_v6 = vmul.f32 0.23388076, %v1104_v30 }
 0x1d8   : > { %v3968_v23 = vpop.permute.xlu1 %1143  ;;  %v3970_v11 = vpop.permute.xlu0 %1145 }
 0x1d9   : > { %1127 = vrot.lane.b32.xlu1 %v1110_v6, %s3045_s11  ;;  %1371 = vrot.lane.b32.xlu0 %v3857_v17, %s3044_s4  ;;  %v1497_v6 = vld [vmem:[#allocation2 + $0x1] sm:$0xff] }
 0x1dc   : > { %v3975_v44 = vpop.permute.xlu1 %1147  ;;  %v3977_v37 = vpop.permute.xlu0 %1149 }
 0x1dd   : > { %4710 = vst [vmem:[#allocation58_spill] sm:$0xff] %v3975_v44  ;;  %4711 = vst [vmem:[#allocation59_spill] sm:$0xff] %v3977_v37  ;;  %1373 = vrot.lane.b32.xlu1 %v3871_v33, %s3044_s4 }
 0x1e0   : > { %v3981_v55 = vpop.permute.xlu1 %1151  ;;  %v1304_v36 = vpop.permute.xlu0 %1303 }
 0x1e1   : > { %4712 = vst [vmem:[#allocation60_spill] sm:$0xff] %v3981_v55  ;;  %v1321_v63 = vadd.f32 %v1304_v36, %v3833_v59  ;;  %v1503_v36 = vadd.f32 %v1497_v6, %v3817_v20  ;;  %v1511_v20 = vld [vmem:[#allocation2 + $0x1b] sm:$0xff]  ;;  %v1501_v6 = vld [vmem:[#allocation2 + $0x31] sm:$0xff]  ;;  %v4740_v59 = vld [vmem:[#allocation22_spill] sm:$0xff] }
 0x1e3   : > { %v1327_v28 = vmul.f32 0.23388076, %v1321_v63  ;;  %v1498_v63 = vld [vmem:[#allocation2 + $0x9] sm:$0xff] }
 0x1e4   : > { %v1306_v54 = vpop.permute.xlu1 %1305  ;;  %v1308_v18 = vpop.permute.xlu0 %1307 }
 0x1e5   : > { %v1322_v35 = vadd.f32 %v1306_v54, %v3845_v60  ;;  %v1323_v30 = vadd.f32 %v1308_v18, %v3847_v32  ;;  %1339 = vrot.lane.b32.xlu0 %v1327_v28, %s3045_s11  ;;  %v1509_v54 = vld [vmem:[#allocation2 + $0x3] sm:$0xff]  ;;  %v1499_v18 = vld [vmem:[#allocation2 + $0x19] sm:$0xff] }
 0x1e7   : > { %v1328_v53 = vmul.f32 0.23388076, %v1322_v35  ;;  %v1329_v37 = vmul.f32 0.23388076, %v1323_v30  ;;  %v1504_v35 = vadd.f32 %v1498_v63, %v3825_v47 }
 0x1e8   : > { %v1310_v16 = vpop.permute.xlu1 %1309  ;;  %v1312_v44 = vpop.permute.xlu0 %1311 }
 0x1e9   : > { %v1324_v1 = vadd.f32 %v1310_v16, %v3855_v51  ;;  %v1325_v55 = vadd.f32 %v1312_v44, %v3857_v17  ;;  %1341 = vrot.lane.b32.xlu1 %v1328_v53, %s3045_s11  ;;  %1343 = vrot.lane.b32.xlu0 %v1329_v37, %s3045_s11  ;;  %v3996_v16 = vadd.f32 %v1509_v54, %v1503_v36  ;;  %v1510_v53 = vld [vmem:[#allocation2 + $0xb] sm:$0xff]  ;;  %v1500_v37 = vld [vmem:[#allocation2 + $0x21] sm:$0xff]  ;;  %v1513_v36 = vld [vmem:[#allocation2 + $0x33] sm:$0xff] }
 0x1ea   : > { %v1505_v44 = vadd.f32 %v1499_v18, %v3835_v40  ;;  %v1502_v40 = vld [vmem:[#allocation2 + $0x39] sm:$0xff] }
 0x1eb   : > { %v1330_v32 = vmul.f32 0.23388076, %v1324_v1  ;;  %v1331_v28 = vmul.f32 0.23388076, %v1325_v55  ;;  %4713 = vst [vmem:[#allocation61_spill] sm:$0xff] %v3996_v16  ;;  %v3999_v1 = vadd.f32 %v1510_v53, %v1504_v35  ;;  %v1512_v55 = vld [vmem:[#allocation2 + $0x23] sm:$0xff]  ;;  %v1508_v54 = vadd.f32 %v1502_v40, %v3859_v13 }
 0x1ec   : > { %v1314_v60 = vpop.permute.xlu1 %1313  ;;  %v4004_v47 = vadd.f32 %v1511_v20, %v1505_v44  ;;  %v1514_v18 = vld [vmem:[#allocation2 + $0x3b] sm:$0xff] }
 0x1ed   : > { %v1326_v30 = vadd.f32 %v1314_v60, %v3871_v33  ;;  %1345 = vrot.lane.b32.xlu1 %v1330_v32, %s3045_s11  ;;  %1347 = vrot.lane.b32.xlu0 %v1331_v28, %s3045_s11  ;;  %4714 = vst [vmem:[#allocation62_spill] sm:$0xff] %v3999_v1  ;;  %v1506_v60 = vadd.f32 %v1500_v37, %v3843_v58  ;;  %v4025_v58 = vpop.permute.xlu0 %1363  ;;  %v4730_v33 = vld [vmem:[#allocation17_spill] sm:$0xff] }
 0x1ee   : > { %4715 = vst [vmem:[#allocation63_spill] sm:$0xff] %v4004_v47  ;;  %v1507_v32 = vadd.f32 %v1501_v6, %v3863_v24  ;;  %v4021_v24 = vadd.f32 %v1514_v18, %v1508_v54  ;;  %4719 = vst [vmem:[#allocation67_spill] sm:$0xff] %v4025_v58  ;;  %v499_v54 = vadd.f32 %v3891_v14, %v3656_v49  ;;  %v405_v49 = vmul.f32 0.2920817, %v3416_v48  ;;  %v4738_v58 = vld [vmem:[#allocation21_spill] sm:$0xff] }
 0x1ef   : > { %v1332_v17 = vmul.f32 0.23388076, %v1326_v30  ;;  %v4012_v63 = vadd.f32 %v1512_v55, %v1506_v60  ;;  %v500_v18 = vadd.f32 %v3896_v42, %v3664_v8  ;;  %v503_v14 = vadd.f32 %v3903_v61, %v3674_v57 }
 0x1f0   : > { %4718 = vst [vmem:[#allocation66_spill] sm:$0xff] %v4021_v24  ;;  %v4027_v28 = vpop.permute.xlu1 %1365  ;;  %v406_v8 = vmul.f32 0.2920817, %v3436_v62  ;;  %v4082_v42 = vmul.f32 0.2920817, %v3479_v4  ;;  %v715_v57 = vadd.f32 %v3915_v27, %v3690_v52  ;;  %v716_v48 = vadd.f32 %v3920_v46, %v3696_v15  ;;  %v4725_v52 = vld [vmem:[#allocation52_spill] sm:$0xff] }
 0x1f1   : > { %1349 = vrot.lane.b32.xlu1 %v1332_v17, %s3045_s11  ;;  %1527 = vrot.lane.b32.xlu0 %v3996_v16, %s3042_s22  ;;  %4716 = vst [vmem:[#allocation64_spill] sm:$0xff] %v4012_v63  ;;  %v4014_v17 = vadd.f32 %v1513_v36, %v1507_v32  ;;  %4720 = vst [vmem:[#allocation68_spill] sm:$0xff] %v4027_v28  ;;  %v4029_v35 = vpop.permute.xlu0 %1367  ;;  %v4089_v62 = vmul.f32 0.2920817, %v3483_v26  ;;  %v718_v27 = vadd.f32 %v4725_v52, %v3706_v21  ;;  %v4728_v46 = vld [vmem:[#allocation37_spill] sm:$0xff]  ;;  %v4733_v21 = vld [vmem:[#allocation38_spill] sm:$0xff] }
 0x1f2   : > { %4721 = vst [vmem:[#allocation69_spill] sm:$0xff] %v4029_v35  ;;  %v4734_v52 = vld [vmem:[#allocation54_spill] sm:$0xff] }
 0x1f3   : > { %4717 = vst [vmem:[#allocation65_spill] sm:$0xff] %v4014_v17 }
 0x1f4   : > { %v4031_v30 = vpop.permute.xlu1 %1369 }
 0x1f5   : > { %1529 = vrot.lane.b32.xlu1 %v3999_v1, %s3042_s22  ;;  %1531 = vrot.lane.b32.xlu0 %v4004_v47, %s3042_s22  ;;  %4722 = vst [vmem:[#allocation70_spill] sm:$0xff] %v4031_v30  ;;  %v501_v47 = vadd.f32 %v3898_v39, %v3662_v25  ;;  %v502_v1 = vadd.f32 %v3901_v12, %v3671_v29  ;;  %v505_v29 = vmul.f32 0.120078385, %v499_v54  ;;  %v4726_v54 = vld [vmem:[#allocation16_spill] sm:$0xff]  ;;  %v4117_v30 = vmul.f32 0.120078385, %v716_v48 }
 0x1f6   : > { %v504_v25 = vadd.f32 %v3905_v19, %v3681_v0  ;;  %v506_v0 = vmul.f32 0.120078385, %v500_v18  ;;  %v4096_v19 = vmul.f32 0.120078385, %v503_v14  ;;  %v4101_v15 = vmul.f32 0.2920817, %v4726_v54 }
 0x1f7   : > { %v4033_v13 = vpop.permute.xlu0 %457  ;;  %v507_v39 = vmul.f32 0.120078385, %v501_v47  ;;  %v508_v4 = vmul.f32 0.120078385, %v502_v1  ;;  %v4729_v47 = vld [vmem:[#allocation53_spill] sm:$0xff]  ;;  %v720_v54 = vadd.f32 %v4734_v52, %v4733_v21  ;;  %v4737_v48 = vld [vmem:[#allocation20_spill] sm:$0xff] }
 0x1f8   : > { %v4103_v26 = vmul.f32 0.120078385, %v504_v25  ;;  %v719_v18 = vadd.f32 %v4729_v47, %v4728_v46  ;;  %v4115_v14 = vmul.f32 0.120078385, %v715_v57  ;;  %v4735_v25 = vld [vmem:[#allocation19_spill] sm:$0xff]  ;;  %v938_v47 = vadd.f32 %v3944_v7, %v3726_v45 }
 0x1f9   : > { %1533 = vrot.lane.b32.xlu1 %v4012_v63, %s3042_s22  ;;  %1535 = vrot.lane.b32.xlu0 %v4014_v17, %s3042_s22  ;;  %v404_v17 = vmul.f32 0.2920817, %v3428_v10  ;;  %v4079_v10 = vmul.f32 0.2920817, %v3464_v2  ;;  %v4724_v2 = vld [vmem:[#allocation15_spill] sm:$0xff] }
 0x1fa   : > { %v621_v12 = vmul.f32 0.2920817, %v4724_v2  ;;  %4727 = vst [vmem:[#allocation15_spill] sm:$0xff] %v4103_v26  ;;  %v4122_v51 = vmul.f32 0.2920817, %v4735_v25  ;;  %v4736_v46 = vld [vmem:[#allocation39_spill] sm:$0xff] }
 0x1fb   : > { %v4035_v53 = vpop.permute.xlu1 %459  ;;  %v4037_v44 = vpop.permute.xlu0 %461  ;;  %v4130_v57 = vmul.f32 0.120078385, %v718_v27  ;;  %v4133_v28 = vmul.f32 0.2920817, %v4737_v48  ;;  %v843_v21 = vmul.f32 0.2920817, %v4738_v58 }
 0x1fc   : > { %v4136_v52 = vmul.f32 0.120078385, %v719_v18  ;;  %v4742_v45 = vld [vmem:[#allocation23_spill] sm:$0xff]  ;;  %v4746_v27 = vld [vmem:[#allocation56_spill] sm:$0xff]  ;;  %v4749_v18 = vld [vmem:[#allocation25_spill] sm:$0xff] }
 0x1fd   : > { %1537 = vrot.lane.b32.xlu1 %v4021_v24, %s3042_s22  ;;  %v403_v24 = vmul.f32 0.2920817, %v3410_v5  ;;  %v4076_v5 = vmul.f32 0.2920817, %v3444_v43  ;;  %v717_v43 = vadd.f32 %v3922_v31, %v3700_v22  ;;  %v4108_v22 = vmul.f32 0.2920817, %v4730_v33 }
 0x1fe   : > { %v4731_v31 = vld [vmem:[#allocation18_spill] sm:$0xff]  ;;  %v937_v33 = vadd.f32 %v3939_v38, %v4736_v46  ;;  %v4141_v38 = vmul.f32 0.2920817, %v4740_v59  ;;  %v4146_v7 = vmul.f32 0.2920817, %v4742_v45  ;;  %v4747_v26 = vld [vmem:[#allocation24_spill] sm:$0xff] }
 0x1ff   : > { %v4039_v20 = vpop.permute.xlu1 %463  ;;  %v4041_v37 = vpop.permute.xlu0 %465  ;;  %v4111_v2 = vmul.f32 0.2920817, %v4731_v31  ;;  %v723_v35 = vmul.f32 0.120078385, %v717_v43  ;;  %v939_v31 = vadd.f32 %v3946_v41, %v3730_v3  ;;  %v4739_v43 = vld [vmem:[#allocation55_spill] sm:$0xff]  ;;  %v4745_v41 = vld [vmem:[#allocation40_spill] sm:$0xff] }
 0x200   : > { %v940_v25 = vadd.f32 %v4739_v43, %v3736_v50  ;;  %4743 = vst [vmem:[#allocation37_spill] sm:$0xff] %v4146_v7  ;;  %v4148_v3 = vmul.f32 0.120078385, %v720_v54  ;;  %v941_v48 = vadd.f32 %v4746_v27, %v4745_v41  ;;  %v4153_v58 = vmul.f32 0.2920817, %v4747_v26  ;;  %v4751_v45 = vld [vmem:[#allocation41_spill] sm:$0xff] }
 0x201   : > { %4732 = vst [vmem:[#allocation52_spill] sm:$0xff] %v4111_v2  ;;  %v4156_v2 = vmul.f32 0.120078385, %v937_v33  ;;  %v4158_v50 = vmul.f32 0.120078385, %v938_v47  ;;  %v4752_v7 = vld [vmem:[#allocation57_spill] sm:$0xff]  ;;  %v476_v47 = vadd.f32 %v4035_v53, %v404_v17 }
 0x202   : > { %4744 = vst [vmem:[#allocation53_spill] sm:$0xff] %v4148_v3  ;;  %4748 = vst [vmem:[#allocation17_spill] sm:$0xff] %v4153_v58  ;;  %v4160_v59 = vmul.f32 0.120078385, %v939_v31  ;;  %v942_v54 = vadd.f32 %v4752_v7, %v4751_v45  ;;  %v475_v3 = vadd.f32 %v4033_v13, %v403_v24  ;;  %v4754_v27 = vld [vmem:[#allocation27_spill] sm:$0xff]  ;;  %v477_v31 = vadd.f32 %v4037_v44, %v405_v49  ;;  %v4763_v17 = vld [vmem:[#allocation60_spill] sm:$0xff] }
 0x203   : > { %v4043_v6 = vpop.permute.xlu1 %467  ;;  %4750 = vst [vmem:[#allocation18_spill] sm:$0xff] %v4158_v50  ;;  %v1065_v26 = vmul.f32 0.2920817, %v4754_v27  ;;  %v4169_v58 = vmul.f32 0.120078385, %v940_v25  ;;  %v1160_v7 = vadd.f32 %v3968_v23, %v3756_v34  ;;  %v1161_v24 = vadd.f32 %v3970_v11, %v3760_v9  ;;  %v4759_v25 = vld [vmem:[#allocation58_spill] sm:$0xff] }
 0x204   : > { %v4175_v50 = vmul.f32 0.120078385, %v941_v48  ;;  %v478_v13 = vadd.f32 %v4039_v20, %v406_v8  ;;  %v4760_v27 = vld [vmem:[#allocation44_spill] sm:$0xff]  ;;  %v4191_v34 = vmul.f32 0.120078385, %v942_v54  ;;  %v4193_v23 = vadd.f32 %v505_v29, %v475_v3  ;;  %v4766_v9 = vld [vmem:[#allocation29_spill] sm:$0xff] }
 0x205   : > { %4755 = vst [vmem:[#allocation38_spill] sm:$0xff] %v4169_v58  ;;  %v4761_v58 = vld [vmem:[#allocation59_spill] sm:$0xff]  ;;  %v4765_v48 = vld [vmem:[#allocation28_spill] sm:$0xff]  ;;  %v1067_v11 = vmul.f32 0.2920817, %v4766_v9  ;;  %v4767_v20 = vld [vmem:[#allocation30_spill] sm:$0xff]  ;;  %v479_v54 = vadd.f32 %v4041_v37, %v4076_v5 }
 0x206   : > { %4757 = vst [vmem:[#allocation54_spill] sm:$0xff] %v4175_v50  ;;  %v1066_v50 = vmul.f32 0.2920817, %v4765_v48  ;;  %v1068_v8 = vmul.f32 0.2920817, %v4767_v20 }
 0x20a   : > { %v4772_v20 = vld [vmem:[#allocation18_spill] sm:$0xff] }
 0x20f   : > { %v4045_v60 = vpop.permute.xlu0 %673 }
 0x210   : > { %v691_v9 = vadd.f32 %v4045_v60, %v4082_v42 }
 0x213   : > { %v4047_v32 = vpop.permute.xlu1 %675  ;;  %v4049_v55 = vpop.permute.xlu0 %677 }
 0x217   : > { %v4051_v36 = vpop.permute.xlu1 %679  ;;  %v4053_v40 = vpop.permute.xlu0 %681 }
 0x21b   : > { %v4063_v16 = vpop.permute.xlu1 %683 }
 0x21c   : > { %4723 = vst [vmem:[#allocation71_spill] sm:$0xff] %v4063_v16  ;;  %v1063_v16 = vmul.f32 0.2920817, %v4749_v18  ;;  %v4756_v18 = vld [vmem:[#allocation42_spill] sm:$0xff] }
 0x21d   : > { %v1159_v33 = vadd.f32 %v3963_v56, %v4756_v18  ;;  %v1163_v56 = vadd.f32 %v4761_v58, %v4760_v27  ;;  %v4762_v18 = vld [vmem:[#allocation45_spill] sm:$0xff]  ;;  %v4199_v58 = vadd.f32 %v507_v39, %v477_v31  ;;  %v693_v27 = vadd.f32 %v4049_v55, %v621_v12 }
 0x21e   : > { %v1164_v53 = vadd.f32 %v4763_v17, %v4762_v18  ;;  %v1166_v18 = vmul.f32 0.120078385, %v1160_v7  ;;  %v1167_v17 = vmul.f32 0.120078385, %v1161_v24  ;;  %v1399_v39 = vmul.f32 %v4193_v23, %v4193_v23 }
 0x21f   : > { %v1169_v3 = vmul.f32 0.120078385, %v1163_v56  ;;  %v692_v55 = vadd.f32 %v4047_v32, %v4089_v62  ;;  %v694_v12 = vadd.f32 %v4051_v36, %v4101_v15  ;;  %v1401_v5 = vmul.f32 %v4199_v58, %v4199_v58  ;;  %v4771_v56 = vld [vmem:[#allocation37_spill] sm:$0xff] }
 0x220   : > { %v1170_v48 = vmul.f32 0.120078385, %v1164_v53  ;;  %v4223_v31 = vadd.f32 %v4096_v19, %v479_v54  ;;  %v695_v32 = vadd.f32 %v4053_v40, %v4108_v22  ;;  %v480_v62 = vadd.f32 %v4043_v6, %v4079_v10  ;;  %v4773_v54 = vld [vmem:[#allocation53_spill] sm:$0xff] }
 0x221   : > { %v4231_v15 = vadd.f32 %v4115_v14, %v691_v9  ;;  %v4236_v19 = vadd.f32 %v4117_v30, %v692_v55  ;;  %v4239_v24 = vadd.f32 %v4130_v57, %v694_v12  ;;  %v4774_v9 = vld [vmem:[#allocation38_spill] sm:$0xff] }
 0x222   : > { %v4775_v55 = vld [vmem:[#allocation54_spill] sm:$0xff] }
 0x227   : > { %v4065_v63 = vpop.permute.xlu0 %895 }
 0x22b   : > { %v4094_v61 = vpop.permute.xlu1 %897  ;;  %v4113_v1 = vpop.permute.xlu0 %899 }
 0x22c   : > { %v915_v36 = vadd.f32 %v4113_v1, %v843_v21  ;;  %v914_v10 = vadd.f32 %v4094_v61, %v4133_v28  ;;  %v4769_v21 = vld [vmem:[#allocation71_spill] sm:$0xff] }
 0x22f   : > { %v4143_v46 = vpop.permute.xlu1 %901  ;;  %v4162_v43 = vpop.permute.xlu0 %903 }
 0x230   : > { %4741 = vst [vmem:[#allocation16_spill] sm:$0xff] %v4143_v46  ;;  %v4753_v46 = vld [vmem:[#allocation26_spill] sm:$0xff]  ;;  %v917_v28 = vadd.f32 %v4162_v43, %v4771_v56 }
 0x231   : > { %v1064_v41 = vmul.f32 0.2920817, %v4753_v46  ;;  %v4758_v46 = vld [vmem:[#allocation43_spill] sm:$0xff] }
 0x232   : > { %v1162_v45 = vadd.f32 %v4759_v25, %v4758_v46  ;;  %v1165_v46 = vmul.f32 0.120078385, %v1159_v33  ;;  %v4197_v25 = vadd.f32 %v506_v0, %v476_v47  ;;  %v4218_v47 = vadd.f32 %v723_v35, %v693_v27 }
 0x233   : > { %v4188_v44 = vpop.permute.xlu1 %905  ;;  %v953_v12 = vadd.f32 %v4775_v55, %v917_v28  ;;  %v4783_v28 = vld [vmem:[#allocation33_spill] sm:$0xff]  ;;  %v4788_v55 = vld [vmem:[#allocation34_spill] sm:$0xff] }
 0x234   : > { %4764 = vst [vmem:[#allocation19_spill] sm:$0xff] %v4188_v44  ;;  %v4202_v44 = vadd.f32 %v508_v4, %v478_v13  ;;  %v1168_v29 = vmul.f32 0.120078385, %v1162_v45  ;;  %v1400_v37 = vmul.f32 %v4197_v25, %v4197_v25  ;;  %v1413_v6 = vmul.f32 %v4218_v47, %v4218_v47 }
 0x236   : > { %v1402_v42 = vmul.f32 %v4202_v44, %v4202_v44 }
 0x237   : > { %v4770_v57 = vld [vmem:[#allocation16_spill] sm:$0xff] }
 0x238   : > { %v916_v13 = vadd.f32 %v4770_v57, %v4141_v38  ;;  %v950_v38 = vadd.f32 %v4772_v20, %v914_v10  ;;  %v4781_v57 = vld [vmem:[#allocation31_spill] sm:$0xff] }
 0x23f   : > { %v1118_v49 = vpop.permute.xlu0 %1117 }
 0x240   : > { %v1135_v60 = vadd.f32 %v1118_v49, %v1063_v16  ;;  %v913_v16 = vadd.f32 %v4065_v63, %v4122_v51  ;;  %v4246_v51 = vadd.f32 %v4136_v52, %v695_v32  ;;  %v4768_v63 = vld [vmem:[#allocation52_spill] sm:$0xff]  ;;  %v1412_v52 = vmul.f32 %v4236_v19, %v4236_v19 }
 0x241   : > { %v696_v30 = vadd.f32 %v4769_v21, %v4768_v63  ;;  %v1414_v49 = vmul.f32 %v4239_v24, %v4239_v24  ;;  %v4779_v63 = vld [vmem:[#allocation46_spill] sm:$0xff]  ;;  %v4780_v21 = vld [vmem:[#allocation67_spill] sm:$0xff] }
 0x242   : > { %v1171_v1 = vadd.f32 %v1165_v46, %v1135_v60  ;;  %v949_v45 = vadd.f32 %v4156_v2, %v913_v16  ;;  %v1415_v2 = vmul.f32 %v4246_v51, %v4246_v51  ;;  %v4777_v60 = vld [vmem:[#allocation19_spill] sm:$0xff] }
 0x243   : > { %v1120_v33 = vpop.permute.xlu1 %1119  ;;  %v1122_v0 = vpop.permute.xlu0 %1121  ;;  %v4266_v43 = vadd.f32 %v4773_v54, %v696_v30  ;;  %v1381_v30 = vadd.f32 %v4780_v21, %v4779_v63 }
 0x244   : > { %v1137_v4 = vadd.f32 %v1122_v0, %v1065_v26  ;;  %v1136_v35 = vadd.f32 %v1120_v33, %v1064_v41  ;;  %v951_v41 = vadd.f32 %v4160_v59, %v915_v36  ;;  %v952_v33 = vadd.f32 %v4774_v9, %v916_v13 }
 0x245   : > { %v1405_v0 = vsub.f32 %v949_v45, %v1399_v39  ;;  %v1416_v39 = vmul.f32 %v4266_v43, %v4266_v43  ;;  %v1285_v13 = vmul.f32 0.2920817, %v4781_v57  ;;  %v4782_v45 = vld [vmem:[#allocation32_spill] sm:$0xff] }
 0x246   : > { %v1173_v40 = vadd.f32 %v1167_v17, %v1137_v4  ;;  %v1172_v61 = vadd.f32 %v1166_v18, %v1136_v35  ;;  %v1407_v18 = vsub.f32 %v951_v41, %v1401_v5  ;;  %v4776_v4 = vld [vmem:[#allocation17_spill] sm:$0xff]  ;;  %v1286_v56 = vmul.f32 0.2920817, %v4782_v45 }
 0x247   : > { %v1124_v26 = vpop.permute.xlu1 %1123  ;;  %v1126_v7 = vpop.permute.xlu0 %1125 }
 0x248   : > { %v1138_v22 = vadd.f32 %v1124_v26, %v1066_v50  ;;  %v1139_v14 = vadd.f32 %v1126_v7, %v1067_v11  ;;  %v1411_v50 = vmul.f32 %v4231_v15, %v4231_v15  ;;  %v1419_v59 = vsub.f32 %v1173_v40, %v1413_v6 }
 0x249   : > { %v1418_v32 = vsub.f32 %v1172_v61, %v1412_v52  ;;  %v1406_v26 = vsub.f32 %v950_v38, %v1400_v37  ;;  %v1287_v61 = vmul.f32 0.2920817, %v4783_v28 }
 0x24a   : > { %v1174_v11 = vadd.f32 %v1168_v29, %v1138_v22  ;;  %v1417_v46 = vsub.f32 %v1171_v1, %v1411_v50  ;;  %v1175_v27 = vadd.f32 %v1169_v3, %v1139_v14  ;;  %v918_v29 = vadd.f32 %v4777_v60, %v4776_v4 }
 0x24b   : > { %v1128_v53 = vpop.permute.xlu1 %1127  ;;  %v1403_v3 = vmul.f32 %v4223_v31, %v4223_v31  ;;  %v1449_v16 = vadd.f32 %v1419_v59, %v1407_v18  ;;  %v1408_v22 = vsub.f32 %v952_v33, %v1402_v42  ;;  %v1448_v1 = vadd.f32 %v1418_v32, %v1406_v26  ;;  %v1372_v14 = vpop.permute.xlu0 %1371  ;;  %v4787_v59 = vld [vmem:[#allocation69_spill] sm:$0xff]  ;;  %v4790_v32 = vld [vmem:[#allocation70_spill] sm:$0xff] }
 0x24c   : > { %v1140_v17 = vadd.f32 %v1128_v53, %v1068_v8  ;;  %v4778_v8 = vld [vmem:[#allocation15_spill] sm:$0xff]  ;;  %v1420_v35 = vsub.f32 %v1174_v11, %v1414_v49  ;;  %v1447_v7 = vadd.f32 %v1417_v46, %v1405_v0  ;;  %v1421_v5 = vsub.f32 %v1175_v27, %v1415_v2  ;;  %v4785_v53 = vld [vmem:[#allocation68_spill] sm:$0xff] }
 0x24d   : > { %v4275_v36 = vadd.f32 %v4778_v8, %v480_v62  ;;  %v1409_v6 = vsub.f32 %v953_v12, %v1403_v3  ;;  %v954_v10 = vadd.f32 %v4191_v34, %v918_v29  ;;  %v1455_v62 = vadd.f32 0.0009, %v1449_v16  ;;  %v4784_v34 = vld [vmem:[#allocation47_spill] sm:$0xff]  ;;  %v4786_v49 = vld [vmem:[#allocation48_spill] sm:$0xff]  ;;  %v4789_v29 = vld [vmem:[#allocation49_spill] sm:$0xff] }
 0x24e   : > { %v1176_v40 = vadd.f32 %v1170_v48, %v1140_v17  ;;  %v1450_v41 = vadd.f32 %v1420_v35, %v1408_v22  ;;  %v1453_v48 = vadd.f32 0.0009, %v1447_v7  ;;  %v1382_v52 = vadd.f32 %v4785_v53, %v4784_v34 }
 0x24f   : > { %v1404_v37 = vmul.f32 %v4275_v36, %v4275_v36  ;;  %v1451_v42 = vadd.f32 %v1421_v5, %v1409_v6  ;;  %v1383_v11 = vadd.f32 %v4787_v59, %v4786_v49  ;;  %v1454_v38 = vadd.f32 0.0009, %v1448_v1  ;;  %v1374_v46 = vpop.permute.xlu1 %1373 }
 0x250   : > { %v1422_v50 = vsub.f32 %v1176_v40, %v1416_v39  ;;  %v1387_v17 = vmul.f32 0.120078385, %v1381_v30  ;;  %2858 = vrcp.f32 %v1455_v62  ;;  %v1456_v2 = vadd.f32 0.0009, %v1450_v41  ;;  %v4791_v40 = vld [vmem:[#allocation50_spill] sm:$0xff]  ;;  %v4793_v62 = vld [vmem:[#allocation36_spill] sm:$0xff] }
 0x251   : > { %v1410_v20 = vsub.f32 %v954_v10, %v1404_v37  ;;  %2860 = vrcp.f32 %v1453_v48  ;;  %v1457_v18 = vadd.f32 0.0009, %v1451_v42  ;;  %v1423_v33 = vmul.f32 %v4231_v15, %v4193_v23  ;;  %v4792_v23 = vld [vmem:[#allocation35_spill] sm:$0xff] }
 0x252   : > { %v1288_v12 = vmul.f32 0.2920817, %v4788_v55  ;;  %v1388_v4 = vmul.f32 0.120078385, %v1382_v52  ;;  %v1389_v60 = vmul.f32 0.120078385, %v1383_v11  ;;  %v1384_v3 = vadd.f32 %v4790_v32, %v4789_v29 }
 0x253   : > { %v1452_v9 = vadd.f32 %v1422_v50, %v1410_v20  ;;  %2862 = vrcp.f32 %v1454_v38  ;;  %v1385_v22 = vadd.f32 %v1372_v14, %v4791_v40  ;;  %v1289_v15 = vmul.f32 0.2920817, %v4792_v23  ;;  %v4794_v42 = vld [vmem:[#allocation51_spill] sm:$0xff] }
 0x254   : > { %2864 = vrcp.f32 %v1456_v2  ;;  %v1424_v39 = vmul.f32 %v4236_v19, %v4197_v25  ;;  %v1425_v6 = vmul.f32 %v4218_v47, %v4199_v58  ;;  %v1290_v41 = vmul.f32 0.2920817, %v4793_v62 }
 0x255   : > { %2866 = vrcp.f32 %v1457_v18  ;;  %v1458_v5 = vadd.f32 0.0009, %v1452_v9  ;;  %v1390_v57 = vmul.f32 0.120078385, %v1384_v3  ;;  %v1391_v14 = vmul.f32 0.120078385, %v1385_v22 }
 0x256   : > { %v1386_v50 = vadd.f32 %v1374_v46, %v4794_v42  ;;  %v1426_v25 = vmul.f32 %v4239_v24, %v4202_v44  ;;  %v1427_v19 = vmul.f32 %v4246_v51, %v4223_v31  ;;  %v1428_v44 = vmul.f32 %v4266_v43, %v4275_v36 }
 0x257   : > { %v1340_v27 = vpop.permute.xlu0 %1339  ;;  %2868 = vrcp.f32 %v1458_v5 }
 0x258   : > { %v1357_v54 = vadd.f32 %v1340_v27, %v1285_v13  ;;  %v1392_v11 = vmul.f32 0.120078385, %v1386_v50 }
 0x25a   : > { %v1393_v0 = vadd.f32 %v1387_v17, %v1357_v54 }
 0x25b   : > { %v1342_v8 = vpop.permute.xlu1 %1341  ;;  %v1344_v16 = vpop.permute.xlu0 %1343 }
 0x25c   : > { %v1429_v35 = vsub.f32 %v1393_v0, %v1423_v33  ;;  %v1358_v26 = vadd.f32 %v1342_v8, %v1286_v56  ;;  %v1359_v7 = vadd.f32 %v1344_v16, %v1287_v61 }
 0x25d   : > { %v2859_v59 = vpop.eup %2858 }
 0x25e   : > { %v1394_v10 = vadd.f32 %v1388_v4, %v1358_v26  ;;  %v1395_v1 = vadd.f32 %v1389_v60, %v1359_v7  ;;  %v1435_v63 = vmul.f32 2.0, %v1429_v35  ;;  %v2861_v46 = vpop.eup %2860 }
 0x25f   : > { %v1346_v21 = vpop.permute.xlu1 %1345  ;;  %v1348_v30 = vpop.permute.xlu0 %1347 }
 0x260   : > { %v1430_v13 = vsub.f32 %v1394_v10, %v1424_v39  ;;  %v1431_v37 = vsub.f32 %v1395_v1, %v1425_v6  ;;  %v1360_v48 = vadd.f32 %v1346_v21, %v1288_v12  ;;  %v1361_v45 = vadd.f32 %v1348_v30, %v1289_v15  ;;  %v2863_v9 = vpop.eup %2862 }
 0x261   : > { %v1441_v56 = vadd.f32 0.0009, %v1435_v63  ;;  %v2865_v0 = vpop.eup %2864 }
 0x262   : > { %v1437_v58 = vmul.f32 2.0, %v1431_v37  ;;  %v1396_v47 = vadd.f32 %v1390_v57, %v1360_v48  ;;  %v1436_v28 = vmul.f32 2.0, %v1430_v13  ;;  %v1397_v61 = vadd.f32 %v1391_v14, %v1361_v45  ;;  %v2867_v43 = vpop.eup %2866 }
 0x263   : > { %v1350_v34 = vpop.permute.xlu1 %1349  ;;  %v1528_v53 = vpop.permute.xlu0 %1527  ;;  %v1465_v31 = vmul.f32 %v2861_v46, %v1441_v56 }
 0x264   : > { %v1443_v52 = vadd.f32 0.0009, %v1437_v58  ;;  %v1432_v49 = vsub.f32 %v1396_v47, %v1426_v25  ;;  %1545 = vst.msk [vmem:[#allocation3] sm:$0xff] %vm396_vm4, %v1528_v53  ;;  %v1433_v20 = vsub.f32 %v1397_v61, %v1427_v19  ;;  %v1362_v38 = vadd.f32 %v1350_v34, %v1290_v41  ;;  %v2869_v22 = vpop.eup %2868  ;;  %v4795_v34 = vld [vmem:[#allocation62_spill] sm:$0xff] }
 0x265   : > { %v1442_v51 = vadd.f32 0.0009, %v1436_v28  ;;  %v1471_v60 = vsel %vm299_vm3, %v1465_v31, 0.0 }
 0x266   : > { %v1467_v24 = vmul.f32 %v2859_v59, %v1443_v52  ;;  %v1438_v27 = vmul.f32 2.0, %v1432_v49  ;;  %v1439_v17 = vmul.f32 2.0, %v1433_v20  ;;  %v1398_v2 = vadd.f32 %v1392_v11, %v1362_v38  ;;  %v4796_v49 = vld [vmem:[#allocation64_spill] sm:$0xff]  ;;  %v4797_v20 = vld [vmem:[#allocation61_spill] sm:$0xff] }
 0x267   : > { %v1530_v54 = vpop.permute.xlu1 %1529  ;;  %v1532_v18 = vpop.permute.xlu0 %1531  ;;  %v1466_v29 = vmul.f32 %v2863_v9, %v1442_v51 }
 0x268   : > { %v1444_v33 = vadd.f32 0.0009, %v1438_v27  ;;  %1546 = vst.msk [vmem:[#allocation3 + $0x8] sm:$0xff] %vm396_vm4, %v1530_v54  ;;  %1547 = vst.msk [vmem:[#allocation3 + $0x10] sm:$0xff] %vm396_vm4, %v1532_v18  ;;  %v1472_v55 = vsel %vm299_vm3, %v1467_v24, 0.0  ;;  %v1434_v4 = vsub.f32 %v1398_v2, %v1428_v44  ;;  %v4798_v24 = vld [vmem:[#allocation65_spill] sm:$0xff] }
 0x269   : > { %v1445_v12 = vadd.f32 0.0009, %v1439_v17  ;;  %v1473_v26 = vadd.f32 %v1472_v55, %v1471_v60  ;;  %v1476_v15 = vsel %vm299_vm3, %v1466_v29, 0.0  ;;  %v4799_v18 = vld [vmem:[#allocation66_spill] sm:$0xff] }
 0x26a   : > { %v1468_v36 = vmul.f32 %v2865_v0, %v1444_v33  ;;  %v1440_v3 = vmul.f32 2.0, %v1434_v4 }
 0x26b   : > { %v1469_v32 = vmul.f32 %v2867_v43, %v1445_v12  ;;  %v1551_v8 = vld [vmem:[#allocation3] sm:$0xff]  ;;  %v1534_v16 = vpop.permute.xlu1 %1533  ;;  %v1536_v35 = vpop.permute.xlu0 %1535  ;;  %v4800_v12 = vld [vmem:[#allocation63_spill] sm:$0xff] }
 0x26c   : > { %1563 = vrot.lane.b32.xlu1 %v1551_v8, %s3045_s11  ;;  %1548 = vst.msk [vmem:[#allocation3 + $0x18] sm:$0xff] %vm396_vm4, %v1534_v16  ;;  %1549 = vst.msk [vmem:[#allocation3 + $0x20] sm:$0xff] %vm396_vm4, %v1536_v35  ;;  %v1477_v7 = vsel %vm299_vm3, %v1468_v36, 0.0  ;;  %v1446_v5 = vadd.f32 0.0009, %v1440_v3 }
 0x26d   : > { %v1474_v40 = vsel %vm299_vm3, %v1469_v32, 0.0  ;;  %v1478_v1 = vadd.f32 %v1477_v7, %v1476_v15 }
 0x26e   : > { %v1475_v23 = vadd.f32 %v1474_v40, %v1473_v26  ;;  %v1470_v39 = vmul.f32 %v2869_v22, %v1446_v5 }
 0x26f   : > { %v1552_v6 = vld [vmem:[#allocation3 + $0x8] sm:$0xff]  ;;  %v1538_v10 = vpop.permute.xlu1 %1537  ;;  %v1553_v21 = vld [vmem:[#allocation3 + $0x10] sm:$0xff] }
 0x270   : > { %1565 = vrot.lane.b32.xlu1 %v1552_v6, %s3045_s11  ;;  %1550 = vst.msk [vmem:[#allocation3 + $0x28] sm:$0xff] %vm396_vm4, %v1538_v10  ;;  %v4323_v63 = vmul.f32 0.33333334, %v1475_v23  ;;  %v1479_v30 = vsel %vm299_vm3, %v1470_v39, 0.0 }
 0x271   : > { %v1480_v62 = vadd.f32 %v1479_v30, %v1478_v1 }
 0x272   : > { %v1483_v57 = vsub.f32 1.0, %v4323_v63 }
 0x273   : > { %v4327_v41 = vmul.f32 0.33333334, %v1480_v62  ;;  %v1554_v13 = vld [vmem:[#allocation3 + $0x18] sm:$0xff]  ;;  %v1555_v50 = vld [vmem:[#allocation3 + $0x20] sm:$0xff] }
 0x274   : > { %1567 = vrot.lane.b32.xlu1 %v1553_v21, %s3045_s11  ;;  %v1647_v48 = vsel %vm299_vm3, %v1483_v57, 0.0 }
 0x275   : > { %v1484_v37 = vsub.f32 1.0, %v4327_v41 }
 0x277   : > { %v1648_v14 = vsel %vm299_vm3, %v1484_v37, 0.0  ;;  %v1556_v45 = vld [vmem:[#allocation3 + $0x28] sm:$0xff] }
 0x278   : > { %1569 = vrot.lane.b32.xlu1 %v1554_v13, %s3045_s11  ;;  %v1649_v42 = vadd.f32 %v1648_v14, %v1647_v48 }
 0x27a   : > { %1650 = vadd.xlane.f32.xlu0 %v1649_v42 }
 0x27c   : > { %1571 = vrot.lane.b32.xlu1 %v1555_v50, %s3045_s11 }
 0x280   : > { %1573 = vrot.lane.b32.xlu1 %v1556_v45, %s3045_s11 }
 0x284   : > { %1587 = vrot.lane.b32.xlu1 %v1551_v8, %s3046_s19 }
 0x288   : > { %1589 = vrot.lane.b32.xlu1 %v1552_v6, %s3046_s19 }
 0x28c   : > { %1593 = vrot.lane.b32.xlu1 %v1554_v13, %s3046_s19 }
 0x290   : > { %1595 = vrot.lane.b32.xlu1 %v1555_v50, %s3046_s19  ;;  %1591 = vrot.lane.b32.xlu0 %v1553_v21, %s3046_s19 }
 0x294   : > { %1597 = vrot.lane.b32.xlu1 %v1556_v45, %s3046_s19 }
 0x2de   : > { %v1564_v25 = vpop.permute.xlu1 %1563 }
 0x2df   : > { %v1581_v38 = vadd.f32 %v1564_v25, %v4797_v20 }
 0x2e2   : > { %v1566_v58 = vpop.permute.xlu1 %1565 }
 0x2e3   : > { %v1582_v53 = vadd.f32 %v1566_v58, %v4795_v34 }
 0x2e6   : > { %v1568_v47 = vpop.permute.xlu1 %1567 }
 0x2e7   : > { %v1583_v4 = vadd.f32 %v1568_v47, %v4800_v12 }
 0x2ea   : > { %v1570_v19 = vpop.permute.xlu1 %1569 }
 0x2eb   : > { %v1584_v59 = vadd.f32 %v1570_v19, %v4796_v49 }
 0x2ee   : > { %v1572_v56 = vpop.permute.xlu1 %1571 }
 0x2ef   : > { %v1585_v27 = vadd.f32 %v1572_v56, %v4798_v24 }
 0x2f2   : > { %v1574_v28 = vpop.permute.xlu1 %1573 }
 0x2f3   : > { %v1586_v9 = vadd.f32 %v1574_v28, %v4799_v18 }
 0x2f6   : > { %v1588_v61 = vpop.permute.xlu1 %1587 }
 0x2f7   : > { %v1605_v17 = vadd.f32 %v1588_v61, %v1581_v38 }
 0x2f9   : > { %v1611_v36 = vmul.f32 0.11111111, %v1605_v17 }
 0x2fa   : > { %v1590_v52 = vpop.permute.xlu1 %1589 }
 0x2fb   : > { %v1606_v11 = vadd.f32 %v1590_v52, %v1582_v53  ;;  %v1617_v40 = vmul.f32 %v1611_v36, %v1611_v36 }
 0x2fd   : > { %v1612_v46 = vmul.f32 0.11111111, %v1606_v11  ;;  %v1623_v62 = vsel %vm299_vm3, %v1617_v40, 0.0 }
 0x2fe   : > { %v1594_v44 = vpop.permute.xlu1 %1593 }
 0x2ff   : > { %v1608_v31 = vadd.f32 %v1594_v44, %v1584_v59  ;;  %v1618_v2 = vmul.f32 %v1612_v46, %v1612_v46 }
 0x301   : > { %v1614_v51 = vmul.f32 0.11111111, %v1608_v31  ;;  %v1628_v60 = vsel %vm299_vm3, %v1618_v2, 0.0 }
 0x302   : > { %v1596_v54 = vpop.permute.xlu1 %1595 }
 0x303   : > { %v1620_v33 = vmul.f32 %v1614_v51, %v1614_v51  ;;  %v1609_v0 = vadd.f32 %v1596_v54, %v1585_v27  ;;  %v1651_v55 = vpop.xlane.xlu0 %1650 }
 0x304   : > { %v1652_v43 = vrot.slane %v1651_v55, 4 }
 0x305   : > { %v1629_v32 = vsel %vm299_vm3, %v1620_v33, 0.0  ;;  %v1615_v3 = vmul.f32 0.11111111, %v1609_v0 }
 0x306   : > { %v1598_v29 = vpop.permute.xlu1 %1597  ;;  %v1653_v8 = vadd.f32 %v1652_v43, %v1651_v55  ;;  %v1630_v22 = vadd.f32 %v1629_v32, %v1628_v60 }
 0x307   : > { %v1610_v16 = vadd.f32 %v1598_v29, %v1586_v9  ;;  %v1592_v35 = vpop.permute.xlu0 %1591  ;;  %v1621_v23 = vmul.f32 %v1615_v3, %v1615_v3 }
 0x308   : > { %v1654_v26 = vrot.slane %v1653_v8, 2  ;;  %v1607_v5 = vadd.f32 %v1592_v35, %v1583_v4 }
 0x309   : > { %v1616_v7 = vmul.f32 0.11111111, %v1610_v16  ;;  %v1626_v13 = vsel %vm299_vm3, %v1621_v23, 0.0 }
 0x30a   : > { %v1613_v39 = vmul.f32 0.11111111, %v1607_v5  ;;  %v1655_v6 = vadd.f32 %v1654_v26, %v1653_v8 }
 0x30b   : > { %v1622_v15 = vmul.f32 %v1616_v7, %v1616_v7 }
 0x30c   : > { %v1619_v1 = vmul.f32 %v1613_v39, %v1613_v39  ;;  %v1656_v21 = vrot.slane %v1655_v6, 1 }
 0x30d   : > { %v1631_v10 = vsel %vm299_vm3, %v1622_v15, 0.0 }
 0x30e   : > { %v1632_v30 = vadd.f32 %v1631_v10, %v1630_v22  ;;  %v1624_v48 = vsel %vm299_vm3, %v1619_v1, 0.0  ;;  %v1657_v14 = vadd.f32 %v1656_v21, %v1655_v6 }
 0x30f   : > { %v1625_v42 = vadd.f32 %v1624_v48, %v1623_v62 }
 0x310   : > { %2870 = vrsqrt.f32 %v1632_v30  ;;  %2779 = vpush %v1657_v14  ;;  %vm1642_vm5 = vcmp.eq.f32.partialorder %v1632_v30, inf  ;;  %v1645_v19 = vand.u32 2147483648, %v1632_v30  ;;  %vm1644_vm6 = vcmp.eq.f32.partialorder %v1632_v30, 0.0 }
 0x311   : > { %v1627_v50 = vadd.f32 %v1626_v13, %v1625_v42 }
 0x313   : > { %2872 = vrsqrt.f32 %v1627_v50  ;;  %vm1635_vm7 = vcmp.eq.f32.partialorder %v1627_v50, inf  ;;  %v1638_v28 = vand.u32 2147483648, %v1627_v50  ;;  %vm1637_vm8 = vcmp.eq.f32.partialorder %v1627_v50, 0.0 }
 0x31d   : > { %v2871_v45 = vpop.eup %2870 }
 0x31e   : > { %v1641_v25 = vmul.f32 %v2871_v45, %v1632_v30 }
 0x320   : > { %v1643_v58 = vsel %vm1642_vm5, %v1632_v30, %v1641_v25  ;;  %v2873_v47 = vpop.eup %2872  ;;  %vm1860_vm5 = vcmask 158872  }
 0x321   : > { %v1634_v56 = vmul.f32 %v2873_v47, %v1627_v50  ;;  %v1646_v61 = vsel %vm1644_vm6, %v1645_v19, %v1643_v58 }
 0x322   : > { %v1683_v49 = vsel %vm299_vm3, %v1646_v61, 0.0 }
 0x323   : > { %v1636_v34 = vsel %vm1635_vm7, %v1627_v50, %v1634_v56 }
 0x324   : > { %v1639_v53 = vsel %vm1637_vm8, %v1638_v28, %v1636_v34 }
 0x325   : > { %v1682_v52 = vsel %vm299_vm3, %v1639_v53, 0.0 }
 0x326   : > { %v1684_v59 = vadd.f32 %v1683_v49, %v1682_v52 }
 0x328   : > { %1685 = vadd.xlane.f32.xlu0 %v1684_v59 }
 0x341   : > { %s2780_s30 = spop %2779 }
 0x342   : > { %v1659_v11 = vstv %s2780_s30 }
 0x343   : > { %v1660_v20 = vmul.f32 0.00390625, %v1659_v11 }
 0x345   : > { %v1661_v38 = vsub.f32 %v1483_v57, %v1660_v20  ;;  %v1662_v46 = vsub.f32 %v1484_v37, %v1660_v20 }
 0x347   : > { %v1663_v44 = vmul.f32 %v1661_v38, %v1661_v38  ;;  %v1664_v24 = vmul.f32 %v1662_v46, %v1662_v46 }
 0x349   : > { %v1665_v27 = vsel %vm299_vm3, %v1663_v44, 0.0  ;;  %v1666_v31 = vsel %vm299_vm3, %v1664_v24, 0.0 }
 0x34a   : > { %v1667_v51 = vadd.f32 %v1666_v31, %v1665_v27 }
 0x34c   : > { %1668 = vadd.xlane.f32.xlu1 %v1667_v51 }
 0x3b1   : > { %v1686_v17 = vpop.xlane.xlu0 %1685 }
 0x3b2   : > { %v1687_v2 = vrot.slane %v1686_v17, 4 }
 0x3b4   : > { %v1688_v54 = vadd.f32 %v1687_v2, %v1686_v17 }
 0x3b6   : > { %v1689_v18 = vrot.slane %v1688_v54, 2 }
 0x3b8   : > { %v1690_v63 = vadd.f32 %v1689_v18, %v1688_v54 }
 0x3ba   : > { %v1691_v41 = vrot.slane %v1690_v63, 1 }
 0x3bc   : > { %v1692_v4 = vadd.f32 %v1691_v41, %v1690_v63 }
 0x3d5   : > { %v1669_v9 = vpop.xlane.xlu1 %1668 }
 0x3d6   : > { %v1670_v33 = vrot.slane %v1669_v9, 4 }
 0x3d8   : > { %v1671_v0 = vadd.f32 %v1670_v33, %v1669_v9 }
 0x3da   : > { %v1672_v57 = vrot.slane %v1671_v0, 2 }
 0x3dc   : > { %v1673_v55 = vadd.f32 %v1672_v57, %v1671_v0 }
 0x3de   : > { %v1674_v37 = vrot.slane %v1673_v55, 1 }
 0x3e0   : > { %v1675_v12 = vadd.f32 %v1674_v37, %v1673_v55 }
 0x3e2   : > { %2781 = vpush %v1675_v12 }
 0x3e3   : > { %2783 = vpush %v1692_v4 }
 0x413   : > { %s2782_s6 = spop %2781 }
 0x414   : > { %s2784_s5 = spop %2783  ;;  %v1677_v39 = vstv %s2782_s6 }
 0x415   : > { %v1694_v43 = vstv %s2784_s5  ;;  %v1678_v6 = vmul.f32 0.003921569, %v1677_v39 }
 0x416   : > { %v1695_v36 = vmul.f32 0.00390625, %v1694_v43 }
 0x417   : > { %2874 = vrsqrt.f32 %v1678_v6 }
 0x418   : > { %v1696_v60 = vsub.f32 %v1639_v53, %v1695_v36  ;;  %v1697_v29 = vsub.f32 %v1646_v61, %v1695_v36 }
 0x41a   : > { %v1698_v32 = vmul.f32 %v1696_v60, %v1696_v60  ;;  %v1699_v3 = vmul.f32 %v1697_v29, %v1697_v29 }
 0x41c   : > { %v1700_v8 = vsel %vm299_vm3, %v1698_v32, 0.0  ;;  %v1701_v16 = vsel %vm299_vm3, %v1699_v3, 0.0 }
 0x41d   : > { %v1702_v35 = vadd.f32 %v1701_v16, %v1700_v8 }
 0x41f   : > { %1703 = vadd.xlane.f32.xlu1 %v1702_v35 }
 0x424   : > { %v2875_v21 = vpop.eup %2874 }
 0x425   : > { %v1680_v62 = vmul.f32 %v2875_v21, %v1661_v38  ;;  %v1681_v13 = vmul.f32 %v2875_v21, %v1662_v46 }
 0x427   : > { %v1721_v58 = vmul.f32 0.33, %v1680_v62  ;;  %v1722_v47 = vmul.f32 0.33, %v1681_v13 }
 0x4a8   : > { %v1704_v26 = vpop.xlane.xlu1 %1703 }
 0x4a9   : > { %v1705_v7 = vrot.slane %v1704_v26, 4 }
 0x4ab   : > { %v1706_v5 = vadd.f32 %v1705_v7, %v1704_v26 }
 0x4ad   : > { %v1707_v40 = vrot.slane %v1706_v5, 2 }
 0x4af   : > { %v1708_v22 = vadd.f32 %v1707_v40, %v1706_v5 }
 0x4b1   : > { %v1709_v23 = vrot.slane %v1708_v22, 1 }
 0x4b3   : > { %v1710_v15 = vadd.f32 %v1709_v23, %v1708_v22 }
 0x4b5   : > { %2785 = vpush %v1710_v15 }
 0x4e6   : > { %s2786_s26 = spop %2785 }
 0x4e7   : > { %v1712_v10 = vstv %s2786_s26 }
 0x4e8   : > { %v1713_v1 = vmul.f32 0.003921569, %v1712_v10 }
 0x4ea   : > { %2876 = vrsqrt.f32 %v1713_v1 }
 0x4f7   : > { %v2877_v30 = vpop.eup %2876 }
 0x4f8   : > { %v1715_v48 = vmul.f32 %v2877_v30, %v1696_v60  ;;  %v1716_v14 = vmul.f32 %v2877_v30, %v1697_v29 }
 0x4fa   : > { %v1717_v42 = vmul.f32 %v1715_v48, %v1680_v62  ;;  %v1718_v50 = vmul.f32 %v1716_v14, %v1681_v13 }
 0x4fc   : > { %v1719_v45 = vadd.f32 %v1717_v42, %v1715_v48  ;;  %v1720_v25 = vadd.f32 %v1718_v50, %v1716_v14 }
 0x4fe   : > { %v1723_v19 = vadd.f32 %v1721_v58, %v1719_v45  ;;  %v1724_v56 = vadd.f32 %v1722_v47, %v1720_v25 }
 0x500   : > { %v1725_v28 = vsel %vm299_vm3, %v1723_v19, 0.0  ;;  %v1726_v61 = vsel %vm299_vm3, %v1724_v56, 0.0 }
 0x501   : > { %v1727_v34 = vadd.f32 %v1726_v61, %v1725_v28 }
 0x503   : > { %1728 = vadd.xlane.f32.xlu0 %v1727_v34 }
 0x58c   : > { %v1729_v53 = vpop.xlane.xlu0 %1728 }
 0x58d   : > { %v1730_v52 = vrot.slane %v1729_v53, 4 }
 0x58f   : > { %v1731_v49 = vadd.f32 %v1730_v52, %v1729_v53 }
 0x591   : > { %v1732_v59 = vrot.slane %v1731_v49, 2 }
 0x593   : > { %v1733_v11 = vadd.f32 %v1732_v59, %v1731_v49 }
 0x595   : > { %v1734_v20 = vrot.slane %v1733_v11, 1 }
 0x597   : > { %v1735_v38 = vadd.f32 %v1734_v20, %v1733_v11 }
 0x599   : > { %2787 = vpush %v1735_v38 }
 0x5ca   : > { %s2788_s27 = spop %2787 }
 0x5cb   : > { %v1737_v46 = vstv %s2788_s27 }
 0x5cc   : > { %v1738_v44 = vmul.f32 0.00390625, %v1737_v46 }
 0x5ce   : > { %v1739_v24 = vsub.f32 %v1723_v19, %v1738_v44  ;;  %v1740_v27 = vsub.f32 %v1724_v56, %v1738_v44 }
 0x5d0   : > { %v1741_v31 = vmul.f32 %v1739_v24, %v1739_v24  ;;  %v1742_v51 = vmul.f32 %v1740_v27, %v1740_v27 }
 0x5d2   : > { %v1743_v17 = vsel %vm299_vm3, %v1741_v31, 0.0  ;;  %v1744_v2 = vsel %vm299_vm3, %v1742_v51, 0.0 }
 0x5d3   : > { %v1745_v54 = vadd.f32 %v1744_v2, %v1743_v17 }
 0x5d5   : > { %1746 = vadd.xlane.f32.xlu1 %v1745_v54 }
 0x65e   : > { %v1747_v18 = vpop.xlane.xlu1 %1746 }
 0x65f   : > { %v1748_v9 = vrot.slane %v1747_v18, 4 }
 0x661   : > { %v1749_v33 = vadd.f32 %v1748_v9, %v1747_v18 }
 0x663   : > { %v1750_v0 = vrot.slane %v1749_v33, 2 }
 0x665   : > { %v1751_v63 = vadd.f32 %v1750_v0, %v1749_v33 }
 0x667   : > { %v1752_v57 = vrot.slane %v1751_v63, 1 }
 0x669   : > { %v1753_v55 = vadd.f32 %v1752_v57, %v1751_v63 }
 0x66b   : > { %2789 = vpush %v1753_v55 }
 0x69c   : > { %s2790_s7 = spop %2789 }
 0x69d   : > { %v1755_v41 = vstv %s2790_s7 }
 0x69e   : > { %v1756_v37 = vmul.f32 0.003921569, %v1755_v41 }
 0x6a0   : > { %2878 = vrsqrt.f32 %v1756_v37 }
 0x6ad   : > { %v2879_v12 = vpop.eup %2878 }
 0x6ae   : > { %v1759_v4 = vmul.f32 %v2879_v12, %v1740_v27  ;;  %v1758_v43 = vmul.f32 %v2879_v12, %v1739_v24 }
 0x6b0   : > { %v1761_v36 = vmax.f32 %v1759_v4, 0.0  ;;  %v1760_v60 = vmax.f32 %v1758_v43, 0.0 }
 0x6b2   : > { %v1763_v29 = vmin.f32 %v1761_v36, 1.0  ;;  %v1762_v32 = vmin.f32 %v1760_v60, 1.0 }
 0x6b4   : > { %1768 = vrot.lane.b32.xlu1 %v1763_v29, %s3042_s22  ;;  %1766 = vrot.lane.b32.xlu0 %v1762_v32, %s3042_s22 }
 0x726   : > { %v1769_v3 = vpop.permute.xlu1 %1768  ;;  %v1767_v8 = vpop.permute.xlu0 %1766 }
 0x727   : > { %1773 = vst.msk [vmem:[#allocation4 + $0xa] sm:$0xff] %vm396_vm4, %v1769_v3  ;;  %1772 = vst.msk [vmem:[#allocation4 + $0x2] sm:$0xff] %vm396_vm4, %v1767_v8  ;;  %vm1857_vm4 = vcmask 162968  }
 0x728   : > { %1779 = vst.msk [vmem:[#allocation4 + $0xc] sm:$0x40] %vm1778_vm9, %v1769_v3 }
 0x729   : > { %1781 = vst.msk [vmem:[#allocation4 + $0xe] sm:$0x20] %vm1780_vm10, %v1769_v3 }
 0x72a   : > { %1775 = vst.msk [vmem:[#allocation4 - $0x2] sm:$0x4] %vm1774_vm11, %v1767_v8 }
 0x72b   : > { %1777 = vst.msk [vmem:[#allocation4] sm:$0x2] %vm1776_vm12, %v1767_v8 }
 0x72e   : > { %v1783_v26 = vld [vmem:[#allocation4 + $0x8] sm:$0xff] }
 0x730   : > { %v1784_v16 = vld [vmem:[#allocation4 + $0x10] sm:$0xf] }
 0x731   : > { %1792 = vrot.lane.b32.xlu0 %v1784_v16, %s3044_s4 }
 0x732   : > { %v1782_v35 = vld [vmem:[#allocation4] sm:$0xff] }
 0x733   : > { %1788 = vrot.lane.b32.xlu1 %v1782_v35, %s3044_s4 }
 0x737   : > { %1790 = vrot.lane.b32.xlu1 %v1783_v26, %s3044_s4 }
 0x7a3   : > { %v1793_v5 = vpop.permute.xlu0 %1792 }
 0x7a4   : > { %1801 = vst.msk [vmem:[#allocation4 + $0x10] sm:$0xf] %vm1800_vm14, %v1793_v5 }
 0x7a5   : > { %v1789_v7 = vpop.permute.xlu1 %1788 }
 0x7a6   : > { %1798 = vst.msk [vmem:[#allocation4] sm:$0xff] %vm1797_vm13, %v1789_v7 }
 0x7a9   : > { %v1791_v40 = vpop.permute.xlu1 %1790 }
 0x7aa   : > { %1799 = vst.msk [vmem:[#allocation4 + $0x8] sm:$0xff] %vm1797_vm13, %v1791_v40 }
 0x7ab   : > { %v1804_v15 = vld [vmem:[#allocation4 + $0x10] sm:$0xf] }
 0x7ad   : > { %v1802_v22 = vld [vmem:[#allocation4] sm:$0xff] }
 0x7ae   : > { %1808 = vrot.lane.b32.xlu1 %v1802_v22, %s3043_s17 }
 0x7b1   : > { %v1803_v23 = vld [vmem:[#allocation4 + $0x8] sm:$0xff] }
 0x7b2   : > { %1810 = vrot.lane.b32.xlu0 %v1803_v23, %s3043_s17  ;;  %1812 = vrot.lane.b32.xlu1 %v1804_v15, %s3043_s17 }
 0x820   : > { %v1809_v39 = vpop.permute.xlu1 %1808 }
 0x821   : > { %1818 = vst.msk [vmem:[#allocation4] sm:$0xff] %vm1817_vm15, %v1809_v39 }
 0x824   : > { %v1813_v6 = vpop.permute.xlu1 %1812  ;;  %v1811_v10 = vpop.permute.xlu0 %1810 }
 0x825   : > { %1821 = vst.msk [vmem:[#allocation4 + $0x10] sm:$0xf] %vm1820_vm0, %v1813_v6 }
 0x826   : > { %1819 = vst.msk [vmem:[#allocation4 + $0x8] sm:$0xff] %vm1817_vm15, %v1811_v10 }
 0x828   : > { %v1822_v1 = vld [vmem:[#allocation4] sm:$0xff] }
 0x829   : > { %1828 = vrot.lane.b32.xlu0 %v1822_v1, %s3042_s22 }
 0x82c   : > { %v1824_v21 = vld [vmem:[#allocation4 + $0x10] sm:$0xf] }
 0x82d   : > { %v1823_v30 = vld [vmem:[#allocation4 + $0x8] sm:$0xff]  ;;  %1832 = vrot.lane.b32.xlu0 %v1824_v21, %s3042_s22 }
 0x82e   : > { %1830 = vrot.lane.b32.xlu1 %v1823_v30, %s3042_s22  ;;  %s4553_s22 = scalar_lea.hbm %s4602_s3, %s2771_s10 }
 0x89b   : > { %v1829_v62 = vpop.permute.xlu0 %1828 }
 0x89c   : > { %1838 = vst.msk [vmem:[#allocation4] sm:$0xff] %vm1837_vm1, %v1829_v62 }
 0x89f   : > { %v1833_v48 = vpop.permute.xlu0 %1832 }
 0x8a0   : > { %v1831_v13 = vpop.permute.xlu1 %1830  ;;  %1841 = vst.msk [vmem:[#allocation4 + $0x10] sm:$0xf] %vm1840_vm2, %v1833_v48 }
 0x8a1   : > { %1839 = vst.msk [vmem:[#allocation4 + $0x8] sm:$0xff] %vm1837_vm1, %v1831_v13 }
 0x8a3   : > { %v1842_v14 = vld [vmem:[#allocation4] sm:$0xff] }
 0x8a4   : > { %1848 = vrot.lane.b32.xlu1 %v1842_v14, %s3047_s20 }
 0x8a7   : > { %v1844_v50 = vld [vmem:[#allocation4 + $0x10] sm:$0xf] }
 0x8a8   : > { %v1843_v42 = vld [vmem:[#allocation4 + $0x8] sm:$0xff]  ;;  %1852 = vrot.lane.b32.xlu1 %v1844_v50, %s3047_s20 }
 0x8a9   : > { %1850 = vrot.lane.b32.xlu0 %v1843_v42, %s3047_s20 }
 0x916   : > { %v1849_v45 = vpop.permute.xlu1 %1848 }
 0x917   : > { %1858 = vst.msk [vmem:[#allocation4] sm:$0xff] %vm1857_vm4, %v1849_v45 }
 0x91a   : > { %v1853_v25 = vpop.permute.xlu1 %1852 }
 0x91b   : > { %v1851_v58 = vpop.permute.xlu0 %1850  ;;  %1861 = vst.msk [vmem:[#allocation4 + $0x10] sm:$0xf] %vm1860_vm5, %v1853_v25 }
 0x91c   : > { %1859 = vst.msk [vmem:[#allocation4 + $0x8] sm:$0xff] %vm1857_vm4, %v1851_v58 }
 0x91e   : > { %v1862_v47 = vld [vmem:[#allocation4] sm:$0xff] }
 0x91f   : > { %1870 = vrot.lane.b32.xlu0 %v1862_v47, %s3045_s11 }
 0x923   : > { %v1863_v19 = vld [vmem:[#allocation4 + $0x8] sm:$0xff]  ;;  %1880 = vrot.lane.b32.xlu0 %v1862_v47, %s3043_s17 }
 0x924   : > { %1872 = vrot.lane.b32.xlu1 %v1863_v19, %s3045_s11  ;;  %v4392_v56 = vld [vmem:[#allocation4 + $0x1] sm:$0xff]  ;;  %v4397_v28 = vld [vmem:[#allocation4 + $0x9] sm:$0xff] }
 0x925   : > { %v4411_v61 = vld [vmem:[#allocation4 + $0x2] sm:$0xff]  ;;  %v4417_v34 = vld [vmem:[#allocation4 + $0xa] sm:$0xff] }
 0x926   : > { %v4431_v53 = vld [vmem:[#allocation4 + $0x3] sm:$0xff]  ;;  %v4437_v52 = vld [vmem:[#allocation4 + $0xb] sm:$0xff] }
 0x927   : > { %1890 = vrot.lane.b32.xlu0 %v1862_v47, %s3046_s19  ;;  %v2478_v49 = vld [vmem:[#allocation4 + $0x4] sm:$0xff]  ;;  %v2479_v59 = vld [vmem:[#allocation4 + $0xc] sm:$0xff] }
 0x928   : > { %1882 = vrot.lane.b32.xlu1 %v1863_v19, %s3043_s17 }
 0x92b   : > { %1900 = vrot.lane.b32.xlu0 %v1862_v47, %s3044_s4 }
 0x92c   : > { %1892 = vrot.lane.b32.xlu1 %v1863_v19, %s3046_s19 }
 0x92f   : > { %1916 = vrot.lane.b32.xlu0 %v4392_v56, %s3045_s11 }
 0x930   : > { %1902 = vrot.lane.b32.xlu1 %v1863_v19, %s3044_s4 }
 0x933   : > { %1926 = vrot.lane.b32.xlu0 %v4392_v56, %s3043_s17 }
 0x934   : > { %1918 = vrot.lane.b32.xlu1 %v4397_v28, %s3045_s11 }
 0x937   : > { %1936 = vrot.lane.b32.xlu0 %v4392_v56, %s3046_s19 }
 0x938   : > { %1928 = vrot.lane.b32.xlu1 %v4397_v28, %s3043_s17 }
 0x93b   : > { %1946 = vrot.lane.b32.xlu0 %v4392_v56, %s3044_s4 }
 0x93c   : > { %1938 = vrot.lane.b32.xlu1 %v4397_v28, %s3046_s19 }
 0x93f   : > { %1962 = vrot.lane.b32.xlu0 %v4411_v61, %s3045_s11 }
 0x940   : > { %1948 = vrot.lane.b32.xlu1 %v4397_v28, %s3044_s4 }
 0x943   : > { %1972 = vrot.lane.b32.xlu0 %v4411_v61, %s3043_s17 }
 0x944   : > { %1964 = vrot.lane.b32.xlu1 %v4417_v34, %s3045_s11 }
 0x947   : > { %1982 = vrot.lane.b32.xlu0 %v4411_v61, %s3046_s19 }
 0x948   : > { %1974 = vrot.lane.b32.xlu1 %v4417_v34, %s3043_s17 }
 0x94b   : > { %2080 = vrot.lane.b32.xlu0 %v4411_v61, %s3044_s4 }
 0x94c   : > { %1984 = vrot.lane.b32.xlu1 %v4417_v34, %s3046_s19 }
 0x94f   : > { %2250 = vrot.lane.b32.xlu0 %v4431_v53, %s3045_s11 }
 0x950   : > { %2082 = vrot.lane.b32.xlu1 %v4417_v34, %s3044_s4 }
 0x953   : > { %2324 = vrot.lane.b32.xlu0 %v4431_v53, %s3043_s17 }
 0x954   : > { %2252 = vrot.lane.b32.xlu1 %v4437_v52, %s3045_s11 }
 0x957   : > { %2390 = vrot.lane.b32.xlu0 %v4431_v53, %s3046_s19 }
 0x958   : > { %2326 = vrot.lane.b32.xlu1 %v4437_v52, %s3043_s17 }
 0x95b   : > { %2448 = vrot.lane.b32.xlu0 %v4431_v53, %s3044_s4 }
 0x95c   : > { %2392 = vrot.lane.b32.xlu1 %v4437_v52, %s3046_s19 }
 0x95f   : > { %2538 = vrot.lane.b32.xlu0 %v2478_v49, %s3045_s11 }
 0x960   : > { %2450 = vrot.lane.b32.xlu1 %v4437_v52, %s3044_s4 }
 0x963   : > { %2572 = vrot.lane.b32.xlu0 %v2478_v49, %s3043_s17 }
 0x964   : > { %2540 = vrot.lane.b32.xlu1 %v2479_v59, %s3045_s11 }
 0x967   : > { %2598 = vrot.lane.b32.xlu0 %v2478_v49, %s3046_s19 }
 0x968   : > { %2574 = vrot.lane.b32.xlu1 %v2479_v59, %s3043_s17  ;;  %s2966_s17 = scalar_lea.vmem %s4555_s8, 256 }
 0x969   : > { %p2967_p13 = scmp.ne.s32.totalorder %s4555_s8, %s2966_s17 }
 0x96b   : > { %2616 = vrot.lane.b32.xlu0 %v2478_v49, %s3044_s4  ;;  %p2968_p8 = pnand %p2967_p13, %p4801_p7 }
 0x96c   : > { %2600 = vrot.lane.b32.xlu1 %v2479_v59, %s3046_s19 }
 0x96d   : > { %p2969_p10 = pneg %p2968_p8 }
 0x970   : > { %2618 = vrot.lane.b32.xlu1 %v2479_v59, %s3044_s4  ;;  %s3048_s4 = smov [#allocation11]  }
 0x971   : > { %s2970_s25 = sshll.u32 %s3048_s4, 4  ;;  %s2971_s25 = int_to_ptr.vmem [resolvable:$false] %s2970_s25 }
 0x972   : > { %s2972_s11 = scalar_lea.vmem %s2971_s25, 512  ;;  %p2973_p1 = scmp.lt.s32.totalorder %s4555_s8, %s2971_s25 }
 0x973   : > { %p2974_p3 = scmp.lt.s32.totalorder %s2972_s11, %s2966_s17 }
 0x975   : > { %p2975_p9 = por %p2974_p3, %p2973_p1 }
 0x977   : > { %p2976_p6 = pnand %p2975_p9, %p2969_p10 }
 0x991   : > { %v1871_v11 = vpop.permute.xlu0 %1870 }
 0x992   : > { %v1878_v20 = vmin.f32 %v1862_v47, %v1871_v11  ;;  %v1876_v24 = vmax.f32 %v1862_v47, %v1871_v11 }
 0x995   : > { %v1881_v46 = vpop.permute.xlu0 %1880 }
 0x996   : > { %v1873_v38 = vpop.permute.xlu1 %1872  ;;  %v1886_v44 = vmax.f32 %v1878_v20, %v1881_v46  ;;  %v1888_v31 = vmin.f32 %v1878_v20, %v1881_v46 }
 0x997   : > { %v1879_v27 = vmin.f32 %v1863_v19, %v1873_v38  ;;  %v1877_v9 = vmax.f32 %v1863_v19, %v1873_v38 }
 0x998   : > { %v1992_v2 = vmax.f32 %v1876_v24, %v1886_v44  ;;  %v1990_v41 = vmin.f32 %v1876_v24, %v1886_v44 }
 0x999   : > { %v1891_v17 = vpop.permute.xlu0 %1890 }
 0x99a   : > { %v1883_v51 = vpop.permute.xlu1 %1882  ;;  %v1896_v18 = vmax.f32 %v1888_v31, %v1891_v17  ;;  %v1898_v63 = vmin.f32 %v1888_v31, %v1891_v17 }
 0x99b   : > { %v1887_v54 = vmax.f32 %v1879_v27, %v1883_v51  ;;  %v1889_v33 = vmin.f32 %v1879_v27, %v1883_v51 }
 0x99c   : > { %v1994_v0 = vmin.f32 %v1992_v2, %v1896_v18  ;;  %v1996_v43 = vmax.f32 %v1992_v2, %v1896_v18 }
 0x99d   : > { %v1901_v55 = vpop.permute.xlu0 %1900  ;;  %v1993_v37 = vmax.f32 %v1877_v9, %v1887_v54  ;;  %v1991_v4 = vmin.f32 %v1877_v9, %v1887_v54 }
 0x99e   : > { %v1893_v57 = vpop.permute.xlu1 %1892  ;;  %v1906_v36 = vmax.f32 %v1898_v63, %v1901_v55  ;;  %v1908_v60 = vmin.f32 %v1898_v63, %v1901_v55  ;;  %v2036_v29 = vmax.f32 %v1990_v41, %v1994_v0  ;;  %v2038_v32 = vmin.f32 %v1990_v41, %v1994_v0 }
 0x99f   : > { %v1897_v12 = vmax.f32 %v1889_v33, %v1893_v57  ;;  %v1899_v3 = vmin.f32 %v1889_v33, %v1893_v57 }
 0x9a0   : > { %v1910_v16 = vmax.f32 %v1908_v60, %v4392_v56  ;;  %v1998_v35 = vmin.f32 %v1996_v43, %v1906_v36  ;;  %v2000_v26 = vmax.f32 %v1996_v43, %v1906_v36  ;;  %v1912_v5 = vmin.f32 %v1908_v60, %v4392_v56 }
 0x9a1   : > { %v1995_v8 = vmin.f32 %v1993_v37, %v1897_v12  ;;  %v1917_v40 = vpop.permute.xlu0 %1916  ;;  %v1997_v22 = vmax.f32 %v1993_v37, %v1897_v12 }
 0x9a2   : > { %v1903_v7 = vpop.permute.xlu1 %1902  ;;  %v2002_v6 = vmin.f32 %v2000_v26, %v1910_v16  ;;  %v2040_v10 = vmax.f32 %v2038_v32, %v1998_v35  ;;  %v2042_v1 = vmin.f32 %v2038_v32, %v1998_v35  ;;  %v2004_v21 = vmax.f32 %v2000_v26, %v1910_v16 }
 0x9a3   : > { %v2039_v23 = vmin.f32 %v1991_v4, %v1995_v8  ;;  %v1907_v15 = vmax.f32 %v1899_v3, %v1903_v7  ;;  %v1909_v39 = vmin.f32 %v1899_v3, %v1903_v7  ;;  %v1922_v48 = vmax.f32 %v1912_v5, %v1917_v40 }
 0x9a4   : > { %v2037_v14 = vmax.f32 %v1991_v4, %v1995_v8  ;;  %v2044_v42 = vmax.f32 %v2042_v1, %v2002_v6  ;;  %v2090_v50 = vmax.f32 %v2036_v29, %v2040_v10  ;;  %v2046_v45 = vmin.f32 %v2042_v1, %v2002_v6 }
 0x9a5   : > { %v1911_v30 = vmax.f32 %v1909_v39, %v4397_v28  ;;  %v1999_v62 = vmin.f32 %v1997_v22, %v1907_v15  ;;  %v2001_v13 = vmax.f32 %v1997_v22, %v1907_v15  ;;  %v2088_v58 = vmin.f32 %v2036_v29, %v2040_v10  ;;  %v1927_v27 = vpop.permute.xlu0 %1926 }
 0x9a6   : > { %v1919_v25 = vpop.permute.xlu1 %1918  ;;  %v2092_v49 = vmin.f32 %v2090_v50, %v2044_v42  ;;  %v2094_v59 = vmax.f32 %v2090_v50, %v2044_v42  ;;  %v1924_v11 = vmin.f32 %v1912_v5, %v1917_v40  ;;  %v2006_v20 = vmin.f32 %v2004_v21, %v1922_v48 }
 0x9a7   : > { %v2003_v47 = vmin.f32 %v2001_v13, %v1911_v30  ;;  %v2041_v19 = vmax.f32 %v2039_v23, %v1999_v62  ;;  %v2043_v56 = vmin.f32 %v2039_v23, %v1999_v62  ;;  %v2008_v44 = vmax.f32 %v2004_v21, %v1922_v48 }
 0x9a8   : > { %v1913_v24 = vmin.f32 %v1909_v39, %v4397_v28  ;;  %v2132_v31 = vmax.f32 %v2088_v58, %v2092_v49  ;;  %v2134_v51 = vmin.f32 %v2088_v58, %v2092_v49  ;;  %v2048_v2 = vmax.f32 %v2046_v45, %v2006_v20 }
 0x9a9   : > { %v2045_v38 = vmax.f32 %v2043_v56, %v2003_v47  ;;  %v2091_v46 = vmax.f32 %v2037_v14, %v2041_v19  ;;  %v2089_v17 = vmin.f32 %v2037_v14, %v2041_v19  ;;  %v2050_v18 = vmin.f32 %v2046_v45, %v2006_v20  ;;  %v1937_v35 = vpop.permute.xlu0 %1936 }
 0x9aa   : > { %v2005_v9 = vmax.f32 %v2001_v13, %v1911_v30  ;;  %v2047_v33 = vmin.f32 %v2043_v56, %v2003_v47  ;;  %v2096_v0 = vmin.f32 %v2094_v59, %v2048_v2  ;;  %v2098_v63 = vmax.f32 %v2094_v59, %v2048_v2  ;;  %v1929_v41 = vpop.permute.xlu1 %1928 }
 0x9ab   : > { %v2093_v54 = vmin.f32 %v2091_v46, %v2045_v38  ;;  %v2095_v57 = vmax.f32 %v2091_v46, %v2045_v38  ;;  %v1923_v55 = vmax.f32 %v1913_v24, %v1919_v25  ;;  %v1925_v4 = vmin.f32 %v1913_v24, %v1919_v25 }
 0x9ac   : > { %v1932_v43 = vmax.f32 %v1924_v11, %v1927_v27  ;;  %v2136_v36 = vmax.f32 %v2134_v51, %v2096_v0  ;;  %v2138_v28 = vmin.f32 %v2134_v51, %v2096_v0  ;;  %v1934_v29 = vmin.f32 %v1924_v11, %v1927_v27 }
 0x9ad   : > { %v2133_v37 = vmax.f32 %v2089_v17, %v2093_v54  ;;  %v2135_v12 = vmin.f32 %v2089_v17, %v2093_v54  ;;  %v2007_v60 = vmin.f32 %v2005_v9, %v1923_v55  ;;  %v2009_v32 = vmax.f32 %v2005_v9, %v1923_v55  ;;  %v1947_v2 = vpop.permute.xlu0 %1946 }
 0x9ae   : > { %v2010_v3 = vmin.f32 %v2008_v44, %v1932_v43  ;;  %v2012_v8 = vmax.f32 %v2008_v44, %v1932_v43  ;;  %v1933_v16 = vmax.f32 %v1925_v4, %v1929_v41  ;;  %v2174_v26 = vmin.f32 %v2132_v31, %v2136_v36  ;;  %v1939_v56 = vpop.permute.xlu1 %1938 }
 0x9af   : > { %v2176_v7 = vmax.f32 %v2132_v31, %v2136_v36  ;;  %v2049_v5 = vmax.f32 %v2047_v33, %v2007_v60  ;;  %v1935_v40 = vmin.f32 %v1925_v4, %v1929_v41  ;;  %v2051_v22 = vmin.f32 %v2047_v33, %v2007_v60 }
 0x9b0   : > { %v2052_v23 = vmax.f32 %v2050_v18, %v2010_v3  ;;  %v2054_v15 = vmin.f32 %v2050_v18, %v2010_v3  ;;  %v2011_v39 = vmin.f32 %v2009_v32, %v1933_v16  ;;  %v2013_v1 = vmax.f32 %v2009_v32, %v1933_v16 }
 0x9b1   : > { %v2097_v6 = vmin.f32 %v2095_v57, %v2049_v5  ;;  %v2099_v10 = vmax.f32 %v2095_v57, %v2049_v5  ;;  %v1942_v21 = vmax.f32 %v1934_v29, %v1937_v35  ;;  %v1944_v48 = vmin.f32 %v1934_v29, %v1937_v35 }
 0x9b2   : > { %v2100_v30 = vmin.f32 %v2098_v63, %v2052_v23  ;;  %v2102_v62 = vmax.f32 %v2098_v63, %v2052_v23  ;;  %v2053_v13 = vmax.f32 %v2051_v22, %v2011_v39  ;;  %v2055_v50 = vmin.f32 %v2051_v22, %v2011_v39  ;;  %v1949_v43 = vpop.permute.xlu1 %1948 }
 0x9b3   : > { %v2137_v14 = vmax.f32 %v2135_v12, %v2097_v6  ;;  %v2139_v42 = vmin.f32 %v2135_v12, %v2097_v6  ;;  %v2014_v45 = vmin.f32 %v2012_v8, %v1942_v21  ;;  %v2016_v19 = vmax.f32 %v2012_v8, %v1942_v21 }
 0x9b4   : > { %v2140_v25 = vmax.f32 %v2138_v28, %v2100_v30  ;;  %v2142_v58 = vmin.f32 %v2138_v28, %v2100_v30  ;;  %v2101_v47 = vmin.f32 %v2099_v10, %v2053_v13  ;;  %v2103_v11 = vmax.f32 %v2099_v10, %v2053_v13 }
 0x9b5   : > { %v2175_v49 = vmin.f32 %v2133_v37, %v2137_v14  ;;  %v2177_v59 = vmax.f32 %v2133_v37, %v2137_v14  ;;  %v2056_v20 = vmax.f32 %v2054_v15, %v2014_v45  ;;  %v2058_v24 = vmin.f32 %v2054_v15, %v2014_v45 }
 0x9b6   : > { %v2178_v38 = vmin.f32 %v2176_v7, %v2140_v25  ;;  %v2180_v46 = vmax.f32 %v2176_v7, %v2140_v25  ;;  %v2141_v44 = vmax.f32 %v2139_v42, %v2101_v47  ;;  %v2143_v27 = vmin.f32 %v2139_v42, %v2101_v47 }
 0x9b7   : > { %v2104_v31 = vmin.f32 %v2102_v62, %v2056_v20  ;;  %v2106_v51 = vmax.f32 %v2102_v62, %v2056_v20  ;;  %v1943_v17 = vmax.f32 %v1935_v40, %v1939_v56  ;;  %v1945_v33 = vmin.f32 %v1935_v40, %v1939_v56 }
 0x9b8   : > { %v2212_v54 = vmax.f32 %v2174_v26, %v2178_v38  ;;  %v2214_v18 = vmin.f32 %v2174_v26, %v2178_v38  ;;  %v2179_v9 = vmin.f32 %v2177_v59, %v2141_v44  ;;  %v2181_v0 = vmax.f32 %v2177_v59, %v2141_v44 }
 0x9b9   : > { %v2144_v63 = vmax.f32 %v2142_v58, %v2104_v31  ;;  %v2146_v57 = vmin.f32 %v2142_v58, %v2104_v31  ;;  %v2015_v55 = vmin.f32 %v2013_v1, %v1943_v17  ;;  %v2017_v37 = vmax.f32 %v2013_v1, %v1943_v17 }
 0x9ba   : > { %v2213_v41 = vmax.f32 %v2175_v49, %v2179_v9  ;;  %v1952_v12 = vmax.f32 %v1944_v48, %v1947_v2  ;;  %v1954_v4 = vmin.f32 %v1944_v48, %v1947_v2  ;;  %v2215_v36 = vmin.f32 %v2175_v49, %v2179_v9 }
 0x9bb   : > { %v2182_v28 = vmin.f32 %v2180_v46, %v2144_v63  ;;  %v2184_v60 = vmax.f32 %v2180_v46, %v2144_v63  ;;  %v2057_v29 = vmax.f32 %v2055_v50, %v2015_v55  ;;  %v2059_v32 = vmin.f32 %v2055_v50, %v2015_v55 }
 0x9bc   : > { %v1956_v3 = vmax.f32 %v1954_v4, %v4411_v61  ;;  %v2018_v8 = vmin.f32 %v2016_v19, %v1952_v12  ;;  %v2020_v16 = vmax.f32 %v2016_v19, %v1952_v12  ;;  %v1953_v5 = vmax.f32 %v1945_v33, %v1949_v43  ;;  %v1965_v12 = vpop.permute.xlu1 %1964 }
 0x9bd   : > { %v2216_v35 = vmax.f32 %v2214_v18, %v2182_v28  ;;  %v2218_v26 = vmin.f32 %v2214_v18, %v2182_v28  ;;  %v2105_v7 = vmin.f32 %v2103_v11, %v2057_v29  ;;  %v1955_v15 = vmin.f32 %v1945_v33, %v1949_v43 }
 0x9be   : > { %v2022_v40 = vmin.f32 %v2020_v16, %v1956_v3  ;;  %v2060_v22 = vmax.f32 %v2058_v24, %v2018_v8  ;;  %v2062_v23 = vmin.f32 %v2058_v24, %v2018_v8  ;;  %v2107_v10 = vmax.f32 %v2103_v11, %v2057_v29 }
 0x9bf   : > { %v2258_v39 = vmin.f32 %v2212_v54, %v2216_v35  ;;  %v2260_v6 = vmax.f32 %v2212_v54, %v2216_v35  ;;  %v2145_v1 = vmax.f32 %v2143_v27, %v2105_v7  ;;  %v1957_v13 = vmax.f32 %v1955_v15, %v4417_v34 }
 0x9c0   : > { %v2064_v21 = vmax.f32 %v2062_v23, %v2022_v40  ;;  %v2108_v30 = vmin.f32 %v2106_v51, %v2060_v22  ;;  %v2110_v62 = vmax.f32 %v2106_v51, %v2060_v22  ;;  %v2147_v48 = vmin.f32 %v2143_v27, %v2105_v7 }
 0x9c1   : > { %v2183_v14 = vmin.f32 %v2181_v0, %v2145_v1  ;;  %v2019_v42 = vmin.f32 %v2017_v37, %v1953_v5  ;;  %v2021_v50 = vmax.f32 %v2017_v37, %v1953_v5  ;;  %v2185_v45 = vmax.f32 %v2181_v0, %v2145_v1  ;;  %v1963_v37 = vpop.permute.xlu0 %1962 }
 0x9c2   : > { %v2112_v25 = vmin.f32 %v2110_v62, %v2064_v21  ;;  %v2148_v58 = vmax.f32 %v2146_v57, %v2108_v30  ;;  %v2150_v47 = vmin.f32 %v2146_v57, %v2108_v30  ;;  %v1958_v59 = vmin.f32 %v1954_v4, %v4411_v61 }
 0x9c3   : > { %v2217_v19 = vmax.f32 %v2215_v36, %v2183_v14  ;;  %v2023_v56 = vmin.f32 %v2021_v50, %v1957_v13  ;;  %v2061_v49 = vmax.f32 %v2059_v32, %v2019_v42  ;;  %v2063_v46 = vmin.f32 %v2059_v32, %v2019_v42 }
 0x9c4   : > { %v2152_v11 = vmax.f32 %v2150_v47, %v2112_v25  ;;  %v2186_v20 = vmin.f32 %v2184_v60, %v2148_v58  ;;  %v2188_v38 = vmax.f32 %v2184_v60, %v2148_v58  ;;  %v2219_v44 = vmin.f32 %v2215_v36, %v2183_v14 }
 0x9c5   : > { %v2259_v24 = vmin.f32 %v2213_v41, %v2217_v19  ;;  %v2109_v31 = vmin.f32 %v2107_v10, %v2061_v49  ;;  %v2111_v27 = vmax.f32 %v2107_v10, %v2061_v49  ;;  %v2065_v54 = vmax.f32 %v2063_v46, %v2023_v56 }
 0x9c6   : > { %v4468_v51 = vmin.f32 %v2188_v38, %v2152_v11  ;;  %v2220_v17 = vmax.f32 %v2218_v26, %v2186_v20  ;;  %v4470_v2 = vmin.f32 %v2218_v26, %v2186_v20  ;;  %v2261_v18 = vmax.f32 %v2213_v41, %v2217_v19 }
 0x9c7   : > { %v2149_v9 = vmax.f32 %v2147_v48, %v2109_v31  ;;  %v2151_v33 = vmin.f32 %v2147_v48, %v2109_v31  ;;  %v2024_v0 = vmax.f32 %v2020_v16, %v1956_v3  ;;  %v2113_v55 = vmin.f32 %v2111_v27, %v2065_v54  ;;  %v1975_v48 = vpop.permute.xlu1 %1974 }
 0x9c8   : > { %v4474_v61 = vmax.f32 %v4470_v2, %v4468_v51  ;;  %v2262_v63 = vmin.f32 %v2260_v6, %v2220_v17  ;;  %v4476_v57 = vmax.f32 %v2260_v6, %v2220_v17  ;;  %v2066_v36 = vmin.f32 %v2062_v23, %v2022_v40 }
 0x9c9   : > { %v2187_v4 = vmin.f32 %v2185_v45, %v2149_v9  ;;  %v2189_v43 = vmax.f32 %v2185_v45, %v2149_v9  ;;  %v2114_v28 = vmax.f32 %v2110_v62, %v2064_v21  ;;  %v2153_v29 = vmax.f32 %v2151_v33, %v2113_v55  ;;  %v1973_v62 = vpop.permute.xlu0 %1972 }
 0x9ca   : > { %v4480_v41 = vmin.f32 %v4476_v57, %v4474_v61  ;;  %v4482_v60 = vmin.f32 %v2258_v39, %v2262_v63  ;;  %v2154_v32 = vmin.f32 %v2150_v47, %v2112_v25  ;;  %v4484_v3 = vmax.f32 %v2258_v39, %v2262_v63 }
 0x9cb   : > { %v2221_v8 = vmax.f32 %v2219_v44, %v2187_v4  ;;  %v4486_v16 = vmin.f32 %v2219_v44, %v2187_v4  ;;  %v1968_v35 = vmax.f32 %v1958_v59, %v1963_v37  ;;  %v4492_v7 = vmin.f32 %v2189_v43, %v2153_v29  ;;  %v1985_v9 = vpop.permute.xlu1 %1984 }
 0x9cc   : > { %v4490_v26 = vmax.f32 %v4482_v60, %v4480_v41  ;;  %v2192_v5 = vmax.f32 %v2188_v38, %v2152_v11  ;;  %v1959_v40 = vmin.f32 %v1955_v15, %v4417_v34  ;;  %v1970_v6 = vmin.f32 %v1958_v59, %v1963_v37 }
 0x9cd   : > { %v2263_v22 = vmin.f32 %v2261_v18, %v2221_v8  ;;  %v4495_v23 = vmax.f32 %v2261_v18, %v2221_v8  ;;  %v2026_v10 = vmin.f32 %v2024_v0, %v1968_v35  ;;  %v4499_v39 = vmax.f32 %v4486_v16, %v4492_v7  ;;  %v1983_v18 = vpop.permute.xlu0 %1982 }
 0x9ce   : > { %v2028_v1 = vmax.f32 %v2024_v0, %v1968_v35  ;;  %v2025_v21 = vmax.f32 %v2021_v50, %v1957_v13  ;;  %v2067_v30 = vmin.f32 %v2063_v46, %v2023_v56  ;;  %v2115_v34 = vmax.f32 %v2111_v27, %v2065_v54 }
 0x9cf   : > { %v4501_v14 = vmax.f32 %v2259_v24, %v2263_v22  ;;  %v4503_v42 = vmin.f32 %v2259_v24, %v2263_v22  ;;  %v2068_v45 = vmax.f32 %v2066_v36, %v2026_v10  ;;  %v4507_v15 = vmin.f32 %v4495_v23, %v4499_v39 }
 0x9d0   : > { %v2070_v25 = vmin.f32 %v2066_v36, %v2026_v10  ;;  %v2155_v58 = vmin.f32 %v2151_v33, %v2113_v55  ;;  %v1969_v47 = vmax.f32 %v1959_v40, %v1965_v12  ;;  %v2193_v59 = vmax.f32 %v2189_v43, %v2153_v29 }
 0x9d1   : > { %v2116_v19 = vmin.f32 %v2114_v28, %v2068_v45  ;;  %v2118_v49 = vmax.f32 %v2114_v28, %v2068_v45  ;;  %v1978_v13 = vmax.f32 %v1970_v6, %v1973_v62  ;;  %v4511_v50 = vmax.f32 %v4503_v42, %v4507_v15 }
 0x9d2   : > { %v1971_v56 = vmin.f32 %v1959_v40, %v1965_v12  ;;  %v2027_v11 = vmin.f32 %v2025_v21, %v1969_v47  ;;  %v2029_v20 = vmax.f32 %v2025_v21, %v1969_v47  ;;  %v1980_v44 = vmin.f32 %v1970_v6, %v1973_v62 }
 0x9d3   : > { %v2156_v38 = vmax.f32 %v2154_v32, %v2116_v19  ;;  %v2158_v46 = vmin.f32 %v2154_v32, %v2116_v19  ;;  %v2030_v24 = vmin.f32 %v2028_v1, %v1978_v13  ;;  %v2032_v17 = vmax.f32 %v2028_v1, %v1978_v13 }
 0x9d4   : > { %v2069_v31 = vmax.f32 %v2067_v30, %v2027_v11  ;;  %v2071_v27 = vmin.f32 %v2067_v30, %v2027_v11  ;;  %v1979_v54 = vmax.f32 %v1971_v56, %v1975_v48  ;;  %v1981_v55 = vmin.f32 %v1971_v56, %v1975_v48  ;;  %v2081_v11 = vpop.permute.xlu0 %2080 }
 0x9d5   : > { %v2194_v33 = vmin.f32 %v2192_v5, %v2156_v38  ;;  %v2196_v0 = vmax.f32 %v2192_v5, %v2156_v38  ;;  %v2072_v63 = vmax.f32 %v2070_v25, %v2030_v24  ;;  %v2074_v43 = vmin.f32 %v2070_v25, %v2030_v24  ;;  %v2083_v24 = vpop.permute.xlu1 %2082 }
 0x9d6   : > { %v2117_v37 = vmin.f32 %v2115_v34, %v2069_v31  ;;  %v2119_v4 = vmax.f32 %v2115_v34, %v2069_v31  ;;  %v2031_v12 = vmin.f32 %v2029_v20, %v1979_v54  ;;  %v2033_v28 = vmax.f32 %v2029_v20, %v1979_v54 }
 0x9d7   : > { %v2120_v36 = vmin.f32 %v2118_v49, %v2072_v63  ;;  %v1988_v29 = vmax.f32 %v1980_v44, %v1983_v18  ;;  %v1989_v32 = vmax.f32 %v1981_v55, %v1985_v9  ;;  %v2122_v40 = vmax.f32 %v2118_v49, %v2072_v63 }
 0x9d8   : > { %v2157_v8 = vmax.f32 %v2155_v58, %v2117_v37  ;;  %v2159_v35 = vmin.f32 %v2155_v58, %v2117_v37  ;;  %v2073_v22 = vmax.f32 %v2071_v27, %v2031_v12  ;;  %v2075_v10 = vmin.f32 %v2071_v27, %v2031_v12 }
 0x9d9   : > { %v2160_v6 = vmax.f32 %v2158_v46, %v2120_v36  ;;  %v2034_v1 = vmin.f32 %v2032_v17, %v1988_v29  ;;  %v2035_v21 = vmin.f32 %v2033_v28, %v1989_v32  ;;  %v2162_v5 = vmin.f32 %v2158_v46, %v2120_v36 }
 0x9da   : > { %v4513_v30 = vmin.f32 %v2193_v59, %v2157_v8  ;;  %v2121_v62 = vmin.f32 %v2119_v4, %v2073_v22  ;;  %v2123_v48 = vmax.f32 %v2119_v4, %v2073_v22  ;;  %v2197_v19 = vmax.f32 %v2193_v59, %v2157_v8 }
 0x9db   : > { %v2076_v45 = vmax.f32 %v2074_v43, %v2034_v1  ;;  %v2077_v34 = vmax.f32 %v2075_v10, %v2035_v21  ;;  %v2078_v25 = vmin.f32 %v2074_v43, %v2034_v1  ;;  %v2079_v47 = vmin.f32 %v2075_v10, %v2035_v21 }
 0x9dc   : > { %v2161_v13 = vmax.f32 %v2159_v35, %v2121_v62  ;;  %v2163_v56 = vmin.f32 %v2159_v35, %v2121_v62  ;;  %v2198_v58 = vmin.f32 %v2196_v0, %v2160_v6  ;;  %v2200_v17 = vmax.f32 %v2196_v0, %v2160_v6 }
 0x9dd   : > { %v2124_v49 = vmin.f32 %v2122_v40, %v2076_v45  ;;  %v2125_v20 = vmin.f32 %v2123_v48, %v2077_v34  ;;  %v2126_v38 = vmax.f32 %v2122_v40, %v2076_v45  ;;  %v2086_v44 = vmax.f32 %v2078_v25, %v2081_v11 }
 0x9de   : > { %v2127_v31 = vmax.f32 %v2123_v48, %v2077_v34  ;;  %v2087_v27 = vmax.f32 %v2079_v47, %v2083_v24  ;;  %v2226_v46 = vmin.f32 %v4470_v2, %v4468_v51  ;;  %v2268_v59 = vmax.f32 %v4476_v57, %v4474_v61 }
 0x9df   : > { %v2164_v54 = vmax.f32 %v2162_v5, %v2124_v49  ;;  %v2166_v18 = vmin.f32 %v2162_v5, %v2124_v49  ;;  %v2128_v9 = vmin.f32 %v2126_v38, %v2086_v44  ;;  %v2167_v63 = vmin.f32 %v2163_v56, %v2125_v20  ;;  %v2251_v38 = vpop.permute.xlu0 %2250 }
 0x9e0   : > { %v2129_v55 = vmin.f32 %v2127_v31, %v2087_v27  ;;  %v2228_v37 = vmax.f32 %v2226_v46, %v2194_v33  ;;  %v2230_v4 = vmin.f32 %v2226_v46, %v2194_v33  ;;  %v2165_v29 = vmax.f32 %v2163_v56, %v2125_v20 }
 0x9e1   : > { %v2168_v43 = vmax.f32 %v2166_v18, %v2128_v9  ;;  %v2170_v12 = vmin.f32 %v2166_v18, %v2128_v9  ;;  %v2202_v36 = vmin.f32 %v2200_v17, %v2164_v54  ;;  %v2204_v28 = vmax.f32 %v2200_v17, %v2164_v54 }
 0x9e2   : > { %v2171_v32 = vmin.f32 %v2167_v63, %v2129_v55  ;;  %v2232_v0 = vmax.f32 %v2230_v4, %v2198_v58  ;;  %v2234_v8 = vmin.f32 %v2230_v4, %v2198_v58  ;;  %v2270_v40 = vmin.f32 %v2268_v59, %v2228_v37 }
 0x9e3   : > { %v2172_v51 = vmax.f32 %v2170_v12, %v4431_v53  ;;  %v2206_v2 = vmin.f32 %v2204_v28, %v2168_v43  ;;  %v2208_v35 = vmax.f32 %v2204_v28, %v2168_v43  ;;  %v2272_v61 = vmax.f32 %v2268_v59, %v2228_v37 }
 0x9e4   : > { %v2236_v22 = vmax.f32 %v2234_v8, %v2202_v36  ;;  %v2238_v6 = vmin.f32 %v2234_v8, %v2202_v36  ;;  %v2298_v57 = vmin.f32 %v4482_v60, %v4480_v41  ;;  %v2169_v33 = vmax.f32 %v2167_v63, %v2129_v55 }
 0x9e5   : > { %v2210_v10 = vmin.f32 %v2208_v35, %v2172_v51  ;;  %v4524_v1 = vmax.f32 %v4484_v3, %v4490_v26  ;;  %v2173_v21 = vmax.f32 %v2171_v32, %v4437_v52  ;;  %v2274_v53 = vmin.f32 %v2272_v61, %v2232_v0 }
 0x9e6   : > { %v2240_v5 = vmax.f32 %v2238_v6, %v2206_v2  ;;  %v2242_v62 = vmin.f32 %v2238_v6, %v2206_v2  ;;  %v2276_v48 = vmax.f32 %v2272_v61, %v2232_v0  ;;  %v2300_v45 = vmax.f32 %v2298_v57, %v2270_v40 }
 0x9e7   : > { %v2302_v34 = vmin.f32 %v2298_v57, %v2270_v40  ;;  %v2201_v25 = vmax.f32 %v2197_v19, %v2161_v13  ;;  %v2227_v47 = vmin.f32 %v4486_v16, %v4492_v7  ;;  %v2199_v52 = vmin.f32 %v2197_v19, %v2161_v13 }
 0x9e8   : > { %v2244_v56 = vmax.f32 %v2242_v62, %v2210_v10  ;;  %v2246_v41 = vmin.f32 %v2242_v62, %v2210_v10  ;;  %v2278_v60 = vmin.f32 %v2276_v48, %v2236_v22  ;;  %v2280_v11 = vmax.f32 %v2276_v48, %v2236_v22 }
 0x9e9   : > { %v2304_v58 = vmax.f32 %v2302_v34, %v2274_v53  ;;  %v2306_v49 = vmin.f32 %v2302_v34, %v2274_v53  ;;  %v2338_v20 = vmax.f32 %v4524_v1, %v2300_v45  ;;  %v2205_v27 = vmax.f32 %v2201_v25, %v2165_v29 }
 0x9ea   : > { %v2282_v44 = vmin.f32 %v2280_v11, %v2240_v5  ;;  %v2284_v24 = vmax.f32 %v2280_v11, %v2240_v5  ;;  %v2256_v31 = vmax.f32 %v2246_v41, %v2251_v38  ;;  %v2203_v18 = vmin.f32 %v2201_v25, %v2165_v29 }
 0x9eb   : > { %v2308_v17 = vmax.f32 %v2306_v49, %v2278_v60  ;;  %v2310_v46 = vmin.f32 %v2306_v49, %v2278_v60  ;;  %v2342_v54 = vmax.f32 %v2338_v20, %v2304_v58  ;;  %v2209_v7 = vmax.f32 %v2205_v27, %v2169_v33 }
 0x9ec   : > { %v2286_v9 = vmin.f32 %v2284_v24, %v2244_v56  ;;  %v2288_v16 = vmax.f32 %v2284_v24, %v2244_v56  ;;  %v2229_v59 = vmax.f32 %v2227_v47, %v4513_v30  ;;  %v2231_v4 = vmin.f32 %v2227_v47, %v4513_v30 }
 0x9ed   : > { %v2312_v63 = vmax.f32 %v2310_v46, %v2282_v44  ;;  %v2314_v55 = vmin.f32 %v2310_v46, %v2282_v44  ;;  %v2346_v37 = vmax.f32 %v2342_v54, %v2308_v17  ;;  %v2207_v19 = vmin.f32 %v2205_v27, %v2169_v33 }
 0x9ee   : > { %v2290_v43 = vmin.f32 %v2288_v16, %v2256_v31  ;;  %v2269_v13 = vmax.f32 %v4495_v23, %v4499_v39  ;;  %v2299_v12 = vmin.f32 %v4503_v42, %v4507_v15  ;;  %v2233_v32 = vmax.f32 %v2231_v4, %v2199_v52 }
 0x9ef   : > { %v2316_v36 = vmax.f32 %v2314_v55, %v2286_v9  ;;  %v2318_v28 = vmin.f32 %v2314_v55, %v2286_v9  ;;  %v2350_v29 = vmax.f32 %v2346_v37, %v2312_v63  ;;  %v2211_v0 = vmin.f32 %v2209_v7, %v2173_v21 }
 0x9f0   : > { %v2235_v8 = vmin.f32 %v2231_v4, %v2199_v52  ;;  %v2271_v51 = vmin.f32 %v2269_v13, %v2229_v59  ;;  %v2273_v2 = vmax.f32 %v2269_v13, %v2229_v59  ;;  %v2335_v30 = vmax.f32 %v4501_v14, %v4511_v50  ;;  %v2253_v52 = vpop.permute.xlu1 %2252  ;;  %v2325_v59 = vpop.permute.xlu0 %2324 }
 0x9f1   : > { %v2354_v35 = vmax.f32 %v2350_v29, %v2316_v36  ;;  %v2320_v40 = vmax.f32 %v2318_v28, %v2290_v43  ;;  %v2322_v22 = vmin.f32 %v2318_v28, %v2290_v43  ;;  %v2332_v33 = vmin.f32 %v4484_v3, %v4490_v26 }
 0x9f2   : > { %v2237_v6 = vmax.f32 %v2235_v8, %v2203_v18  ;;  %v2239_v61 = vmin.f32 %v2235_v8, %v2203_v18  ;;  %v2275_v23 = vmin.f32 %v2273_v2, %v2233_v32  ;;  %v2277_v39 = vmax.f32 %v2273_v2, %v2233_v32 }
 0x9f3   : > { %v4538_v57 = vmin.f32 %v2354_v35, %v2320_v40  ;;  %v2301_v42 = vmax.f32 %v2299_v12, %v2271_v51  ;;  %v2303_v15 = vmin.f32 %v2299_v12, %v2271_v51  ;;  %v2336_v25 = vmin.f32 %v4524_v1, %v2300_v45 }
 0x9f4   : > { %v2241_v10 = vmax.f32 %v2239_v61, %v2207_v19  ;;  %v2243_v21 = vmin.f32 %v2239_v61, %v2207_v19  ;;  %v2279_v5 = vmin.f32 %v2277_v39, %v2237_v6  ;;  %v2281_v62 = vmax.f32 %v2277_v39, %v2237_v6  ;;  %v2327_v61 = vpop.permute.xlu1 %2326 }
 0x9f5   : > { %v2305_v53 = vmax.f32 %v2303_v15, %v2275_v23  ;;  %v2307_v48 = vmin.f32 %v2303_v15, %v2275_v23  ;;  %v2339_v34 = vmax.f32 %v2335_v30, %v2301_v42  ;;  %v2340_v44 = vmin.f32 %v2338_v20, %v2304_v58 }
 0x9f6   : > { %v2245_v47 = vmax.f32 %v2243_v21, %v2211_v0  ;;  %v2247_v56 = vmin.f32 %v2243_v21, %v2211_v0  ;;  %v2283_v41 = vmin.f32 %v2281_v62, %v2241_v10  ;;  %v2285_v60 = vmax.f32 %v2281_v62, %v2241_v10 }
 0x9f7   : > { %v2309_v11 = vmax.f32 %v2307_v48, %v2279_v5  ;;  %v2311_v49 = vmin.f32 %v2307_v48, %v2279_v5  ;;  %v2343_v38 = vmax.f32 %v2339_v34, %v2305_v53  ;;  %v2344_v31 = vmin.f32 %v2342_v54, %v2308_v17 }
 0x9f8   : > { %v2287_v24 = vmin.f32 %v2285_v60, %v2245_v47  ;;  %v2289_v3 = vmax.f32 %v2285_v60, %v2245_v47  ;;  %v2257_v26 = vmax.f32 %v2247_v56, %v2253_v52  ;;  %v2348_v9 = vmin.f32 %v2346_v37, %v2312_v63 }
 0x9f9   : > { %v2313_v27 = vmax.f32 %v2311_v49, %v2283_v41  ;;  %v2315_v46 = vmin.f32 %v2311_v49, %v2283_v41  ;;  %v2347_v18 = vmax.f32 %v2343_v38, %v2309_v11  ;;  %v2352_v7 = vmin.f32 %v2350_v29, %v2316_v36 }
 0x9fa   : > { %v2291_v16 = vmin.f32 %v2289_v3, %v2257_v26  ;;  %v2358_v1 = vmax.f32 %v2354_v35, %v2320_v40  ;;  %v2364_v45 = vmin.f32 %v2332_v33, %v2336_v25  ;;  %v2330_v19 = vmax.f32 %v2322_v22, %v2325_v59 }
 0x9fb   : > { %v2317_v55 = vmax.f32 %v2315_v46, %v2287_v24  ;;  %v2319_v4 = vmin.f32 %v2315_v46, %v2287_v24  ;;  %v2351_v43 = vmax.f32 %v2347_v18, %v2313_v27  ;;  %v2362_v13 = vmax.f32 %v2332_v33, %v2336_v25 }
 0x9fc   : > { %v2366_v12 = vmax.f32 %v2364_v45, %v2340_v44  ;;  %v2368_v58 = vmin.f32 %v2364_v45, %v2340_v44  ;;  %v2333_v20 = vmin.f32 %v4501_v14, %v4511_v50  ;;  %v2337_v32 = vmin.f32 %v2335_v30, %v2301_v42 }
 0x9fd   : > { %v2355_v17 = vmax.f32 %v2351_v43, %v2317_v55  ;;  %v2321_v54 = vmax.f32 %v2319_v4, %v2291_v16  ;;  %v2323_v28 = vmin.f32 %v2319_v4, %v2291_v16  ;;  %v2360_v29 = vmin.f32 %v2358_v1, %v2330_v19 }
 0x9fe   : > { %v2370_v63 = vmax.f32 %v2368_v58, %v2344_v31  ;;  %v2372_v37 = vmin.f32 %v2368_v58, %v2344_v31  ;;  %v2400_v36 = vmax.f32 %v2362_v13, %v2366_v12  ;;  %v2341_v8 = vmin.f32 %v2339_v34, %v2305_v53  ;;  %v2391_v31 = vpop.permute.xlu0 %2390 }
 0x9ff   : > { %v2357_v0 = vmin.f32 %v2355_v17, %v2321_v54  ;;  %v2345_v51 = vmin.f32 %v2343_v38, %v2309_v11  ;;  %v2349_v2 = vmin.f32 %v2347_v18, %v2313_v27  ;;  %v2359_v6 = vmax.f32 %v2355_v17, %v2321_v54 }
 0xa00   : > { %v2374_v35 = vmax.f32 %v2372_v37, %v2348_v9  ;;  %v2376_v40 = vmin.f32 %v2372_v37, %v2348_v9  ;;  %v2404_v22 = vmax.f32 %v2400_v36, %v2370_v63  ;;  %v2353_v23 = vmin.f32 %v2351_v43, %v2317_v55 }
 0xa01   : > { %v2363_v39 = vmax.f32 %v2333_v20, %v2337_v32  ;;  %v2365_v14 = vmin.f32 %v2333_v20, %v2337_v32  ;;  %v2331_v50 = vmax.f32 %v2323_v28, %v2327_v61  ;;  %v2402_v42 = vmin.f32 %v2400_v36, %v2370_v63 }
 0xa02   : > { %v2378_v15 = vmax.f32 %v2376_v40, %v2352_v7  ;;  %v2380_v33 = vmin.f32 %v2376_v40, %v2352_v7  ;;  %v2408_v30 = vmax.f32 %v2404_v22, %v2374_v35  ;;  %v2398_v62 = vmin.f32 %v2362_v13, %v2366_v12 }
 0xa03   : > { %v2367_v10 = vmax.f32 %v2365_v14, %v2341_v8  ;;  %v2369_v21 = vmin.f32 %v2365_v14, %v2341_v8  ;;  %v2361_v5 = vmin.f32 %v2359_v6, %v2331_v50  ;;  %v2406_v25 = vmin.f32 %v2404_v22, %v2374_v35 }
 0xa04   : > { %v2382_v53 = vmax.f32 %v2380_v33, %v4538_v57  ;;  %v2384_v48 = vmin.f32 %v2380_v33, %v4538_v57  ;;  %v2412_v34 = vmax.f32 %v2408_v30, %v2378_v15  ;;  %v2410_v60 = vmin.f32 %v2408_v30, %v2378_v15 }
 0xa05   : > { %v2371_v47 = vmax.f32 %v2369_v21, %v2345_v51  ;;  %v2373_v56 = vmin.f32 %v2369_v21, %v2345_v51  ;;  %v2401_v41 = vmax.f32 %v2363_v39, %v2367_v10  ;;  %v2424_v52 = vmax.f32 %v2398_v62, %v2402_v42 }
 0xa06   : > { %v2416_v11 = vmax.f32 %v2412_v34, %v2382_v53  ;;  %v2386_v49 = vmax.f32 %v2384_v48, %v2360_v29  ;;  %v2388_v38 = vmin.f32 %v2384_v48, %v2360_v29  ;;  %v2426_v26 = vmin.f32 %v2398_v62, %v2402_v42 }
 0xa07   : > { %v2375_v44 = vmax.f32 %v2373_v56, %v2349_v2  ;;  %v2377_v24 = vmin.f32 %v2373_v56, %v2349_v2  ;;  %v2405_v3 = vmax.f32 %v2401_v41, %v2371_v47  ;;  %v2414_v46 = vmin.f32 %v2412_v34, %v2382_v53 }
 0xa08   : > { %v2418_v27 = vmin.f32 %v2416_v11, %v2386_v49  ;;  %v2420_v18 = vmax.f32 %v2416_v11, %v2386_v49  ;;  %v2396_v9 = vmax.f32 %v2388_v38, %v2391_v31  ;;  %v2428_v1 = vmax.f32 %v2426_v26, %v2406_v25 }
 0xa09   : > { %v2379_v57 = vmax.f32 %v2377_v24, %v2353_v23  ;;  %v2381_v16 = vmin.f32 %v2377_v24, %v2353_v23  ;;  %v2409_v7 = vmax.f32 %v2405_v3, %v2375_v44  ;;  %v2430_v45 = vmin.f32 %v2426_v26, %v2406_v25 }
 0xa0a   : > { %v2422_v59 = vmin.f32 %v2420_v18, %v2396_v9  ;;  %v2399_v55 = vmin.f32 %v2363_v39, %v2367_v10  ;;  %v2403_v4 = vmin.f32 %v2401_v41, %v2371_v47  ;;  %v2407_v12 = vmin.f32 %v2405_v3, %v2375_v44  ;;  %v2393_v39 = vpop.permute.xlu1 %2392  ;;  %v2449_v41 = vpop.permute.xlu0 %2448 }
 0xa0b   : > { %v2383_v43 = vmax.f32 %v2381_v16, %v2357_v0  ;;  %v2385_v19 = vmin.f32 %v2381_v16, %v2357_v0  ;;  %v2413_v13 = vmax.f32 %v2409_v7, %v2379_v57  ;;  %v2432_v58 = vmax.f32 %v2430_v45, %v2410_v60 }
 0xa0c   : > { %v2434_v20 = vmin.f32 %v2430_v45, %v2410_v60  ;;  %v2456_v17 = vmin.f32 %v2424_v52, %v2428_v1  ;;  %v2458_v54 = vmax.f32 %v2424_v52, %v2428_v1  ;;  %v2411_v37 = vmin.f32 %v2409_v7, %v2379_v57 }
 0xa0d   : > { %v2417_v28 = vmax.f32 %v2413_v13, %v2383_v43  ;;  %v2387_v32 = vmax.f32 %v2385_v19, %v2361_v5  ;;  %v2389_v63 = vmin.f32 %v2385_v19, %v2361_v5  ;;  %v2415_v2 = vmin.f32 %v2413_v13, %v2383_v43 }
 0xa0e   : > { %v2436_v36 = vmax.f32 %v2434_v20, %v2414_v46  ;;  %v2438_v29 = vmin.f32 %v2434_v20, %v2414_v46  ;;  %v2460_v8 = vmin.f32 %v2458_v54, %v2432_v58  ;;  %v2462_v51 = vmax.f32 %v2458_v54, %v2432_v58  ;;  %v2451_v43 = vpop.permute.xlu1 %2450 }
 0xa0f   : > { %v2421_v35 = vmax.f32 %v2417_v28, %v2387_v32  ;;  %v2425_v40 = vmax.f32 %v2399_v55, %v2403_v4  ;;  %v2427_v22 = vmin.f32 %v2399_v55, %v2403_v4  ;;  %v2397_v33 = vmax.f32 %v2389_v63, %v2393_v39 }
 0xa10   : > { %v2440_v6 = vmax.f32 %v2438_v29, %v2418_v27  ;;  %v2442_v0 = vmin.f32 %v2438_v29, %v2418_v27  ;;  %v2464_v61 = vmin.f32 %v2462_v51, %v2436_v36  ;;  %v2466_v23 = vmax.f32 %v2462_v51, %v2436_v36 }
 0xa11   : > { %v2482_v14 = vmin.f32 %v2456_v17, %v2460_v8  ;;  %v2429_v50 = vmax.f32 %v2427_v22, %v2407_v12  ;;  %v2431_v15 = vmin.f32 %v2427_v22, %v2407_v12  ;;  %v2419_v5 = vmin.f32 %v2417_v28, %v2387_v32 }
 0xa12   : > { %v2468_v30 = vmin.f32 %v2466_v23, %v2440_v6  ;;  %v2470_v42 = vmax.f32 %v2466_v23, %v2440_v6  ;;  %v2444_v10 = vmax.f32 %v2442_v0, %v2422_v59  ;;  %v2446_v21 = vmin.f32 %v2442_v0, %v2422_v59 }
 0xa13   : > { %v2486_v62 = vmin.f32 %v2482_v14, %v2464_v61  ;;  %v2433_v53 = vmax.f32 %v2431_v15, %v2411_v37  ;;  %v2435_v48 = vmin.f32 %v2431_v15, %v2411_v37  ;;  %v2459_v25 = vmax.f32 %v2425_v40, %v2429_v50 }
 0xa14   : > { %v2472_v34 = vmin.f32 %v2470_v42, %v2444_v10  ;;  %v2423_v47 = vmin.f32 %v2421_v35, %v2397_v33  ;;  %v2474_v56 = vmax.f32 %v2470_v42, %v2444_v10  ;;  %v2454_v38 = vmax.f32 %v2446_v21, %v2449_v41  ;;  %v2880_v35 = vld [vmem:[#allocation4 + $0x4] sm:$0xff] }
 0xa15   : > { %v2490_v60 = vmin.f32 %v2486_v62, %v2468_v30  ;;  %v2437_v11 = vmax.f32 %v2435_v48, %v2415_v2  ;;  %v2439_v49 = vmin.f32 %v2435_v48, %v2415_v2  ;;  %v2457_v52 = vmin.f32 %v2425_v40, %v2429_v50 }
 0xa16   : > { %v2461_v44 = vmin.f32 %v2459_v25, %v2433_v53  ;;  %v2463_v24 = vmax.f32 %v2459_v25, %v2433_v53  ;;  %v2484_v27 = vmax.f32 %v2482_v14, %v2464_v61  ;;  %v2476_v57 = vmin.f32 %v2474_v56, %v2454_v38  ;;  %v2881_v25 = vld [vmem:[#allocation4 + $0xc] sm:$0xff] }
 0xa17   : > { %v2441_v3 = vmax.f32 %v2439_v49, %v2419_v5  ;;  %v2443_v26 = vmin.f32 %v2439_v49, %v2419_v5  ;;  %v2494_v31 = vmin.f32 %v2490_v60, %v2472_v34  ;;  %v2480_v1 = vmax.f32 %v2456_v17, %v2460_v8 }
 0xa18   : > { %v2465_v46 = vmin.f32 %v2463_v24, %v2437_v11  ;;  %v2467_v18 = vmax.f32 %v2463_v24, %v2437_v11  ;;  %v2483_v9 = vmin.f32 %v2457_v52, %v2461_v44  ;;  %v2488_v45 = vmax.f32 %v2486_v62, %v2468_v30  ;;  %v2539_v24 = vpop.permute.xlu0 %2538 }
 0xa19   : > { %v2445_v16 = vmax.f32 %v2443_v26, %v2423_v47  ;;  %v2447_v7 = vmin.f32 %v2443_v26, %v2423_v47  ;;  %v2492_v19 = vmax.f32 %v2490_v60, %v2472_v34  ;;  %v2498_v13 = vmin.f32 %v2494_v31, %v2476_v57 }
 0xa1a   : > { %v2469_v59 = vmin.f32 %v2467_v18, %v2441_v3  ;;  %v2471_v55 = vmax.f32 %v2467_v18, %v2441_v3  ;;  %v2487_v4 = vmin.f32 %v2483_v9, %v2465_v46  ;;  %v2504_v58 = vmax.f32 %v2480_v1, %v2484_v27 }
 0xa1b   : > { %v2455_v12 = vmax.f32 %v2447_v7, %v2451_v43  ;;  %v2485_v32 = vmax.f32 %v2483_v9, %v2465_v46  ;;  %v2496_v63 = vmax.f32 %v2494_v31, %v2476_v57  ;;  %v2502_v37 = vmin.f32 %v2480_v1, %v2484_v27 }
 0xa1c   : > { %v2491_v20 = vmin.f32 %v2487_v4, %v2469_v59  ;;  %v2473_v54 = vmin.f32 %v2471_v55, %v2445_v16  ;;  %v2475_v28 = vmax.f32 %v2471_v55, %v2445_v16  ;;  %v2506_v36 = vmin.f32 %v2504_v58, %v2488_v45 }
 0xa1d   : > { %v2508_v29 = vmax.f32 %v2504_v58, %v2488_v45  ;;  %v2481_v17 = vmax.f32 %v2457_v52, %v2461_v44  ;;  %v2489_v8 = vmax.f32 %v2487_v4, %v2469_v59  ;;  %v2500_v40 = vmax.f32 %v2498_v13, %v2880_v35 }
 0xa1e   : > { %v2495_v51 = vmin.f32 %v2491_v20, %v2473_v54  ;;  %v2477_v2 = vmin.f32 %v2475_v28, %v2455_v12  ;;  %v2522_v0 = vmin.f32 %v2502_v37, %v2506_v36  ;;  %v2493_v61 = vmax.f32 %v2491_v20, %v2473_v54 }
 0xa1f   : > { %v2510_v22 = vmin.f32 %v2508_v29, %v2492_v19  ;;  %v2512_v6 = vmax.f32 %v2508_v29, %v2492_v19  ;;  %v2505_v39 = vmax.f32 %v2481_v17, %v2485_v32  ;;  %v2520_v42 = vmax.f32 %v2502_v37, %v2506_v36 }
 0xa20   : > { %v2499_v23 = vmin.f32 %v2495_v51, %v2477_v2  ;;  %v2497_v30 = vmax.f32 %v2495_v51, %v2477_v2  ;;  %v2503_v48 = vmin.f32 %v2481_v17, %v2485_v32  ;;  %v2541_v32 = vpop.permute.xlu1 %2540 }
 0xa21   : > { %v2514_v14 = vmin.f32 %v2512_v6, %v2496_v63  ;;  %v2516_v50 = vmax.f32 %v2512_v6, %v2496_v63  ;;  %v2524_v15 = vmax.f32 %v2522_v0, %v2510_v22  ;;  %v2526_v33 = vmin.f32 %v2522_v0, %v2510_v22 }
 0xa22   : > { %v2507_v10 = vmin.f32 %v2505_v39, %v2489_v8  ;;  %v2509_v21 = vmax.f32 %v2505_v39, %v2489_v8  ;;  %v2501_v47 = vmax.f32 %v2499_v23, %v2881_v25  ;;  %v2573_v8 = vpop.permute.xlu0 %2572 }
 0xa23   : > { %v2518_v5 = vmin.f32 %v2516_v50, %v2500_v40  ;;  %v2528_v62 = vmax.f32 %v2526_v33, %v2514_v14  ;;  %v2530_v53 = vmin.f32 %v2526_v33, %v2514_v14  ;;  %v2548_v34 = vmax.f32 %v2520_v42, %v2524_v15 }
 0xa24   : > { %v2511_v56 = vmin.f32 %v2509_v21, %v2493_v61  ;;  %v2513_v41 = vmax.f32 %v2509_v21, %v2493_v61  ;;  %v2546_v49 = vmin.f32 %v2520_v42, %v2524_v15  ;;  %v2523_v38 = vmin.f32 %v2503_v48, %v2507_v10  ;;  %v2575_v21 = vpop.permute.xlu1 %2574 }
 0xa25   : > { %v2532_v60 = vmax.f32 %v2530_v53, %v2518_v5  ;;  %v2534_v11 = vmin.f32 %v2530_v53, %v2518_v5  ;;  %v2550_v52 = vmin.f32 %v2548_v34, %v2528_v62  ;;  %v2552_v44 = vmax.f32 %v2548_v34, %v2528_v62 }
 0xa26   : > { %v2515_v3 = vmin.f32 %v2513_v41, %v2497_v30  ;;  %v2517_v26 = vmax.f32 %v2513_v41, %v2497_v30  ;;  %v2525_v27 = vmax.f32 %v2523_v38, %v2511_v56  ;;  %v2527_v46 = vmin.f32 %v2523_v38, %v2511_v56  ;;  %v2599_v25 = vpop.permute.xlu0 %2598 }
 0xa27   : > { %v2544_v31 = vmax.f32 %v2534_v11, %v2539_v24  ;;  %v2554_v18 = vmin.f32 %v2552_v44, %v2532_v60  ;;  %v2556_v9 = vmax.f32 %v2552_v44, %v2532_v60  ;;  %v2562_v57 = vmin.f32 %v2546_v49, %v2550_v52 }
 0xa28   : > { %v2521_v16 = vmax.f32 %v2503_v48, %v2507_v10  ;;  %v2560_v7 = vmax.f32 %v2546_v49, %v2550_v52  ;;  %v2519_v1 = vmin.f32 %v2517_v26, %v2501_v47  ;;  %v2529_v45 = vmax.f32 %v2527_v46, %v2515_v3  ;;  %v2601_v44 = vpop.permute.xlu1 %2600 }
 0xa29   : > { %v2531_v59 = vmin.f32 %v2527_v46, %v2515_v3  ;;  %v2564_v55 = vmax.f32 %v2562_v57, %v2554_v18  ;;  %v2566_v4 = vmin.f32 %v2562_v57, %v2554_v18  ;;  %v2558_v43 = vmin.f32 %v2556_v9, %v2544_v31 }
 0xa2a   : > { %v2549_v19 = vmax.f32 %v2521_v16, %v2525_v27  ;;  %v2547_v63 = vmin.f32 %v2521_v16, %v2525_v27  ;;  %v2617_v31 = vpop.permute.xlu0 %2616 }
 0xa2b   : > { %v2533_v13 = vmax.f32 %v2531_v59, %v2519_v1  ;;  %v2535_v12 = vmin.f32 %v2531_v59, %v2519_v1  ;;  %v2582_v58 = vmax.f32 %v2560_v7, %v2564_v55  ;;  %v2568_v20 = vmax.f32 %v2566_v4, %v2558_v43 }
 0xa2c   : > { %v2551_v54 = vmin.f32 %v2549_v19, %v2529_v45  ;;  %v2553_v28 = vmax.f32 %v2549_v19, %v2529_v45  ;;  %v2570_v36 = vmin.f32 %v2566_v4, %v2558_v43  ;;  %v2580_v17 = vmin.f32 %v2560_v7, %v2564_v55  ;;  %v2619_v7 = vpop.permute.xlu1 %2618 }
 0xa2d   : > { %v2545_v37 = vmax.f32 %v2535_v12, %v2541_v32  ;;  %v2584_v29 = vmin.f32 %v2582_v58, %v2568_v20  ;;  %v2586_v40 = vmax.f32 %v2582_v58, %v2568_v20 }
 0xa2e   : > { %v2555_v51 = vmin.f32 %v2553_v28, %v2533_v13  ;;  %v2557_v2 = vmax.f32 %v2553_v28, %v2533_v13  ;;  %v2563_v35 = vmin.f32 %v2547_v63, %v2551_v54  ;;  %v2578_v22 = vmax.f32 %v2570_v36, %v2573_v8 }
 0xa2f   : > { %v2592_v0 = vmin.f32 %v2580_v17, %v2584_v29  ;;  %v2561_v61 = vmax.f32 %v2547_v63, %v2551_v54  ;;  %v2590_v50 = vmax.f32 %v2580_v17, %v2584_v29 }
 0xa30   : > { %v2559_v6 = vmin.f32 %v2557_v2, %v2545_v37  ;;  %v2565_v23 = vmax.f32 %v2563_v35, %v2555_v51  ;;  %v2567_v39 = vmin.f32 %v2563_v35, %v2555_v51  ;;  %v2588_v14 = vmin.f32 %v2586_v40, %v2578_v22 }
 0xa32   : > { %v2583_v15 = vmax.f32 %v2561_v61, %v2565_v23  ;;  %v2569_v33 = vmax.f32 %v2567_v39, %v2559_v6  ;;  %v2594_v30 = vmax.f32 %v2592_v0, %v2588_v14  ;;  %v2571_v42 = vmin.f32 %v2567_v39, %v2559_v6 }
 0xa33   : > { %v2581_v10 = vmin.f32 %v2561_v61, %v2565_v23  ;;  %v2596_v5 = vmin.f32 %v2592_v0, %v2588_v14 }
 0xa34   : > { %v2585_v62 = vmin.f32 %v2583_v15, %v2569_v33  ;;  %v2587_v53 = vmax.f32 %v2583_v15, %v2569_v33  ;;  %v2579_v48 = vmax.f32 %v2571_v42, %v2575_v21  ;;  %v2608_v34 = vmax.f32 %v2590_v50, %v2594_v30 }
 0xa35   : > { %v2604_v47 = vmax.f32 %v2596_v5, %v2599_v25  ;;  %v2606_v11 = vmin.f32 %v2590_v50, %v2594_v30 }
 0xa36   : > { %v2593_v56 = vmin.f32 %v2581_v10, %v2585_v62  ;;  %v2589_v41 = vmin.f32 %v2587_v53, %v2579_v48  ;;  %v2591_v38 = vmax.f32 %v2581_v10, %v2585_v62 }
 0xa37   : > { %v2610_v60 = vmin.f32 %v2608_v34, %v2604_v47 }
 0xa38   : > { %v2595_v49 = vmax.f32 %v2593_v56, %v2589_v41  ;;  %v2597_v52 = vmin.f32 %v2593_v56, %v2589_v41 }
 0xa39   : > { %v2614_v24 = vmax.f32 %v2606_v11, %v2610_v60  ;;  %v2612_v27 = vmin.f32 %v2606_v11, %v2610_v60 }
 0xa3a   : > { %v2609_v3 = vmax.f32 %v2591_v38, %v2595_v49  ;;  %v2605_v26 = vmax.f32 %v2597_v52, %v2601_v44  ;;  %v2607_v9 = vmin.f32 %v2591_v38, %v2595_v49 }
 0xa3b   : > { %v2622_v46 = vmin.f32 %v2614_v24, %v2617_v31 }
 0xa3c   : > { %v2611_v18 = vmin.f32 %v2609_v3, %v2605_v26 }
 0xa3d   : > { %v2624_v57 = vmax.f32 %v2612_v27, %v2622_v46 }
 0xa3e   : > { %v2615_v16 = vmax.f32 %v2607_v9, %v2611_v18  ;;  %v2613_v1 = vmin.f32 %v2607_v9, %v2611_v18 }
 0xa3f   : > { %2626 = vst.msk [vmem:[%s265_s28] sm:$0xff] %vm299_vm3, %v2624_v57 }
 0xa40   : > { %v2623_v45 = vmin.f32 %v2615_v16, %v2619_v7 }
 0xa42   : > { %v2625_v59 = vmax.f32 %v2613_v1, %v2623_v45 }
 0xa44   : > { %2627 = vst.msk [vmem:[%s265_s28 + $0x8] sm:$0xff] %vm299_vm3, %v2625_v59 }
 0xa45   : > { %2979 = shalt.err (!%p2976_p6)
}
 0xa46   : > { %s2980_s19 = scalar_lea.hbm %s4553_s22, 256  ;;  %s2984_s5 = scalar_lea.hbm %s4602_s3, 512 }
 0xa47   : > { %p2981_p12 = scmp.ne.s32.totalorder %s4553_s22, %s2980_s19  ;;  %p2985_p4 = scmp.lt.s32.totalorder %s4553_s22, %s4602_s3 }
 0xa48   : > { %p2986_p2 = scmp.lt.s32.totalorder %s2984_s5, %s2980_s19 }
 0xa49   : > { %p2982_p0 = pnand %p2981_p12, %p4801_p7 }
 0xa4a   : > { %p2987_p5 = por %p2986_p2, %p2985_p4 }
 0xa4b   : > { %p2983_p11 = pneg %p2982_p0 }
 0xa4d   : > { %p2988_p13 = pnand %p2987_p5, %p2983_p11 }
 0xa4f   : > { %2991 = shalt.err (!%p2988_p13)
}
 0xa50   : > { %s3049_s7 = smov 128   ;;  %s3050_s20 = smov 8  }
 0xa51   : > { %2797 = dma.vmem_to_hbm [thread:$0]  (%p4801_p7), %s4555_s8, 256, %s4553_s22, %s2629_s16, %s3049_s7, %s3049_s7, %s3050_s20  }
 0xa52 PF: > { %s2657_s1 = sand.u32 1, %s3022_s12   ;;  %p4802_p8 = scmp.ne.s32.totalorder %s4656_s24, 0 }
 0xa53   : > { %p4803_p10 = scmp.ge.s32.totalorder %s3034_s15, 2  ;;  %s2658_s10 = scalar_lea.sflag [#allocation7], %s2657_s1 }
 0xa55   : > { %p2810_p1 = pnand %p4803_p10, %p4802_p8 }
 0xa57   : > { %p2811_p3 = pneg %p2810_p1 }
 0xa59   : > { %3017 = dma.done.wait (%p2811_p3), %s2658_s10, 256  }
 0xa5a   : > { %3019 = vsyncadd (%p2811_p3), %s2658_s10, 4294967040  ;;  %p19_p9 = scmp.ge.s32.totalorder %s3096_s18, 4   ;;  %s4804_s12 = smov %s3026_s13 }
 0xa5b   : > { %s4805_s13 = smov %s3030_s14  ;;  %s4806_s14 = smov %s3108_s21 }
 0xa5c   : > { %s4807_s15 = smov %s3096_s18  ;;  %21 = sbr.rel (!%p19_p9) target bundleno = 10 (0xa), region = 101 }
 0xa61   :  { %2663 = vsyncpa [#allocation6], 1 }
 0xa62   :  { %2665 = vsyncpa [#allocation6 + $0x1], 1 }
 0xa63   :  { %2666 = vsyncpa [#allocation9], 1 }
 0xa64   :  { %2668 = vsyncpa [#allocation9 + $0x1], 1 }
 0xa65   :  { %2669 = vsyncpa [#allocation7], 1 }
 0xa66   :  { %2671 = vsyncpa [#allocation7 + $0x1], 1 }

</bundles_post_ra>
